<compile_context>
chip_gen: v5e
topology: v5e:2x2
jax: 0.10.0
libtpu: 0.0.40
codegen_flags: <defaults>
</compile_context>

<pallas_src>
import math
import functools

import jax
import jax.numpy as jnp
from jax.experimental import pallas as pl
from jax.experimental.pallas import tpu as pltpu

NUM_HEADS = 6
LN_EPS = 1e-5


def _expert_attention(x, wq, wk, wv, bq, bk, bv, wo, bo, ln_g, ln_b, *, block_b, num_heads):
    """Single-layer self-attention expert (+ residual + LayerNorm) on one batch chunk.

    x:            (Bb, S, D)
    wq/wk/wv:     (H*Bb, D, dh)   per-head projection weights (head-major, repeated over Bb)
    bq/bk/bv:     (H*Bb, 1, dh)
    wo:           (H*Bb, dh, D)   per-head rows of the output projection
    bo/ln_g/ln_b: (1, D)
    """
    Bb, S, D = x.shape
    H = num_heads
    N = H * Bb

    # Replicate the chunk over heads along a new LEADING axis (n = h*Bb + b):
    # leading-dim broadcast + leading-dim merge only -> no lane shuffles.
    xb = jnp.broadcast_to(x[None], (H, Bb, S, D)).reshape(N, S, D)

    # Head-batched Q/K/V projections (1/sqrt(dh) scale already folded into wq/bq).
    q = jnp.einsum("nsd,nde->nse", xb, wq, preferred_element_type=jnp.float32) + bq
    k = jnp.einsum("nsd,nde->nse", xb, wk, preferred_element_type=jnp.float32) + bk
    v = jnp.einsum("nsd,nde->nse", xb, wv, preferred_element_type=jnp.float32) + bv

    # Scores + numerically-stable softmax, batched over (batch, head).
    s = jnp.einsum("nqe,nke->nqk", q, k, preferred_element_type=jnp.float32)      # (N, S, S)
    s = s - jnp.max(s, axis=-1, keepdims=True)
    p = jnp.exp(s)
    p = p / jnp.sum(p, axis=-1, keepdims=True)   # exact: keeps the 1e-4 check comfortable

    ctx = jnp.einsum("nqk,nke->nqe", p, v, preferred_element_type=jnp.float32)    # (N, S, dh)
    yh = jnp.einsum("nse,ned->nsd", ctx, wo, preferred_element_type=jnp.float32)  # (N, S, D)

    # Merge heads: out_proj(concat_h ctx_h) == sum_h ctx_h @ W_out[h].
    # Static major-dim slices + adds only (no concatenate, no lane shuffles).
    attn = yh[0:Bb]
    for h in range(1, H):
        attn = attn + yh[h * Bb:(h + 1) * Bb]
    attn = attn + bo
    # expert dropout(0.1) is identity in eval mode
    y = x + attn
    mu = jnp.mean(y, axis=-1, keepdims=True)
    var = jnp.mean((y - mu) ** 2, axis=-1, keepdims=True)
    return (y - mu) * jax.lax.rsqrt(var + LN_EPS) * ln_g + ln_b


def moe_fusion_kernel(gate_ref, temp_ref, spat_ref,
                      t_wq, t_wk, t_wv, t_bq, t_bk, t_bv, t_wo, t_bo, t_lg, t_lb,
                      s_wq, s_wk, s_wv, s_bq, s_bk, s_bv, s_wo, s_bo, s_lg, s_lb,
                      f_lg, f_lb, out_ref, *, block_b, num_heads):
    x_t = temp_ref[...]                                      # (Bb, S, D)
    x_s = spat_ref[...]                                      # (Bb, S, D)

    t_out = _expert_attention(x_t, t_wq[...], t_wk[...], t_wv[...], t_bq[...], t_bk[...],
                              t_bv[...], t_wo[...], t_bo[...], t_lg[...], t_lb[...],
                              block_b=block_b, num_heads=num_heads)
    s_out = _expert_attention(x_s, s_wq[...], s_wk[...], s_wv[...], s_bq[...], s_bk[...],
                              s_bv[...], s_wo[...], s_bo[...], s_lg[...], s_lb[...],
                              block_b=block_b, num_heads=num_heads)

    # Gating weights were computed in the wrapper; just mix.
    w = gate_ref[...]                                        # (Bb, 1, 2)
    fused = w[:, :, 0:1] * t_out + w[:, :, 1:2] * s_out      # (Bb, S, D)

    # Module: layer_norm(fused + dropout(fused)).  Eval mode -> LN(2*fused), which is
    # exactly LN(fused) with eps/4, so fold the 2 into eps instead of a VPU add.
    mu = jnp.mean(fused, axis=-1, keepdims=True)
    var = jnp.mean((fused - mu) ** 2, axis=-1, keepdims=True)
    out_ref[...] = (fused - mu) * jax.lax.rsqrt(var + 0.25 * LN_EPS) * f_lg[...] + f_lb[...]


def _pick_block_b(batch, seq):
    """Largest divisor of `batch` targeting a few hundred rows per grid step while
    capping head-replicated weight size.  (At B=2, S=8 this collapses to grid=(1,);
    for larger B the grid keeps >=2 parallel steps for megacore/v7x sharding.)"""
    target = max(1, min(64, 256 // max(seq, 1)))
    best = 1
    for d in range(1, batch + 1):
        if batch % d == 0 and d <= target:
            best = d
    return best


def _prep_expert_params(w_in, b_in, w_out, b_out, ln_g, ln_b, *, d_model, num_heads, block_b):
    """Host-side (plain XLA) repack of one expert's MHA weights into head-batched form."""
    H = num_heads
    dh = d_model // H
    scale = 1.0 / math.sqrt(dh)

    def per_head_w(w):                         # (D, D) -> (H*Bb, D, dh), n = h*Bb + b
        wh = w.reshape(d_model, H, dh).transpose(1, 0, 2)
        return jnp.repeat(wh, block_b, axis=0)

    def per_head_b(b):                         # (D,) -> (H*Bb, 1, dh)
        bh = b.reshape(H, 1, dh)
        return jnp.repeat(bh, block_b, axis=0)

    wq, wk, wv = w_in[:, :d_model], w_in[:, d_model:2 * d_model], w_in[:, 2 * d_model:]
    bq, bk, bv = b_in[0, :d_model], b_in[0, d_model:2 * d_model], b_in[0, 2 * d_model:]
    wo = jnp.repeat(w_out.reshape(H, dh, d_model), block_b, axis=0)   # (H*Bb, dh, D)
    return (per_head_w(wq) * scale, per_head_w(wk), per_head_w(wv),
            per_head_b(bq) * scale, per_head_b(bk), per_head_b(bv),
            wo, b_out, ln_g, ln_b)


def moe_fusion(task_emb, temporal_emb, spatial_emb, params, *, block_b=None):
    B, S, D = temporal_emb.shape
    if block_b is None:
        block_b = _pick_block_b(B, S)
    assert B % block_b == 0, "block_b must divide the batch size"
    Bb = block_b

    # --- Gating network hoisted out of the grid (review item): two tiny matmuls and a
    # softmax over 2 logits run once in plain XLA; only (B, 1, 2) weights go to the kernel.
    h = jnp.maximum(task_emb @ params["gw1"] + params["gb1"], 0.0)
    logits = h @ params["gw2"] + params["gb2"]
    gate = jax.nn.softmax(logits, axis=-1).reshape(B, 1, 2).astype(jnp.float32)

    t_p = _prep_expert_params(params["t_win"], params["t_bin"], params["t_wout"],
                              params["t_bout"], params["t_lng"], params["t_lnb"],
                              d_model=D, num_heads=NUM_HEADS, block_b=Bb)
    s_p = _prep_expert_params(params["s_win"], params["s_bin"], params["s_wout"],
                              params["s_bout"], params["s_lng"], params["s_lnb"],
                              d_model=D, num_heads=NUM_HEADS, block_b=Bb)

    inputs = [gate, temporal_emb, spatial_emb, *t_p, *s_p, params["f_lng"], params["f_lnb"]]

    batch_specs = [
        pl.BlockSpec((Bb, 1, 2), lambda i: (i, 0, 0)),     # gate mixture weights (per chunk)
        pl.BlockSpec((Bb, S, D), lambda i: (i, 0, 0)),     # temporal chunk
        pl.BlockSpec((Bb, S, D), lambda i: (i, 0, 0)),     # spatial chunk
    ]
    # Parameters: constant-index full blocks, resident across grid steps.
    param_specs = [pl.BlockSpec(p.shape, (lambda i, _n=p.ndim: (0,) * _n)) for p in inputs[3:]]

    kernel = functools.partial(moe_fusion_kernel, block_b=Bb, num_heads=NUM_HEADS)

    dh = D // NUM_HEADS
    flops = int(2 * (2 * B * S * D * 4 * D) + 2 * (4 * B * NUM_HEADS * S * S * dh))
    cost = pl.CostEstimate(
        flops=flops,
        transcendentals=int(2 * B * NUM_HEADS * S * S),
        bytes_accessed=int(4 * (sum(int(x.size) for x in inputs) + B * S * D)),
    )

    return pl.pallas_call(
        kernel,
        out_shape=jax.ShapeDtypeStruct((B, S, D), jnp.float32),
        grid=(B // Bb,),
        in_specs=batch_specs + param_specs,
        out_specs=pl.BlockSpec((Bb, S, D), lambda i: (i, 0, 0)),
        compiler_params=pltpu.CompilerParams(dimension_semantics=("parallel",)),
        cost_estimate=cost,
    )(*inputs)


def moe_fusion_reference(task, temp, spat, p):
    """Pure-JAX reference with the PyTorch module's math (eval mode)."""
    def gate(t):
        h = jnp.maximum(t @ p["gw1"] + p["gb1"][0], 0.0)
        logits = h @ p["gw2"] + p["gb2"][0]
        return jax.nn.softmax(logits, axis=1)

    def expert(x, win, bin_, wout, bout, lng, lnb):
        B, S, D = x.shape
        dh = D // NUM_HEADS
        qkv = x @ win + bin_[0]
        q, k, v = qkv[..., :D], qkv[..., D:2 * D], qkv[..., 2 * D:]
        q = q.reshape(B, S, NUM_HEADS, dh)
        k = k.reshape(B, S, NUM_HEADS, dh)
        v = v.reshape(B, S, NUM_HEADS, dh)
        s = jnp.einsum("bqhd,bkhd->bhqk", q, k) / math.sqrt(dh)
        pm = jax.nn.softmax(s, axis=-1)
        o = jnp.einsum("bhqk,bkhd->bqhd", pm, v).reshape(B, S, D)
        o = o @ wout + bout[0]
        y = x + o
        mu = y.mean(-1, keepdims=True)
        var = ((y - mu) ** 2).mean(-1, keepdims=True)
        return ((y - mu) / jnp.sqrt(var + LN_EPS)) * lng[0] + lnb[0]

    w = gate(task)
    t_out = expert(temp, p["t_win"], p["t_bin"], p["t_wout"], p["t_bout"], p["t_lng"], p["t_lnb"])
    s_out = expert(spat, p["s_win"], p["s_bin"], p["s_wout"], p["s_bout"], p["s_lng"], p["s_lnb"])
    fused = w[:, 0][:, None, None] * t_out + w[:, 1][:, None, None] * s_out
    y = fused + fused                      # eval-mode dropout: fused + dropout(fused)
    mu = y.mean(-1, keepdims=True)
    var = ((y - mu) ** 2).mean(-1, keepdims=True)
    return ((y - mu) / jnp.sqrt(var + LN_EPS)) * p["f_lng"][0] + p["f_lnb"][0]


def init_params(key, D, num_experts=2):
    ks = jax.random.split(key, 12)
    n = lambda k, shape, s=0.05: (s * jax.random.normal(k, shape)).astype(jnp.float32)
    params = {
        # gating (weights stored input-major: x @ W)
        "gw1": n(ks[0], (D, D)), "gb1": n(ks[1], (1, D), 0.02),
        "gw2": n(ks[2], (D, num_experts)), "gb2": n(ks[3], (1, num_experts), 0.02),
        # temporal expert MHA + LN
        "t_win": n(ks[4], (D, 3 * D)), "t_bin": n(ks[5], (1, 3 * D), 0.02),
        "t_wout": n(ks[6], (D, D)), "t_bout": n(ks[7], (1, D), 0.02),
        "t_lng": jnp.ones((1, D), jnp.float32) + n(ks[8], (1, D), 0.1),
        "t_lnb": n(ks[8], (1, D), 0.02),
        # spatial expert MHA + LN
        "s_win": n(ks[9], (D, 3 * D)), "s_bin": n(ks[10], (1, 3 * D), 0.02),
        "s_wout": n(ks[11], (D, D)), "s_bout": n(ks[4], (1, D), 0.02),
        "s_lng": jnp.ones((1, D), jnp.float32) + n(ks[5], (1, D), 0.1),
        "s_lnb": n(ks[6], (1, D), 0.02),
        # final LayerNorm
        "f_lng": jnp.ones((1, D), jnp.float32) + n(ks[7], (1, D), 0.1),
        "f_lnb": n(ks[9], (1, D), 0.02),
    }
    return params


if __name__ == "__main__":
    B, S, D = 2, 8, 48  # hidden_dim = output_dim = 48, divisible by 6 heads

    key = jax.random.PRNGKey(0)
    k_task, k_temp, k_spat, k_par = jax.random.split(key, 4)
    task_emb = jax.random.normal(k_task, (B, D), jnp.float32)
    temporal_emb = jax.random.normal(k_temp, (B, S, D), jnp.float32)
    spatial_emb = jax.random.normal(k_spat, (B, S, D), jnp.float32)
    params = init_params(k_par, D)

    out = moe_fusion(task_emb, temporal_emb, spatial_emb, params)
    out = jax.block_until_ready(out)

    ref = moe_fusion_reference(task_emb, temporal_emb, spatial_emb, params)
    assert out.shape == (B, S, D)
    assert jnp.allclose(out, ref, atol=1e-4, rtol=1e-4), "mismatch vs pure-JAX reference"

    print("KERNEL_OK")
</pallas_src>

<mosaic_0001>
module attributes {stable_mosaic.version = 11 : i64} {
  func.func @moe_fusion_kernel(%arg0: i32, %arg1: memref<2x1x2xf32, #tpu.memory_space<vmem>>, %arg2: memref<2x8x48xf32, #tpu.memory_space<vmem>>, %arg3: memref<2x8x48xf32, #tpu.memory_space<vmem>>, %arg4: memref<12x48x8xf32, #tpu.memory_space<vmem>>, %arg5: memref<12x48x8xf32, #tpu.memory_space<vmem>>, %arg6: memref<12x48x8xf32, #tpu.memory_space<vmem>>, %arg7: memref<12x1x8xf32, #tpu.memory_space<vmem>>, %arg8: memref<12x1x8xf32, #tpu.memory_space<vmem>>, %arg9: memref<12x1x8xf32, #tpu.memory_space<vmem>>, %arg10: memref<12x8x48xf32, #tpu.memory_space<vmem>>, %arg11: memref<1x48xf32, #tpu.memory_space<vmem>>, %arg12: memref<1x48xf32, #tpu.memory_space<vmem>>, %arg13: memref<1x48xf32, #tpu.memory_space<vmem>>, %arg14: memref<12x48x8xf32, #tpu.memory_space<vmem>>, %arg15: memref<12x48x8xf32, #tpu.memory_space<vmem>>, %arg16: memref<12x48x8xf32, #tpu.memory_space<vmem>>, %arg17: memref<12x1x8xf32, #tpu.memory_space<vmem>>, %arg18: memref<12x1x8xf32, #tpu.memory_space<vmem>>, %arg19: memref<12x1x8xf32, #tpu.memory_space<vmem>>, %arg20: memref<12x8x48xf32, #tpu.memory_space<vmem>>, %arg21: memref<1x48xf32, #tpu.memory_space<vmem>>, %arg22: memref<1x48xf32, #tpu.memory_space<vmem>>, %arg23: memref<1x48xf32, #tpu.memory_space<vmem>>, %arg24: memref<1x48xf32, #tpu.memory_space<vmem>>, %arg25: memref<1x48xf32, #tpu.memory_space<vmem>>, %arg26: memref<2x8x48xf32, #tpu.memory_space<vmem>>) attributes {dimension_semantics = [#tpu.dimension_semantics<parallel>], iteration_bounds = array<i64: 1>, scalar_prefetch = 0 : i64, scratch_operands = 0 : i64, tpu.core_type = #tpu.core_type<tc>, window_params = [{transform_indices = @transform_0, window_bounds = array<i64: 2, 1, 2>}, {transform_indices = @transform_1, window_bounds = array<i64: 2, 8, 48>}, {transform_indices = @transform_2, window_bounds = array<i64: 2, 8, 48>}, {pipeline_mode = #tpu.pipeline_mode<synchronous>, transform_indices = @transform_3, window_bounds = array<i64: 12, 48, 8>}, {pipeline_mode = #tpu.pipeline_mode<synchronous>, transform_indices = @transform_4, window_bounds = array<i64: 12, 48, 8>}, {pipeline_mode = #tpu.pipeline_mode<synchronous>, transform_indices = @transform_5, window_bounds = array<i64: 12, 48, 8>}, {pipeline_mode = #tpu.pipeline_mode<synchronous>, transform_indices = @transform_6, window_bounds = array<i64: 12, 1, 8>}, {pipeline_mode = #tpu.pipeline_mode<synchronous>, transform_indices = @transform_7, window_bounds = array<i64: 12, 1, 8>}, {pipeline_mode = #tpu.pipeline_mode<synchronous>, transform_indices = @transform_8, window_bounds = array<i64: 12, 1, 8>}, {pipeline_mode = #tpu.pipeline_mode<synchronous>, transform_indices = @transform_9, window_bounds = array<i64: 12, 8, 48>}, {pipeline_mode = #tpu.pipeline_mode<synchronous>, transform_indices = @transform_10, window_bounds = array<i64: 1, 48>}, {pipeline_mode = #tpu.pipeline_mode<synchronous>, transform_indices = @transform_11, window_bounds = array<i64: 1, 48>}, {pipeline_mode = #tpu.pipeline_mode<synchronous>, transform_indices = @transform_12, window_bounds = array<i64: 1, 48>}, {pipeline_mode = #tpu.pipeline_mode<synchronous>, transform_indices = @transform_13, window_bounds = array<i64: 12, 48, 8>}, {pipeline_mode = #tpu.pipeline_mode<synchronous>, transform_indices = @transform_14, window_bounds = array<i64: 12, 48, 8>}, {pipeline_mode = #tpu.pipeline_mode<synchronous>, transform_indices = @transform_15, window_bounds = array<i64: 12, 48, 8>}, {pipeline_mode = #tpu.pipeline_mode<synchronous>, transform_indices = @transform_16, window_bounds = array<i64: 12, 1, 8>}, {pipeline_mode = #tpu.pipeline_mode<synchronous>, transform_indices = @transform_17, window_bounds = array<i64: 12, 1, 8>}, {pipeline_mode = #tpu.pipeline_mode<synchronous>, transform_indices = @transform_18, window_bounds = array<i64: 12, 1, 8>}, {pipeline_mode = #tpu.pipeline_mode<synchronous>, transform_indices = @transform_19, window_bounds = array<i64: 12, 8, 48>}, {pipeline_mode = #tpu.pipeline_mode<synchronous>, transform_indices = @transform_20, window_bounds = array<i64: 1, 48>}, {pipeline_mode = #tpu.pipeline_mode<synchronous>, transform_indices = @transform_21, window_bounds = array<i64: 1, 48>}, {pipeline_mode = #tpu.pipeline_mode<synchronous>, transform_indices = @transform_22, window_bounds = array<i64: 1, 48>}, {pipeline_mode = #tpu.pipeline_mode<synchronous>, transform_indices = @transform_23, window_bounds = array<i64: 1, 48>}, {pipeline_mode = #tpu.pipeline_mode<synchronous>, transform_indices = @transform_24, window_bounds = array<i64: 1, 48>}, {transform_indices = @transform_25, window_bounds = array<i64: 2, 8, 48>}]} {
    %c0 = arith.constant 0 : index
    %c0_0 = arith.constant 0 : index
    %c0_1 = arith.constant 0 : index
    %0 = vector.load %arg2[%c0, %c0_0, %c0_1] : memref<2x8x48xf32, #tpu.memory_space<vmem>>, vector<2x8x48xf32>
    %c0_2 = arith.constant 0 : index
    %c0_3 = arith.constant 0 : index
    %c0_4 = arith.constant 0 : index
    %1 = vector.load %arg3[%c0_2, %c0_3, %c0_4] : memref<2x8x48xf32, #tpu.memory_space<vmem>>, vector<2x8x48xf32>
    %c0_5 = arith.constant 0 : index
    %c0_6 = arith.constant 0 : index
    %c0_7 = arith.constant 0 : index
    %2 = vector.load %arg4[%c0_5, %c0_6, %c0_7] : memref<12x48x8xf32, #tpu.memory_space<vmem>>, vector<12x48x8xf32>
    %c0_8 = arith.constant 0 : index
    %c0_9 = arith.constant 0 : index
    %c0_10 = arith.constant 0 : index
    %3 = vector.load %arg5[%c0_8, %c0_9, %c0_10] : memref<12x48x8xf32, #tpu.memory_space<vmem>>, vector<12x48x8xf32>
    %c0_11 = arith.constant 0 : index
    %c0_12 = arith.constant 0 : index
    %c0_13 = arith.constant 0 : index
    %4 = vector.load %arg6[%c0_11, %c0_12, %c0_13] : memref<12x48x8xf32, #tpu.memory_space<vmem>>, vector<12x48x8xf32>
    %c0_14 = arith.constant 0 : index
    %c0_15 = arith.constant 0 : index
    %c0_16 = arith.constant 0 : index
    %5 = vector.load %arg7[%c0_14, %c0_15, %c0_16] : memref<12x1x8xf32, #tpu.memory_space<vmem>>, vector<12x1x8xf32>
    %c0_17 = arith.constant 0 : index
    %c0_18 = arith.constant 0 : index
    %c0_19 = arith.constant 0 : index
    %6 = vector.load %arg8[%c0_17, %c0_18, %c0_19] : memref<12x1x8xf32, #tpu.memory_space<vmem>>, vector<12x1x8xf32>
    %c0_20 = arith.constant 0 : index
    %c0_21 = arith.constant 0 : index
    %c0_22 = arith.constant 0 : index
    %7 = vector.load %arg9[%c0_20, %c0_21, %c0_22] : memref<12x1x8xf32, #tpu.memory_space<vmem>>, vector<12x1x8xf32>
    %c0_23 = arith.constant 0 : index
    %c0_24 = arith.constant 0 : index
    %c0_25 = arith.constant 0 : index
    %8 = vector.load %arg10[%c0_23, %c0_24, %c0_25] : memref<12x8x48xf32, #tpu.memory_space<vmem>>, vector<12x8x48xf32>
    %c0_26 = arith.constant 0 : index
    %c0_27 = arith.constant 0 : index
    %9 = vector.load %arg11[%c0_26, %c0_27] : memref<1x48xf32, #tpu.memory_space<vmem>>, vector<1x48xf32>
    %c0_28 = arith.constant 0 : index
    %c0_29 = arith.constant 0 : index
    %10 = vector.load %arg12[%c0_28, %c0_29] : memref<1x48xf32, #tpu.memory_space<vmem>>, vector<1x48xf32>
    %c0_30 = arith.constant 0 : index
    %c0_31 = arith.constant 0 : index
    %11 = vector.load %arg13[%c0_30, %c0_31] : memref<1x48xf32, #tpu.memory_space<vmem>>, vector<1x48xf32>
    %12 = vector.shape_cast %0 : vector<2x8x48xf32> to vector<1x2x8x48xf32>
    %13 = vector.shape_cast %12 : vector<1x2x8x48xf32> to vector<1x2x8x48xf32>
    %14 = vector.broadcast %13 : vector<1x2x8x48xf32> to vector<6x2x8x48xf32>
    %15 = vector.shape_cast %14 : vector<6x2x8x48xf32> to vector<12x8x48xf32>
    "tpu.trace_start"() <{level = 10 : i32, message = "nsd,nde->nse"}> : () -> ()
    %cst = arith.constant dense<0.000000e+00> : vector<12x8x8xf32>
    %16 = tpu.matmul %15, %2, %cst {dimension_numbers = #tpu.dot_dimension_numbers<[2], [1], [1], [2], [0, 0, 0, 1, 1, 2], [0], [0]>} : vector<12x8x48xf32>, vector<12x48x8xf32>, vector<12x8x8xf32> -> vector<12x8x8xf32>
    "tpu.trace_stop"() : () -> ()
    %17 = vector.broadcast %5 : vector<12x1x8xf32> to vector<12x8x8xf32>
    %18 = arith.addf %16, %17 : vector<12x8x8xf32>
    "tpu.trace_start"() <{level = 10 : i32, message = "nsd,nde->nse"}> : () -> ()
    %cst_32 = arith.constant dense<0.000000e+00> : vector<12x8x8xf32>
    %19 = tpu.matmul %15, %3, %cst_32 {dimension_numbers = #tpu.dot_dimension_numbers<[2], [1], [1], [2], [0, 0, 0, 1, 1, 2], [0], [0]>} : vector<12x8x48xf32>, vector<12x48x8xf32>, vector<12x8x8xf32> -> vector<12x8x8xf32>
    "tpu.trace_stop"() : () -> ()
    %20 = vector.broadcast %6 : vector<12x1x8xf32> to vector<12x8x8xf32>
    %21 = arith.addf %19, %20 : vector<12x8x8xf32>
    "tpu.trace_start"() <{level = 10 : i32, message = "nsd,nde->nse"}> : () -> ()
    %cst_33 = arith.constant dense<0.000000e+00> : vector<12x8x8xf32>
    %22 = tpu.matmul %15, %4, %cst_33 {dimension_numbers = #tpu.dot_dimension_numbers<[2], [1], [1], [2], [0, 0, 0, 1, 1, 2], [0], [0]>} : vector<12x8x48xf32>, vector<12x48x8xf32>, vector<12x8x8xf32> -> vector<12x8x8xf32>
    "tpu.trace_stop"() : () -> ()
    %23 = vector.broadcast %7 : vector<12x1x8xf32> to vector<12x8x8xf32>
    %24 = arith.addf %22, %23 : vector<12x8x8xf32>
    "tpu.trace_start"() <{level = 10 : i32, message = "nqe,nke->nqk"}> : () -> ()
    %cst_34 = arith.constant dense<0.000000e+00> : vector<12x8x8xf32>
    %25 = tpu.matmul %18, %21, %cst_34 {dimension_numbers = #tpu.dot_dimension_numbers<[2], [2], [1], [1], [0, 0, 0, 1, 1, 1], [0], [0]>} : vector<12x8x8xf32>, vector<12x8x8xf32>, vector<12x8x8xf32> -> vector<12x8x8xf32>
    "tpu.trace_stop"() : () -> ()
    %cst_35 = arith.constant dense<0xFF800000> : vector<12x8xf32>
    %26 = vector.multi_reduction <maximumf>, %25, %cst_35 [2] : vector<12x8x8xf32> to vector<12x8xf32>
    %27 = vector.shape_cast %26 : vector<12x8xf32> to vector<12x8x1xf32>
    %28 = vector.broadcast %27 : vector<12x8x1xf32> to vector<12x8x8xf32>
    %29 = arith.subf %25, %28 : vector<12x8x8xf32>
    %30 = math.exp %29 : vector<12x8x8xf32>
    %cst_36 = arith.constant dense<0.000000e+00> : vector<12x8xf32>
    %31 = vector.multi_reduction <add>, %30, %cst_36 [2] : vector<12x8x8xf32> to vector<12x8xf32>
    %32 = vector.shape_cast %31 : vector<12x8xf32> to vector<12x8x1xf32>
    %33 = vector.broadcast %32 : vector<12x8x1xf32> to vector<12x8x8xf32>
    %34 = arith.divf %30, %33 : vector<12x8x8xf32>
    "tpu.trace_start"() <{level = 10 : i32, message = "nqk,nke->nqe"}> : () -> ()
    %cst_37 = arith.constant dense<0.000000e+00> : vector<12x8x8xf32>
    %35 = tpu.matmul %34, %24, %cst_37 {dimension_numbers = #tpu.dot_dimension_numbers<[2], [1], [1], [2], [0, 0, 0, 1, 1, 2], [0], [0]>} : vector<12x8x8xf32>, vector<12x8x8xf32>, vector<12x8x8xf32> -> vector<12x8x8xf32>
    "tpu.trace_stop"() : () -> ()
    "tpu.trace_start"() <{level = 10 : i32, message = "nse,ned->nsd"}> : () -> ()
    %cst_38 = arith.constant dense<0.000000e+00> : vector<12x8x48xf32>
    %36 = tpu.matmul %35, %8, %cst_38 {dimension_numbers = #tpu.dot_dimension_numbers<[2], [1], [1], [2], [0, 0, 0, 1, 1, 2], [0], [0]>} : vector<12x8x8xf32>, vector<12x8x48xf32>, vector<12x8x48xf32> -> vector<12x8x48xf32>
    "tpu.trace_stop"() : () -> ()
    %37 = vector.extract_strided_slice %36 {offsets = [0, 0, 0], sizes = [2, 8, 48], strides = [1, 1, 1]} : vector<12x8x48xf32> to vector<2x8x48xf32>
    %38 = vector.extract_strided_slice %36 {offsets = [2, 0, 0], sizes = [2, 8, 48], strides = [1, 1, 1]} : vector<12x8x48xf32> to vector<2x8x48xf32>
    %39 = arith.addf %37, %38 : vector<2x8x48xf32>
    %40 = vector.extract_strided_slice %36 {offsets = [4, 0, 0], sizes = [2, 8, 48], strides = [1, 1, 1]} : vector<12x8x48xf32> to vector<2x8x48xf32>
    %41 = arith.addf %39, %40 : vector<2x8x48xf32>
    %42 = vector.extract_strided_slice %36 {offsets = [6, 0, 0], sizes = [2, 8, 48], strides = [1, 1, 1]} : vector<12x8x48xf32> to vector<2x8x48xf32>
    %43 = arith.addf %41, %42 : vector<2x8x48xf32>
    %44 = vector.extract_strided_slice %36 {offsets = [8, 0, 0], sizes = [2, 8, 48], strides = [1, 1, 1]} : vector<12x8x48xf32> to vector<2x8x48xf32>
    %45 = arith.addf %43, %44 : vector<2x8x48xf32>
    %46 = vector.extract_strided_slice %36 {offsets = [10, 0, 0], sizes = [2, 8, 48], strides = [1, 1, 1]} : vector<12x8x48xf32> to vector<2x8x48xf32>
    %47 = arith.addf %45, %46 : vector<2x8x48xf32>
    %48 = vector.shape_cast %9 : vector<1x48xf32> to vector<1x1x48xf32>
    %49 = vector.broadcast %48 : vector<1x1x48xf32> to vector<2x8x48xf32>
    %50 = arith.addf %47, %49 : vector<2x8x48xf32>
    %51 = arith.addf %0, %50 : vector<2x8x48xf32>
    %cst_39 = arith.constant dense<0.000000e+00> : vector<2x8xf32>
    %52 = vector.multi_reduction <add>, %51, %cst_39 [2] : vector<2x8x48xf32> to vector<2x8xf32>
    %53 = vector.shape_cast %52 : vector<2x8xf32> to vector<2x8x1xf32>
    %cst_40 = arith.constant 4.800000e+01 : f32
    %54 = vector.broadcast %cst_40 : f32 to vector<2x8x1xf32>
    %55 = arith.divf %53, %54 : vector<2x8x1xf32>
    %56 = vector.broadcast %55 : vector<2x8x1xf32> to vector<2x8x48xf32>
    %57 = arith.subf %51, %56 : vector<2x8x48xf32>
    %58 = arith.mulf %57, %57 : vector<2x8x48xf32>
    %cst_41 = arith.constant dense<0.000000e+00> : vector<2x8xf32>
    %59 = vector.multi_reduction <add>, %58, %cst_41 [2] : vector<2x8x48xf32> to vector<2x8xf32>
    %60 = vector.shape_cast %59 : vector<2x8xf32> to vector<2x8x1xf32>
    %cst_42 = arith.constant 4.800000e+01 : f32
    %61 = vector.broadcast %cst_42 : f32 to vector<2x8x1xf32>
    %62 = arith.divf %60, %61 : vector<2x8x1xf32>
    %63 = vector.broadcast %55 : vector<2x8x1xf32> to vector<2x8x48xf32>
    %64 = arith.subf %51, %63 : vector<2x8x48xf32>
    %cst_43 = arith.constant 9.99999974E-6 : f32
    %65 = vector.broadcast %cst_43 : f32 to vector<2x8x1xf32>
    %66 = arith.addf %62, %65 : vector<2x8x1xf32>
    %67 = math.rsqrt %66 : vector<2x8x1xf32>
    %68 = vector.broadcast %67 : vector<2x8x1xf32> to vector<2x8x48xf32>
    %69 = arith.mulf %64, %68 : vector<2x8x48xf32>
    %70 = vector.shape_cast %10 : vector<1x48xf32> to vector<1x1x48xf32>
    %71 = vector.broadcast %70 : vector<1x1x48xf32> to vector<2x8x48xf32>
    %72 = arith.mulf %69, %71 : vector<2x8x48xf32>
    %73 = vector.shape_cast %11 : vector<1x48xf32> to vector<1x1x48xf32>
    %74 = vector.broadcast %73 : vector<1x1x48xf32> to vector<2x8x48xf32>
    %75 = arith.addf %72, %74 : vector<2x8x48xf32>
    %c0_44 = arith.constant 0 : index
    %c0_45 = arith.constant 0 : index
    %c0_46 = arith.constant 0 : index
    %76 = vector.load %arg14[%c0_44, %c0_45, %c0_46] : memref<12x48x8xf32, #tpu.memory_space<vmem>>, vector<12x48x8xf32>
    %c0_47 = arith.constant 0 : index
    %c0_48 = arith.constant 0 : index
    %c0_49 = arith.constant 0 : index
    %77 = vector.load %arg15[%c0_47, %c0_48, %c0_49] : memref<12x48x8xf32, #tpu.memory_space<vmem>>, vector<12x48x8xf32>
    %c0_50 = arith.constant 0 : index
    %c0_51 = arith.constant 0 : index
    %c0_52 = arith.constant 0 : index
    %78 = vector.load %arg16[%c0_50, %c0_51, %c0_52] : memref<12x48x8xf32, #tpu.memory_space<vmem>>, vector<12x48x8xf32>
    %c0_53 = arith.constant 0 : index
    %c0_54 = arith.constant 0 : index
    %c0_55 = arith.constant 0 : index
    %79 = vector.load %arg17[%c0_53, %c0_54, %c0_55] : memref<12x1x8xf32, #tpu.memory_space<vmem>>, vector<12x1x8xf32>
    %c0_56 = arith.constant 0 : index
    %c0_57 = arith.constant 0 : index
    %c0_58 = arith.constant 0 : index
    %80 = vector.load %arg18[%c0_56, %c0_57, %c0_58] : memref<12x1x8xf32, #tpu.memory_space<vmem>>, vector<12x1x8xf32>
    %c0_59 = arith.constant 0 : index
    %c0_60 = arith.constant 0 : index
    %c0_61 = arith.constant 0 : index
    %81 = vector.load %arg19[%c0_59, %c0_60, %c0_61] : memref<12x1x8xf32, #tpu.memory_space<vmem>>, vector<12x1x8xf32>
    %c0_62 = arith.constant 0 : index
    %c0_63 = arith.constant 0 : index
    %c0_64 = arith.constant 0 : index
    %82 = vector.load %arg20[%c0_62, %c0_63, %c0_64] : memref<12x8x48xf32, #tpu.memory_space<vmem>>, vector<12x8x48xf32>
    %c0_65 = arith.constant 0 : index
    %c0_66 = arith.constant 0 : index
    %83 = vector.load %arg21[%c0_65, %c0_66] : memref<1x48xf32, #tpu.memory_space<vmem>>, vector<1x48xf32>
    %c0_67 = arith.constant 0 : index
    %c0_68 = arith.constant 0 : index
    %84 = vector.load %arg22[%c0_67, %c0_68] : memref<1x48xf32, #tpu.memory_space<vmem>>, vector<1x48xf32>
    %c0_69 = arith.constant 0 : index
    %c0_70 = arith.constant 0 : index
    %85 = vector.load %arg23[%c0_69, %c0_70] : memref<1x48xf32, #tpu.memory_space<vmem>>, vector<1x48xf32>
    %86 = vector.shape_cast %1 : vector<2x8x48xf32> to vector<1x2x8x48xf32>
    %87 = vector.shape_cast %86 : vector<1x2x8x48xf32> to vector<1x2x8x48xf32>
    %88 = vector.broadcast %87 : vector<1x2x8x48xf32> to vector<6x2x8x48xf32>
    %89 = vector.shape_cast %88 : vector<6x2x8x48xf32> to vector<12x8x48xf32>
    "tpu.trace_start"() <{level = 10 : i32, message = "nsd,nde->nse"}> : () -> ()
    %cst_71 = arith.constant dense<0.000000e+00> : vector<12x8x8xf32>
    %90 = tpu.matmul %89, %76, %cst_71 {dimension_numbers = #tpu.dot_dimension_numbers<[2], [1], [1], [2], [0, 0, 0, 1, 1, 2], [0], [0]>} : vector<12x8x48xf32>, vector<12x48x8xf32>, vector<12x8x8xf32> -> vector<12x8x8xf32>
    "tpu.trace_stop"() : () -> ()
    %91 = vector.broadcast %79 : vector<12x1x8xf32> to vector<12x8x8xf32>
    %92 = arith.addf %90, %91 : vector<12x8x8xf32>
    "tpu.trace_start"() <{level = 10 : i32, message = "nsd,nde->nse"}> : () -> ()
    %cst_72 = arith.constant dense<0.000000e+00> : vector<12x8x8xf32>
    %93 = tpu.matmul %89, %77, %cst_72 {dimension_numbers = #tpu.dot_dimension_numbers<[2], [1], [1], [2], [0, 0, 0, 1, 1, 2], [0], [0]>} : vector<12x8x48xf32>, vector<12x48x8xf32>, vector<12x8x8xf32> -> vector<12x8x8xf32>
    "tpu.trace_stop"() : () -> ()
    %94 = vector.broadcast %80 : vector<12x1x8xf32> to vector<12x8x8xf32>
    %95 = arith.addf %93, %94 : vector<12x8x8xf32>
    "tpu.trace_start"() <{level = 10 : i32, message = "nsd,nde->nse"}> : () -> ()
    %cst_73 = arith.constant dense<0.000000e+00> : vector<12x8x8xf32>
    %96 = tpu.matmul %89, %78, %cst_73 {dimension_numbers = #tpu.dot_dimension_numbers<[2], [1], [1], [2], [0, 0, 0, 1, 1, 2], [0], [0]>} : vector<12x8x48xf32>, vector<12x48x8xf32>, vector<12x8x8xf32> -> vector<12x8x8xf32>
    "tpu.trace_stop"() : () -> ()
    %97 = vector.broadcast %81 : vector<12x1x8xf32> to vector<12x8x8xf32>
    %98 = arith.addf %96, %97 : vector<12x8x8xf32>
    "tpu.trace_start"() <{level = 10 : i32, message = "nqe,nke->nqk"}> : () -> ()
    %cst_74 = arith.constant dense<0.000000e+00> : vector<12x8x8xf32>
    %99 = tpu.matmul %92, %95, %cst_74 {dimension_numbers = #tpu.dot_dimension_numbers<[2], [2], [1], [1], [0, 0, 0, 1, 1, 1], [0], [0]>} : vector<12x8x8xf32>, vector<12x8x8xf32>, vector<12x8x8xf32> -> vector<12x8x8xf32>
    "tpu.trace_stop"() : () -> ()
    %cst_75 = arith.constant dense<0xFF800000> : vector<12x8xf32>
    %100 = vector.multi_reduction <maximumf>, %99, %cst_75 [2] : vector<12x8x8xf32> to vector<12x8xf32>
    %101 = vector.shape_cast %100 : vector<12x8xf32> to vector<12x8x1xf32>
    %102 = vector.broadcast %101 : vector<12x8x1xf32> to vector<12x8x8xf32>
    %103 = arith.subf %99, %102 : vector<12x8x8xf32>
    %104 = math.exp %103 : vector<12x8x8xf32>
    %cst_76 = arith.constant dense<0.000000e+00> : vector<12x8xf32>
    %105 = vector.multi_reduction <add>, %104, %cst_76 [2] : vector<12x8x8xf32> to vector<12x8xf32>
    %106 = vector.shape_cast %105 : vector<12x8xf32> to vector<12x8x1xf32>
    %107 = vector.broadcast %106 : vector<12x8x1xf32> to vector<12x8x8xf32>
    %108 = arith.divf %104, %107 : vector<12x8x8xf32>
    "tpu.trace_start"() <{level = 10 : i32, message = "nqk,nke->nqe"}> : () -> ()
    %cst_77 = arith.constant dense<0.000000e+00> : vector<12x8x8xf32>
    %109 = tpu.matmul %108, %98, %cst_77 {dimension_numbers = #tpu.dot_dimension_numbers<[2], [1], [1], [2], [0, 0, 0, 1, 1, 2], [0], [0]>} : vector<12x8x8xf32>, vector<12x8x8xf32>, vector<12x8x8xf32> -> vector<12x8x8xf32>
    "tpu.trace_stop"() : () -> ()
    "tpu.trace_start"() <{level = 10 : i32, message = "nse,ned->nsd"}> : () -> ()
    %cst_78 = arith.constant dense<0.000000e+00> : vector<12x8x48xf32>
    %110 = tpu.matmul %109, %82, %cst_78 {dimension_numbers = #tpu.dot_dimension_numbers<[2], [1], [1], [2], [0, 0, 0, 1, 1, 2], [0], [0]>} : vector<12x8x8xf32>, vector<12x8x48xf32>, vector<12x8x48xf32> -> vector<12x8x48xf32>
    "tpu.trace_stop"() : () -> ()
    %111 = vector.extract_strided_slice %110 {offsets = [0, 0, 0], sizes = [2, 8, 48], strides = [1, 1, 1]} : vector<12x8x48xf32> to vector<2x8x48xf32>
    %112 = vector.extract_strided_slice %110 {offsets = [2, 0, 0], sizes = [2, 8, 48], strides = [1, 1, 1]} : vector<12x8x48xf32> to vector<2x8x48xf32>
    %113 = arith.addf %111, %112 : vector<2x8x48xf32>
    %114 = vector.extract_strided_slice %110 {offsets = [4, 0, 0], sizes = [2, 8, 48], strides = [1, 1, 1]} : vector<12x8x48xf32> to vector<2x8x48xf32>
    %115 = arith.addf %113, %114 : vector<2x8x48xf32>
    %116 = vector.extract_strided_slice %110 {offsets = [6, 0, 0], sizes = [2, 8, 48], strides = [1, 1, 1]} : vector<12x8x48xf32> to vector<2x8x48xf32>
    %117 = arith.addf %115, %116 : vector<2x8x48xf32>
    %118 = vector.extract_strided_slice %110 {offsets = [8, 0, 0], sizes = [2, 8, 48], strides = [1, 1, 1]} : vector<12x8x48xf32> to vector<2x8x48xf32>
    %119 = arith.addf %117, %118 : vector<2x8x48xf32>
    %120 = vector.extract_strided_slice %110 {offsets = [10, 0, 0], sizes = [2, 8, 48], strides = [1, 1, 1]} : vector<12x8x48xf32> to vector<2x8x48xf32>
    %121 = arith.addf %119, %120 : vector<2x8x48xf32>
    %122 = vector.shape_cast %83 : vector<1x48xf32> to vector<1x1x48xf32>
    %123 = vector.broadcast %122 : vector<1x1x48xf32> to vector<2x8x48xf32>
    %124 = arith.addf %121, %123 : vector<2x8x48xf32>
    %125 = arith.addf %1, %124 : vector<2x8x48xf32>
    %cst_79 = arith.constant dense<0.000000e+00> : vector<2x8xf32>
    %126 = vector.multi_reduction <add>, %125, %cst_79 [2] : vector<2x8x48xf32> to vector<2x8xf32>
    %127 = vector.shape_cast %126 : vector<2x8xf32> to vector<2x8x1xf32>
    %cst_80 = arith.constant 4.800000e+01 : f32
    %128 = vector.broadcast %cst_80 : f32 to vector<2x8x1xf32>
    %129 = arith.divf %127, %128 : vector<2x8x1xf32>
    %130 = vector.broadcast %129 : vector<2x8x1xf32> to vector<2x8x48xf32>
    %131 = arith.subf %125, %130 : vector<2x8x48xf32>
    %132 = arith.mulf %131, %131 : vector<2x8x48xf32>
    %cst_81 = arith.constant dense<0.000000e+00> : vector<2x8xf32>
    %133 = vector.multi_reduction <add>, %132, %cst_81 [2] : vector<2x8x48xf32> to vector<2x8xf32>
    %134 = vector.shape_cast %133 : vector<2x8xf32> to vector<2x8x1xf32>
    %cst_82 = arith.constant 4.800000e+01 : f32
    %135 = vector.broadcast %cst_82 : f32 to vector<2x8x1xf32>
    %136 = arith.divf %134, %135 : vector<2x8x1xf32>
    %137 = vector.broadcast %129 : vector<2x8x1xf32> to vector<2x8x48xf32>
    %138 = arith.subf %125, %137 : vector<2x8x48xf32>
    %cst_83 = arith.constant 9.99999974E-6 : f32
    %139 = vector.broadcast %cst_83 : f32 to vector<2x8x1xf32>
    %140 = arith.addf %136, %139 : vector<2x8x1xf32>
    %141 = math.rsqrt %140 : vector<2x8x1xf32>
    %142 = vector.broadcast %141 : vector<2x8x1xf32> to vector<2x8x48xf32>
    %143 = arith.mulf %138, %142 : vector<2x8x48xf32>
    %144 = vector.shape_cast %84 : vector<1x48xf32> to vector<1x1x48xf32>
    %145 = vector.broadcast %144 : vector<1x1x48xf32> to vector<2x8x48xf32>
    %146 = arith.mulf %143, %145 : vector<2x8x48xf32>
    %147 = vector.shape_cast %85 : vector<1x48xf32> to vector<1x1x48xf32>
    %148 = vector.broadcast %147 : vector<1x1x48xf32> to vector<2x8x48xf32>
    %149 = arith.addf %146, %148 : vector<2x8x48xf32>
    %c0_84 = arith.constant 0 : index
    %c0_85 = arith.constant 0 : index
    %c0_86 = arith.constant 0 : index
    %150 = vector.load %arg1[%c0_84, %c0_85, %c0_86] : memref<2x1x2xf32, #tpu.memory_space<vmem>>, vector<2x1x2xf32>
    %151 = vector.extract_strided_slice %150 {offsets = [0, 0, 0], sizes = [2, 1, 1], strides = [1, 1, 1]} : vector<2x1x2xf32> to vector<2x1x1xf32>
    %152 = vector.broadcast %151 : vector<2x1x1xf32> to vector<2x8x48xf32>
    %153 = arith.mulf %152, %75 : vector<2x8x48xf32>
    %154 = vector.extract_strided_slice %150 {offsets = [0, 0, 1], sizes = [2, 1, 1], strides = [1, 1, 1]} : vector<2x1x2xf32> to vector<2x1x1xf32>
    %155 = vector.broadcast %154 : vector<2x1x1xf32> to vector<2x8x48xf32>
    %156 = arith.mulf %155, %149 : vector<2x8x48xf32>
    %157 = arith.addf %153, %156 : vector<2x8x48xf32>
    %cst_87 = arith.constant dense<0.000000e+00> : vector<2x8xf32>
    %158 = vector.multi_reduction <add>, %157, %cst_87 [2] : vector<2x8x48xf32> to vector<2x8xf32>
    %159 = vector.shape_cast %158 : vector<2x8xf32> to vector<2x8x1xf32>
    %cst_88 = arith.constant 4.800000e+01 : f32
    %160 = vector.broadcast %cst_88 : f32 to vector<2x8x1xf32>
    %161 = arith.divf %159, %160 : vector<2x8x1xf32>
    %162 = vector.broadcast %161 : vector<2x8x1xf32> to vector<2x8x48xf32>
    %163 = arith.subf %157, %162 : vector<2x8x48xf32>
    %164 = arith.mulf %163, %163 : vector<2x8x48xf32>
    %cst_89 = arith.constant dense<0.000000e+00> : vector<2x8xf32>
    %165 = vector.multi_reduction <add>, %164, %cst_89 [2] : vector<2x8x48xf32> to vector<2x8xf32>
    %166 = vector.shape_cast %165 : vector<2x8xf32> to vector<2x8x1xf32>
    %cst_90 = arith.constant 4.800000e+01 : f32
    %167 = vector.broadcast %cst_90 : f32 to vector<2x8x1xf32>
    %168 = arith.divf %166, %167 : vector<2x8x1xf32>
    %169 = vector.broadcast %161 : vector<2x8x1xf32> to vector<2x8x48xf32>
    %170 = arith.subf %157, %169 : vector<2x8x48xf32>
    %cst_91 = arith.constant 2.500000e-06 : f32
    %171 = vector.broadcast %cst_91 : f32 to vector<2x8x1xf32>
    %172 = arith.addf %168, %171 : vector<2x8x1xf32>
    %173 = math.rsqrt %172 : vector<2x8x1xf32>
    %174 = vector.broadcast %173 : vector<2x8x1xf32> to vector<2x8x48xf32>
    %175 = arith.mulf %170, %174 : vector<2x8x48xf32>
    %c0_92 = arith.constant 0 : index
    %c0_93 = arith.constant 0 : index
    %176 = vector.load %arg24[%c0_92, %c0_93] : memref<1x48xf32, #tpu.memory_space<vmem>>, vector<1x48xf32>
    %177 = vector.shape_cast %176 : vector<1x48xf32> to vector<1x1x48xf32>
    %178 = vector.broadcast %177 : vector<1x1x48xf32> to vector<2x8x48xf32>
    %179 = arith.mulf %175, %178 : vector<2x8x48xf32>
    %c0_94 = arith.constant 0 : index
    %c0_95 = arith.constant 0 : index
    %180 = vector.load %arg25[%c0_94, %c0_95] : memref<1x48xf32, #tpu.memory_space<vmem>>, vector<1x48xf32>
    %181 = vector.shape_cast %180 : vector<1x48xf32> to vector<1x1x48xf32>
    %182 = vector.broadcast %181 : vector<1x1x48xf32> to vector<2x8x48xf32>
    %183 = arith.addf %179, %182 : vector<2x8x48xf32>
    %c0_96 = arith.constant 0 : index
    %c0_97 = arith.constant 0 : index
    %c0_98 = arith.constant 0 : index
    %184 = vector.load %arg26[%c0_96, %c0_97, %c0_98] : memref<2x8x48xf32, #tpu.memory_space<vmem>>, vector<2x8x48xf32>
    tpu.vector_store %arg26[%c0_96, %c0_97, %c0_98], %183 {strides = array<i32>} : memref<2x8x48xf32, #tpu.memory_space<vmem>>, vector<2x8x48xf32>,
    return
  }
  func.func @transform_0(%arg0: i32) -> (i32, i32, i32) {
    %c0_i32 = arith.constant 0 : i32
    %c0_i32_0 = arith.constant 0 : i32
    %c0_i32_1 = arith.constant 0 : i32
    return %arg0, %c0_i32, %c0_i32_0 : i32, i32, i32
  }
  func.func @transform_1(%arg0: i32) -> (i32, i32, i32) {
    %c0_i32 = arith.constant 0 : i32
    %c0_i32_0 = arith.constant 0 : i32
    %c0_i32_1 = arith.constant 0 : i32
    return %arg0, %c0_i32, %c0_i32_0 : i32, i32, i32
  }
  func.func @transform_2(%arg0: i32) -> (i32, i32, i32) {
    %c0_i32 = arith.constant 0 : i32
    %c0_i32_0 = arith.constant 0 : i32
    %c0_i32_1 = arith.constant 0 : i32
    return %arg0, %c0_i32, %c0_i32_0 : i32, i32, i32
  }
  func.func @transform_3(%arg0: i32) -> (i32, i32, i32) {
    %c0_i32 = arith.constant 0 : i32
    %c0_i32_0 = arith.constant 0 : i32
    %c0_i32_1 = arith.constant 0 : i32
    %c0_i32_2 = arith.constant 0 : i32
    return %c0_i32, %c0_i32_0, %c0_i32_1 : i32, i32, i32
  }
  func.func @transform_4(%arg0: i32) -> (i32, i32, i32) {
    %c0_i32 = arith.constant 0 : i32
    %c0_i32_0 = arith.constant 0 : i32
    %c0_i32_1 = arith.constant 0 : i32
    %c0_i32_2 = arith.constant 0 : i32
    return %c0_i32, %c0_i32_0, %c0_i32_1 : i32, i32, i32
  }
  func.func @transform_5(%arg0: i32) -> (i32, i32, i32) {
    %c0_i32 = arith.constant 0 : i32
    %c0_i32_0 = arith.constant 0 : i32
    %c0_i32_1 = arith.constant 0 : i32
    %c0_i32_2 = arith.constant 0 : i32
    return %c0_i32, %c0_i32_0, %c0_i32_1 : i32, i32, i32
  }
  func.func @transform_6(%arg0: i32) -> (i32, i32, i32) {
    %c0_i32 = arith.constant 0 : i32
    %c0_i32_0 = arith.constant 0 : i32
    %c0_i32_1 = arith.constant 0 : i32
    %c0_i32_2 = arith.constant 0 : i32
    return %c0_i32, %c0_i32_0, %c0_i32_1 : i32, i32, i32
  }
  func.func @transform_7(%arg0: i32) -> (i32, i32, i32) {
    %c0_i32 = arith.constant 0 : i32
    %c0_i32_0 = arith.constant 0 : i32
    %c0_i32_1 = arith.constant 0 : i32
    %c0_i32_2 = arith.constant 0 : i32
    return %c0_i32, %c0_i32_0, %c0_i32_1 : i32, i32, i32
  }
  func.func @transform_8(%arg0: i32) -> (i32, i32, i32) {
    %c0_i32 = arith.constant 0 : i32
    %c0_i32_0 = arith.constant 0 : i32
    %c0_i32_1 = arith.constant 0 : i32
    %c0_i32_2 = arith.constant 0 : i32
    return %c0_i32, %c0_i32_0, %c0_i32_1 : i32, i32, i32
  }
  func.func @transform_9(%arg0: i32) -> (i32, i32, i32) {
    %c0_i32 = arith.constant 0 : i32
    %c0_i32_0 = arith.constant 0 : i32
    %c0_i32_1 = arith.constant 0 : i32
    %c0_i32_2 = arith.constant 0 : i32
    return %c0_i32, %c0_i32_0, %c0_i32_1 : i32, i32, i32
  }
  func.func @transform_10(%arg0: i32) -> (i32, i32) {
    %c0_i32 = arith.constant 0 : i32
    %c0_i32_0 = arith.constant 0 : i32
    %c0_i32_1 = arith.constant 0 : i32
    return %c0_i32, %c0_i32_0 : i32, i32
  }
  func.func @transform_11(%arg0: i32) -> (i32, i32) {
    %c0_i32 = arith.constant 0 : i32
    %c0_i32_0 = arith.constant 0 : i32
    %c0_i32_1 = arith.constant 0 : i32
    return %c0_i32, %c0_i32_0 : i32, i32
  }
  func.func @transform_12(%arg0: i32) -> (i32, i32) {
    %c0_i32 = arith.constant 0 : i32
    %c0_i32_0 = arith.constant 0 : i32
    %c0_i32_1 = arith.constant 0 : i32
    return %c0_i32, %c0_i32_0 : i32, i32
  }
  func.func @transform_13(%arg0: i32) -> (i32, i32, i32) {
    %c0_i32 = arith.constant 0 : i32
    %c0_i32_0 = arith.constant 0 : i32
    %c0_i32_1 = arith.constant 0 : i32
    %c0_i32_2 = arith.constant 0 : i32
    return %c0_i32, %c0_i32_0, %c0_i32_1 : i32, i32, i32
  }
  func.func @transform_14(%arg0: i32) -> (i32, i32, i32) {
    %c0_i32 = arith.constant 0 : i32
    %c0_i32_0 = arith.constant 0 : i32
    %c0_i32_1 = arith.constant 0 : i32
    %c0_i32_2 = arith.constant 0 : i32
    return %c0_i32, %c0_i32_0, %c0_i32_1 : i32, i32, i32
  }
  func.func @transform_15(%arg0: i32) -> (i32, i32, i32) {
    %c0_i32 = arith.constant 0 : i32
    %c0_i32_0 = arith.constant 0 : i32
    %c0_i32_1 = arith.constant 0 : i32
    %c0_i32_2 = arith.constant 0 : i32
    return %c0_i32, %c0_i32_0, %c0_i32_1 : i32, i32, i32
  }
  func.func @transform_16(%arg0: i32) -> (i32, i32, i32) {
    %c0_i32 = arith.constant 0 : i32
    %c0_i32_0 = arith.constant 0 : i32
    %c0_i32_1 = arith.constant 0 : i32
    %c0_i32_2 = arith.constant 0 : i32
    return %c0_i32, %c0_i32_0, %c0_i32_1 : i32, i32, i32
  }
  func.func @transform_17(%arg0: i32) -> (i32, i32, i32) {
    %c0_i32 = arith.constant 0 : i32
    %c0_i32_0 = arith.constant 0 : i32
    %c0_i32_1 = arith.constant 0 : i32
    %c0_i32_2 = arith.constant 0 : i32
    return %c0_i32, %c0_i32_0, %c0_i32_1 : i32, i32, i32
  }
  func.func @transform_18(%arg0: i32) -> (i32, i32, i32) {
    %c0_i32 = arith.constant 0 : i32
    %c0_i32_0 = arith.constant 0 : i32
    %c0_i32_1 = arith.constant 0 : i32
    %c0_i32_2 = arith.constant 0 : i32
    return %c0_i32, %c0_i32_0, %c0_i32_1 : i32, i32, i32
  }
  func.func @transform_19(%arg0: i32) -> (i32, i32, i32) {
    %c0_i32 = arith.constant 0 : i32
    %c0_i32_0 = arith.constant 0 : i32
    %c0_i32_1 = arith.constant 0 : i32
    %c0_i32_2 = arith.constant 0 : i32
    return %c0_i32, %c0_i32_0, %c0_i32_1 : i32, i32, i32
  }
  func.func @transform_20(%arg0: i32) -> (i32, i32) {
    %c0_i32 = arith.constant 0 : i32
    %c0_i32_0 = arith.constant 0 : i32
    %c0_i32_1 = arith.constant 0 : i32
    return %c0_i32, %c0_i32_0 : i32, i32
  }
  func.func @transform_21(%arg0: i32) -> (i32, i32) {
    %c0_i32 = arith.constant 0 : i32
    %c0_i32_0 = arith.constant 0 : i32
    %c0_i32_1 = arith.constant 0 : i32
    return %c0_i32, %c0_i32_0 : i32, i32
  }
  func.func @transform_22(%arg0: i32) -> (i32, i32) {
    %c0_i32 = arith.constant 0 : i32
    %c0_i32_0 = arith.constant 0 : i32
    %c0_i32_1 = arith.constant 0 : i32
    return %c0_i32, %c0_i32_0 : i32, i32
  }
  func.func @transform_23(%arg0: i32) -> (i32, i32) {
    %c0_i32 = arith.constant 0 : i32
    %c0_i32_0 = arith.constant 0 : i32
    %c0_i32_1 = arith.constant 0 : i32
    return %c0_i32, %c0_i32_0 : i32, i32
  }
  func.func @transform_24(%arg0: i32) -> (i32, i32) {
    %c0_i32 = arith.constant 0 : i32
    %c0_i32_0 = arith.constant 0 : i32
    %c0_i32_1 = arith.constant 0 : i32
    return %c0_i32, %c0_i32_0 : i32, i32
  }
  func.func @transform_25(%arg0: i32) -> (i32, i32, i32) {
    %c0_i32 = arith.constant 0 : i32
    %c0_i32_0 = arith.constant 0 : i32
    %c0_i32_1 = arith.constant 0 : i32
    return %arg0, %c0_i32, %c0_i32_0 : i32, i32, i32
  }
}

</mosaic_0001>

<bundles_post_ra>
// kernel: tpu_custom_call.1
= control target key start
LH: loop header
LB: loop body
LE: loop exit
PB: predicated region body
PF: predicated region fallthrough
CT: control target
= control target key end

     0   :  { %s7788_s0 = inlined_call_operand.vmem [shape: f32[2,1,2], index: 0, kind: input, shape index: {}]   ;;  %s7789_s1 = inlined_call_operand.vmem [shape: f32[2,8,48], index: 1, kind: input, shape index: {}]   ;;  %s7790_s2 = inlined_call_operand.vmem [shape: f32[2,8,48], index: 2, kind: input, shape index: {}]   ;;  %s7791_s3 = inlined_call_operand.vmem [shape: f32[12,48,8], index: 3, kind: input, shape index: {}]   ;;  %s7792_s4 = inlined_call_operand.vmem [shape: f32[12,48,8], index: 4, kind: input, shape index: {}]   ;;  %s7793_s5 = inlined_call_operand.vmem [shape: f32[12,48,8], index: 5, kind: input, shape index: {}]   ;;  %s7794_s6 = inlined_call_operand.vmem [shape: f32[12,1,8], index: 6, kind: input, shape index: {}]   ;;  %s7795_s7 = inlined_call_operand.vmem [shape: f32[12,1,8], index: 7, kind: input, shape index: {}]   ;;  %s7796_s8 = inlined_call_operand.vmem [shape: f32[12,1,8], index: 8, kind: input, shape index: {}]   ;;  %s7797_s9 = inlined_call_operand.vmem [shape: f32[12,8,48], index: 9, kind: input, shape index: {}]   ;;  %s7798_s10 = inlined_call_operand.vmem [shape: f32[1,48], index: 10, kind: input, shape index: {}]   ;;  %s7799_s11 = inlined_call_operand.vmem [shape: f32[1,48], index: 11, kind: input, shape index: {}]   ;;  %s7800_s12 = inlined_call_operand.vmem [shape: f32[1,48], index: 12, kind: input, shape index: {}]   ;;  %s7801_s13 = inlined_call_operand.vmem [shape: f32[12,48,8], index: 13, kind: input, shape index: {}]   ;;  %s7802_s14 = inlined_call_operand.vmem [shape: f32[12,48,8], index: 14, kind: input, shape index: {}]   ;;  %s7803_s15 = inlined_call_operand.vmem [shape: f32[12,48,8], index: 15, kind: input, shape index: {}]   ;;  %s7804_s16 = inlined_call_operand.vmem [shape: f32[12,1,8], index: 16, kind: input, shape index: {}]   ;;  %s7805_s17 = inlined_call_operand.vmem [shape: f32[12,1,8], index: 17, kind: input, shape index: {}]   ;;  %s7806_s18 = inlined_call_operand.vmem [shape: f32[12,1,8], index: 18, kind: input, shape index: {}]   ;;  %s7807_s19 = inlined_call_operand.vmem [shape: f32[12,8,48], index: 19, kind: input, shape index: {}]   ;;  %s7808_s20 = inlined_call_operand.vmem [shape: f32[1,48], index: 20, kind: input, shape index: {}]   ;;  %s7809_s21 = inlined_call_operand.vmem [shape: f32[1,48], index: 21, kind: input, shape index: {}]   ;;  %s7810_s22 = inlined_call_operand.vmem [shape: f32[1,48], index: 22, kind: input, shape index: {}]   ;;  %s7811_s23 = inlined_call_operand.vmem [shape: f32[1,48], index: 23, kind: input, shape index: {}]   ;;  %s7812_s24 = inlined_call_operand.vmem [shape: f32[1,48], index: 24, kind: input, shape index: {}]   ;;  %s7813_s25 = inlined_call_operand.hbm [shape: f32[2,8,48], index: 25, kind: output, shape index: {}]  }
   0x1   :  { %7824 = sst [smem:[#allocation5_spill]] %s7788_s0 }
   0x2   :  { %7825 = sst [smem:[#allocation6_spill]] %s7789_s1 }
   0x3   :  { %7826 = sst [smem:[#allocation7_spill]] %s7790_s2 }
   0x4   :  { %7827 = sst [smem:[#allocation8_spill]] %s7791_s3 }
   0x5   :  { %7828 = sst [smem:[#allocation9_spill]] %s7792_s4 }
   0x6   :  { %7829 = sst [smem:[#allocation10_spill]] %s7793_s5 }
   0x7   :  { %7830 = sst [smem:[#allocation11_spill]] %s7794_s6 }
   0x8   :  { %7831 = sst [smem:[#allocation12_spill]] %s7795_s7 }
   0x9   :  { %7832 = sst [smem:[#allocation13_spill]] %s7796_s8 }
   0xa   :  { %7833 = sst [smem:[#allocation14_spill]] %s7797_s9 }
   0xb   :  { %s7834_s6 = sld [smem:[#allocation8_spill]]  ;;  %vm388_vm0 = vcmask 392192  }
   0xc   :  { %s7835_s1 = sld [smem:[#allocation6_spill]] }
   0xd   :  { %s7836_s4 = sld [smem:[#allocation9_spill]] }
   0xe   :  { %s7837_s7 = sld [smem:[#allocation10_spill]] }
  0x11   :  { %v102_v0 = vld [vmem:[%s7834_s6 + $0x88] sm:$0xff]  ;;  %v108_v1 = vld [vmem:[%s7834_s6 + $0xb8] sm:$0xff]  ;;  %v101_v2 = vld [vmem:[%s7834_s6 + $0x80] sm:$0xff] }
  0x12   :  { %445 = vmatpush.msra.mxu2 %v102_v0  ;;  %465 = vmatpush.msra.mxu3 %v108_v1  ;;  %v107_v3 = vld [vmem:[%s7834_s6 + $0xb0] sm:$0xff]  ;;  %v100_v4 = vld [vmem:[%s7834_s6 + $0x78] sm:$0xff]  ;;  %v106_v5 = vld [vmem:[%s7834_s6 + $0xa8] sm:$0xff] }
  0x13   :  { %v99_v6 = vld [vmem:[%s7834_s6 + $0x70] sm:$0xff]  ;;  %v105_v7 = vld [vmem:[%s7834_s6 + $0xa0] sm:$0xff]  ;;  %v98_v8 = vld [vmem:[%s7834_s6 + $0x68] sm:$0xff] }
  0x14   :  { %446 = vmatpush.msra.mxu2 %v101_v2  ;;  %466 = vmatpush.msra.mxu3 %v107_v3  ;;  %v104_v9 = vld [vmem:[%s7834_s6 + $0x98] sm:$0xff]  ;;  %v97_v10 = vld [vmem:[%s7834_s6 + $0x60] sm:$0xff]  ;;  %v103_v11 = vld [vmem:[%s7834_s6 + $0x90] sm:$0xff] }
  0x15   :  { %v90_v12 = vld [vmem:[%s7834_s6 + $0x28] sm:$0xff]  ;;  %v96_v13 = vld [vmem:[%s7834_s6 + $0x58] sm:$0xff]  ;;  %v5436_v16 = vld [vmem:[%s7835_s1] sm:$0xff] }
  0x16   :  { %447 = vmatpush.msra.mxu2 %v100_v4  ;;  %467 = vmatpush.msra.mxu3 %v106_v5  ;;  %v126_v14 = vld [vmem:[%s7834_s6 + $0x148] sm:$0xff]  ;;  %v132_v15 = vld [vmem:[%s7834_s6 + $0x178] sm:$0xff]  ;;  %v125_v18 = vld [vmem:[%s7834_s6 + $0x140] sm:$0xff] }
  0x17   :  { %v5441_v17 = vld [vmem:[%s7835_s1 + $0x8] sm:$0xff]  ;;  %402 = vmatpush.msra.mxu0 %v90_v12  ;;  %425 = vmatpush.msra.mxu1 %v96_v13  ;;  %v131_v19 = vld [vmem:[%s7834_s6 + $0x170] sm:$0xff]  ;;  %v89_v20 = vld [vmem:[%s7834_s6 + $0x20] sm:$0xff] }
  0x18   :  { %448 = vmatpush.msra.mxu2 %v99_v6  ;;  %468 = vmatpush.msra.mxu3 %v105_v7  ;;  %v95_v21 = vld [vmem:[%s7834_s6 + $0x50] sm:$0xff]  ;;  %v124_v22 = vld [vmem:[%s7834_s6 + $0x138] sm:$0xff]  ;;  %v130_v23 = vld [vmem:[%s7834_s6 + $0x168] sm:$0xff] }
  0x19   :  { %v88_v24 = vld [vmem:[%s7834_s6 + $0x18] sm:$0xff]  ;;  %v94_v25 = vld [vmem:[%s7834_s6 + $0x48] sm:$0xff]  ;;  %v123_v26 = vld [vmem:[%s7834_s6 + $0x130] sm:$0xff]  ;;  %403 = vmatpush.msra.mxu0 %v89_v20  ;;  %426 = vmatpush.msra.mxu1 %v95_v21 }
  0x1a   :  { %449 = vmatpush.msra.mxu2 %v98_v8  ;;  %469 = vmatpush.msra.mxu3 %v104_v9  ;;  %v129_v27 = vld [vmem:[%s7834_s6 + $0x160] sm:$0xff]  ;;  %v87_v28 = vld [vmem:[%s7834_s6 + $0x10] sm:$0xff]  ;;  %v122_v30 = vld [vmem:[%s7834_s6 + $0x128] sm:$0xff] }
  0x1b   :  { %v93_v29 = vld [vmem:[%s7834_s6 + $0x40] sm:$0xff]  ;;  %v128_v31 = vld [vmem:[%s7834_s6 + $0x158] sm:$0xff]  ;;  %404 = vmatpush.msra.mxu0 %v88_v24  ;;  %427 = vmatpush.msra.mxu1 %v94_v25  ;;  %v86_v32 = vld [vmem:[%s7834_s6 + $0x8] sm:$0xff] }
  0x1c   :  { %450 = vmatpush.msra.mxu2 %v97_v10  ;;  %470 = vmatpush.msra.mxu3 %v103_v11  ;;  %v92_v33 = vld [vmem:[%s7834_s6 + $0x38] sm:$0xff]  ;;  %v121_v34 = vld [vmem:[%s7834_s6 + $0x120] sm:$0xff]  ;;  %v127_v35 = vld [vmem:[%s7834_s6 + $0x150] sm:$0xff] }
  0x1d   :  { %4848 = vmatmul.msk.f32.vlgmr.msra.gmra.mxu2 %vm388_vm0, %v5436_v16  ;;  %4849 = vmatmul.msk.f32.vlgmr.msra.gmra.mxu3 %vm388_vm0, %v5441_v17  ;;  %v150_v36 = vld [vmem:[%s7834_s6 + $0x208] sm:$0xff]  ;;  %v156_v37 = vld [vmem:[%s7834_s6 + $0x238] sm:$0xff]  ;;  %v149_v38 = vld [vmem:[%s7834_s6 + $0x200] sm:$0xff] }
  0x1e   :  { %525 = vmatpush.msrb.mxu2 %v126_v14  ;;  %545 = vmatpush.msrb.mxu3 %v132_v15  ;;  %v155_v39 = vld [vmem:[%s7834_s6 + $0x230] sm:$0xff]  ;;  %v85_v40 = vld [vmem:[%s7834_s6] sm:$0xff]  ;;  %v148_v42 = vld [vmem:[%s7834_s6 + $0x1f8] sm:$0xff] }
  0x1f   :  { %405 = vmatpush.msra.mxu0 %v87_v28  ;;  %428 = vmatpush.msra.mxu1 %v93_v29  ;;  %v91_v41 = vld [vmem:[%s7834_s6 + $0x30] sm:$0xff]  ;;  %v154_v43 = vld [vmem:[%s7834_s6 + $0x228] sm:$0xff]  ;;  %v120_v45 = vld [vmem:[%s7834_s6 + $0x118] sm:$0xff] }
  0x20   :  { %526 = vmatpush.msrb.mxu2 %v125_v18  ;;  %546 = vmatpush.msrb.mxu3 %v131_v19  ;;  %v114_v44 = vld [vmem:[%s7834_s6 + $0xe8] sm:$0xff]  ;;  %v147_v46 = vld [vmem:[%s7834_s6 + $0x1f0] sm:$0xff]  ;;  %v153_v47 = vld [vmem:[%s7834_s6 + $0x220] sm:$0xff] }
  0x21   :  { %406 = vmatpush.msra.mxu0 %v86_v32  ;;  %429 = vmatpush.msra.mxu1 %v92_v33  ;;  %v113_v48 = vld [vmem:[%s7834_s6 + $0xe0] sm:$0xff]  ;;  %v119_v49 = vld [vmem:[%s7834_s6 + $0x110] sm:$0xff]  ;;  %v146_v50 = vld [vmem:[%s7834_s6 + $0x1e8] sm:$0xff] }
  0x22   :  { %527 = vmatpush.msrb.mxu2 %v124_v22  ;;  %547 = vmatpush.msrb.mxu3 %v130_v23  ;;  %v152_v51 = vld [vmem:[%s7834_s6 + $0x218] sm:$0xff]  ;;  %v118_v53 = vld [vmem:[%s7834_s6 + $0x108] sm:$0xff]  ;;  %v145_v54 = vld [vmem:[%s7834_s6 + $0x1e0] sm:$0xff] }
  0x23   :  { %407 = vmatpush.msra.mxu0 %v85_v40  ;;  %430 = vmatpush.msra.mxu1 %v91_v41  ;;  %v112_v52 = vld [vmem:[%s7834_s6 + $0xd8] sm:$0xff]  ;;  %v151_v55 = vld [vmem:[%s7834_s6 + $0x210] sm:$0xff]  ;;  %v174_v56 = vld [vmem:[%s7836_s4 + $0x88] sm:$0xff] }
  0x24   :  { %528 = vmatpush.msrb.mxu2 %v123_v26  ;;  %548 = vmatpush.msrb.mxu3 %v129_v27  ;;  %v180_v57 = vld [vmem:[%s7836_s4 + $0xb8] sm:$0xff]  ;;  %v173_v58 = vld [vmem:[%s7836_s4 + $0x80] sm:$0xff]  ;;  %v179_v59 = vld [vmem:[%s7836_s4 + $0xb0] sm:$0xff] }
  0x25   :  { %485 = vmatpush.msrb.mxu0 %v114_v44  ;;  %505 = vmatpush.msrb.mxu1 %v120_v45  ;;  %v111_v60 = vld [vmem:[%s7834_s6 + $0xd0] sm:$0xff]  ;;  %v117_v61 = vld [vmem:[%s7834_s6 + $0x100] sm:$0xff]  ;;  %v172_v62 = vld [vmem:[%s7836_s4 + $0x78] sm:$0xff] }
  0x26   :  { %529 = vmatpush.msrb.mxu2 %v122_v30  ;;  %549 = vmatpush.msrb.mxu3 %v128_v31  ;;  %v178_v63 = vld [vmem:[%s7836_s4 + $0xa8] sm:$0xff]  ;;  %v116_v1 = vld [vmem:[%s7834_s6 + $0xf8] sm:$0xff]  ;;  %v171_v2 = vld [vmem:[%s7836_s4 + $0x70] sm:$0xff] }
  0x27   :  { %486 = vmatpush.msrb.mxu0 %v113_v48  ;;  %506 = vmatpush.msrb.mxu1 %v119_v49  ;;  %v110_v0 = vld [vmem:[%s7834_s6 + $0xc8] sm:$0xff]  ;;  %v177_v3 = vld [vmem:[%s7836_s4 + $0xa0] sm:$0xff]  ;;  %v115_v5 = vld [vmem:[%s7834_s6 + $0xf0] sm:$0xff] }
  0x28   :  { %530 = vmatpush.msrb.mxu2 %v121_v34  ;;  %550 = vmatpush.msrb.mxu3 %v127_v35  ;;  %v109_v4 = vld [vmem:[%s7834_s6 + $0xc0] sm:$0xff]  ;;  %v170_v6 = vld [vmem:[%s7836_s4 + $0x68] sm:$0xff]  ;;  %v176_v7 = vld [vmem:[%s7836_s4 + $0x98] sm:$0xff] }
  0x29   :  { %4852 = vmatmul.msk.f32.vlgmr.msrb.gmra.mxu2 %vm388_vm0, %v5436_v16  ;;  %4853 = vmatmul.msk.f32.vlgmr.msrb.gmra.mxu3 %vm388_vm0, %v5441_v17  ;;  %v138_v8 = vld [vmem:[%s7834_s6 + $0x1a8] sm:$0xff]  ;;  %v144_v9 = vld [vmem:[%s7834_s6 + $0x1d8] sm:$0xff]  ;;  %v169_v10 = vld [vmem:[%s7836_s4 + $0x60] sm:$0xff] }
  0x2a   :  { %605 = vmatpush.msra.mxu2 %v150_v36  ;;  %625 = vmatpush.msra.mxu3 %v156_v37  ;;  %v175_v11 = vld [vmem:[%s7836_s4 + $0x90] sm:$0xff]  ;;  %v198_v12 = vld [vmem:[%s7836_s4 + $0x148] sm:$0xff]  ;;  %v204_v13 = vld [vmem:[%s7836_s4 + $0x178] sm:$0xff] }
  0x2b   :  { %487 = vmatpush.msrb.mxu0 %v112_v52  ;;  %507 = vmatpush.msrb.mxu1 %v118_v53  ;;  %v137_v14 = vld [vmem:[%s7834_s6 + $0x1a0] sm:$0xff]  ;;  %v143_v15 = vld [vmem:[%s7834_s6 + $0x1d0] sm:$0xff]  ;;  %v136_v20 = vld [vmem:[%s7834_s6 + $0x198] sm:$0xff] }
  0x2c   :  { %606 = vmatpush.msra.mxu2 %v149_v38  ;;  %626 = vmatpush.msra.mxu3 %v155_v39  ;;  %v197_v18 = vld [vmem:[%s7836_s4 + $0x140] sm:$0xff]  ;;  %v203_v19 = vld [vmem:[%s7836_s4 + $0x170] sm:$0xff]  ;;  %v142_v21 = vld [vmem:[%s7834_s6 + $0x1c8] sm:$0xff] }
  0x2d   :  { %488 = vmatpush.msrb.mxu0 %v111_v60  ;;  %508 = vmatpush.msrb.mxu1 %v117_v61  ;;  %v196_v22 = vld [vmem:[%s7836_s4 + $0x138] sm:$0xff]  ;;  %v202_v23 = vld [vmem:[%s7836_s4 + $0x168] sm:$0xff]  ;;  %v135_v24 = vld [vmem:[%s7834_s6 + $0x190] sm:$0xff] }
  0x2e   :  { %607 = vmatpush.msra.mxu2 %v148_v42  ;;  %627 = vmatpush.msra.mxu3 %v154_v43  ;;  %v141_v25 = vld [vmem:[%s7834_s6 + $0x1c0] sm:$0xff]  ;;  %v195_v26 = vld [vmem:[%s7836_s4 + $0x130] sm:$0xff]  ;;  %v134_v28 = vld [vmem:[%s7834_s6 + $0x188] sm:$0xff] }
  0x2f   :  { %489 = vmatpush.msrb.mxu0 %v110_v0  ;;  %509 = vmatpush.msrb.mxu1 %v116_v1  ;;  %v201_v27 = vld [vmem:[%s7836_s4 + $0x160] sm:$0xff]  ;;  %v140_v29 = vld [vmem:[%s7834_s6 + $0x1b8] sm:$0xff]  ;;  %v194_v30 = vld [vmem:[%s7836_s4 + $0x128] sm:$0xff] }
  0x30   :  { %608 = vmatpush.msra.mxu2 %v147_v46  ;;  %628 = vmatpush.msra.mxu3 %v153_v47  ;;  %v200_v31 = vld [vmem:[%s7836_s4 + $0x158] sm:$0xff]  ;;  %v133_v32 = vld [vmem:[%s7834_s6 + $0x180] sm:$0xff]  ;;  %v139_v33 = vld [vmem:[%s7834_s6 + $0x1b0] sm:$0xff] }
  0x31   :  { %490 = vmatpush.msrb.mxu0 %v109_v4  ;;  %510 = vmatpush.msrb.mxu1 %v115_v5  ;;  %v162_v34 = vld [vmem:[%s7836_s4 + $0x28] sm:$0xff]  ;;  %v168_v35 = vld [vmem:[%s7836_s4 + $0x58] sm:$0xff]  ;;  %v193_v36 = vld [vmem:[%s7836_s4 + $0x120] sm:$0xff] }
  0x32   :  { %609 = vmatpush.msra.mxu2 %v146_v50  ;;  %629 = vmatpush.msra.mxu3 %v152_v51  ;;  %v199_v37 = vld [vmem:[%s7836_s4 + $0x150] sm:$0xff]  ;;  %v222_v38 = vld [vmem:[%s7836_s4 + $0x208] sm:$0xff]  ;;  %v228_v39 = vld [vmem:[%s7836_s4 + $0x238] sm:$0xff] }
  0x33   :  { %4846 = vmatmul.msk.f32.vlgmr.msra.gmra.mxu0 %vm388_vm0, %v5436_v16  ;;  %4847 = vmatmul.msk.f32.vlgmr.msra.gmra.mxu1 %vm388_vm0, %v5441_v17  ;;  %v161_v40 = vld [vmem:[%s7836_s4 + $0x20] sm:$0xff]  ;;  %v167_v41 = vld [vmem:[%s7836_s4 + $0x50] sm:$0xff]  ;;  %v160_v44 = vld [vmem:[%s7836_s4 + $0x18] sm:$0xff] }
  0x34   :  { %610 = vmatpush.msra.mxu2 %v145_v54  ;;  %630 = vmatpush.msra.mxu3 %v151_v55  ;;  %v221_v42 = vld [vmem:[%s7836_s4 + $0x200] sm:$0xff]  ;;  %v227_v43 = vld [vmem:[%s7836_s4 + $0x230] sm:$0xff]  ;;  %v166_v45 = vld [vmem:[%s7836_s4 + $0x48] sm:$0xff] }
  0x35   :  { %4856 = vmatmul.msk.f32.vlgmr.msra.gmra.mxu2 %vm388_vm0, %v5436_v16  ;;  %4857 = vmatmul.msk.f32.vlgmr.msra.gmra.mxu3 %vm388_vm0, %v5441_v17  ;;  %v220_v46 = vld [vmem:[%s7836_s4 + $0x1f8] sm:$0xff]  ;;  %v226_v47 = vld [vmem:[%s7836_s4 + $0x228] sm:$0xff]  ;;  %v159_v48 = vld [vmem:[%s7836_s4 + $0x10] sm:$0xff] }
  0x36   :  { %721 = vmatpush.msrb.mxu2 %v174_v56  ;;  %741 = vmatpush.msrb.mxu3 %v180_v57  ;;  %v165_v49 = vld [vmem:[%s7836_s4 + $0x40] sm:$0xff]  ;;  %v219_v50 = vld [vmem:[%s7836_s4 + $0x1f0] sm:$0xff]  ;;  %v158_v52 = vld [vmem:[%s7836_s4 + $0x8] sm:$0xff] }
  0x37   :  { %565 = vmatpush.msra.mxu0 %v138_v8  ;;  %585 = vmatpush.msra.mxu1 %v144_v9  ;;  %v225_v51 = vld [vmem:[%s7836_s4 + $0x220] sm:$0xff]  ;;  %v164_v53 = vld [vmem:[%s7836_s4 + $0x38] sm:$0xff]  ;;  %v218_v54 = vld [vmem:[%s7836_s4 + $0x1e8] sm:$0xff] }
  0x38   :  { %722 = vmatpush.msrb.mxu2 %v173_v58  ;;  %742 = vmatpush.msrb.mxu3 %v179_v59  ;;  %v224_v55 = vld [vmem:[%s7836_s4 + $0x218] sm:$0xff]  ;;  %v157_v56 = vld [vmem:[%s7836_s4] sm:$0xff]  ;;  %v163_v57 = vld [vmem:[%s7836_s4 + $0x30] sm:$0xff] }
  0x39   :  { %566 = vmatpush.msra.mxu0 %v137_v14  ;;  %586 = vmatpush.msra.mxu1 %v143_v15  ;;  %v186_v58 = vld [vmem:[%s7836_s4 + $0xe8] sm:$0xff]  ;;  %v192_v59 = vld [vmem:[%s7836_s4 + $0x118] sm:$0xff]  ;;  %v217_v60 = vld [vmem:[%s7836_s4 + $0x1e0] sm:$0xff] }
  0x3a   :  { %723 = vmatpush.msrb.mxu2 %v172_v62  ;;  %743 = vmatpush.msrb.mxu3 %v178_v63  ;;  %v223_v61 = vld [vmem:[%s7836_s4 + $0x210] sm:$0xff]  ;;  %v185_v62 = vld [vmem:[%s7836_s4 + $0xe0] sm:$0xff]  ;;  %v184_v0 = vld [vmem:[%s7836_s4 + $0xd8] sm:$0xff] }
  0x3b   :  { %567 = vmatpush.msra.mxu0 %v136_v20  ;;  %587 = vmatpush.msra.mxu1 %v142_v21  ;;  %v191_v63 = vld [vmem:[%s7836_s4 + $0x110] sm:$0xff]  ;;  %v190_v1 = vld [vmem:[%s7836_s4 + $0x108] sm:$0xff]  ;;  %v189_v5 = vld [vmem:[%s7836_s4 + $0x100] sm:$0xff] }
  0x3c   :  { %724 = vmatpush.msrb.mxu2 %v171_v2  ;;  %744 = vmatpush.msrb.mxu3 %v177_v3  ;;  %v246_v2 = vld [vmem:[%s7837_s7 + $0x88] sm:$0xff]  ;;  %v252_v3 = vld [vmem:[%s7837_s7 + $0xb8] sm:$0xff]  ;;  %v183_v4 = vld [vmem:[%s7836_s4 + $0xd0] sm:$0xff] }
  0x3d   :  { %568 = vmatpush.msra.mxu0 %v135_v24  ;;  %588 = vmatpush.msra.mxu1 %v141_v25  ;;  %v182_v8 = vld [vmem:[%s7836_s4 + $0xc8] sm:$0xff]  ;;  %v188_v9 = vld [vmem:[%s7836_s4 + $0xf8] sm:$0xff] }
  0x3e   :  { %725 = vmatpush.msrb.mxu2 %v170_v6  ;;  %745 = vmatpush.msrb.mxu3 %v176_v7  ;;  %v245_v6 = vld [vmem:[%s7837_s7 + $0x80] sm:$0xff]  ;;  %v251_v7 = vld [vmem:[%s7837_s7 + $0xb0] sm:$0xff] }
  0x3f   :  { %569 = vmatpush.msra.mxu0 %v134_v28  ;;  %589 = vmatpush.msra.mxu1 %v140_v29 }
  0x40   :  { %726 = vmatpush.msrb.mxu2 %v169_v10  ;;  %746 = vmatpush.msrb.mxu3 %v175_v11  ;;  %v244_v10 = vld [vmem:[%s7837_s7 + $0x78] sm:$0xff]  ;;  %v250_v11 = vld [vmem:[%s7837_s7 + $0xa8] sm:$0xff] }
  0x41   :  { %4860 = vmatmul.msk.f32.vlgmr.msrb.gmra.mxu2 %vm388_vm0, %v5436_v16  ;;  %4861 = vmatmul.msk.f32.vlgmr.msrb.gmra.mxu3 %vm388_vm0, %v5441_v17 }
  0x42   :  { %801 = vmatpush.msra.mxu2 %v198_v12  ;;  %821 = vmatpush.msra.mxu3 %v204_v13  ;;  %v181_v12 = vld [vmem:[%s7836_s4 + $0xc0] sm:$0xff]  ;;  %v187_v13 = vld [vmem:[%s7836_s4 + $0xf0] sm:$0xff] }
  0x43   :  { %570 = vmatpush.msra.mxu0 %v133_v32  ;;  %590 = vmatpush.msra.mxu1 %v139_v33 }
  0x44   :  { %802 = vmatpush.msra.mxu2 %v197_v18  ;;  %822 = vmatpush.msra.mxu3 %v203_v19 }
  0x45   :  { %4850 = vmatmul.msk.f32.vlgmr.msrb.gmra.mxu0 %vm388_vm0, %v5436_v16  ;;  %4851 = vmatmul.msk.f32.vlgmr.msrb.gmra.mxu1 %vm388_vm0, %v5441_v17 }
  0x46   :  { %803 = vmatpush.msra.mxu2 %v196_v22  ;;  %823 = vmatpush.msra.mxu3 %v202_v23 }
  0x47   :  { %681 = vmatpush.msrb.mxu0 %v162_v34  ;;  %701 = vmatpush.msrb.mxu1 %v168_v35 }
  0x48   :  { %804 = vmatpush.msra.mxu2 %v195_v26  ;;  %824 = vmatpush.msra.mxu3 %v201_v27 }
  0x49   :  { %682 = vmatpush.msrb.mxu0 %v161_v40  ;;  %702 = vmatpush.msrb.mxu1 %v167_v41 }
  0x4a   :  { %805 = vmatpush.msra.mxu2 %v194_v30  ;;  %825 = vmatpush.msra.mxu3 %v200_v31 }
  0x4b   :  { %683 = vmatpush.msrb.mxu0 %v160_v44  ;;  %703 = vmatpush.msrb.mxu1 %v166_v45 }
  0x4c   :  { %806 = vmatpush.msra.mxu2 %v193_v36  ;;  %826 = vmatpush.msra.mxu3 %v199_v37 }
  0x4d   :  { %4864 = vmatmul.msk.f32.vlgmr.msra.gmra.mxu2 %vm388_vm0, %v5436_v16  ;;  %4865 = vmatmul.msk.f32.vlgmr.msra.gmra.mxu3 %vm388_vm0, %v5441_v17 }
  0x4e   :  { %881 = vmatpush.msrb.mxu2 %v222_v38  ;;  %901 = vmatpush.msrb.mxu3 %v228_v39 }
  0x4f   :  { %684 = vmatpush.msrb.mxu0 %v159_v48  ;;  %704 = vmatpush.msrb.mxu1 %v165_v49 }
  0x50   :  { %882 = vmatpush.msrb.mxu2 %v221_v42  ;;  %902 = vmatpush.msrb.mxu3 %v227_v43 }
  0x51   :  { %4854 = vmatmul.msk.f32.vlgmr.msra.gmra.mxu0 %vm388_vm0, %v5436_v16  ;;  %4855 = vmatmul.msk.f32.vlgmr.msra.gmra.mxu1 %vm388_vm0, %v5441_v17 }
  0x52   :  { %883 = vmatpush.msrb.mxu2 %v220_v46  ;;  %903 = vmatpush.msrb.mxu3 %v226_v47 }
  0x53   :  { %685 = vmatpush.msrb.mxu0 %v158_v52  ;;  %705 = vmatpush.msrb.mxu1 %v164_v53 }
  0x54   :  { %884 = vmatpush.msrb.mxu2 %v219_v50  ;;  %904 = vmatpush.msrb.mxu3 %v225_v51 }
  0x55   :  { %686 = vmatpush.msrb.mxu0 %v157_v56  ;;  %706 = vmatpush.msrb.mxu1 %v163_v57 }
  0x56   :  { %885 = vmatpush.msrb.mxu2 %v218_v54  ;;  %905 = vmatpush.msrb.mxu3 %v224_v55 }
  0x57   :  { %761 = vmatpush.msra.mxu0 %v186_v58  ;;  %781 = vmatpush.msra.mxu1 %v192_v59 }
  0x58   :  { %886 = vmatpush.msrb.mxu2 %v217_v60  ;;  %906 = vmatpush.msrb.mxu3 %v223_v61 }
  0x59   :  { %4868 = vmatmul.msk.f32.vlgmr.msrb.gmra.mxu2 %vm388_vm0, %v5436_v16  ;;  %4869 = vmatmul.msk.f32.vlgmr.msrb.gmra.mxu3 %vm388_vm0, %v5441_v17 }
  0x5a   :  { %762 = vmatpush.msra.mxu0 %v185_v62  ;;  %782 = vmatpush.msra.mxu1 %v191_v63 }
  0x5b   :  { %4858 = vmatmul.msk.f32.vlgmr.msrb.gmra.mxu0 %vm388_vm0, %v5436_v16  ;;  %4859 = vmatmul.msk.f32.vlgmr.msrb.gmra.mxu1 %vm388_vm0, %v5441_v17 }
  0x5c   :  { %763 = vmatpush.msra.mxu0 %v184_v0  ;;  %783 = vmatpush.msra.mxu1 %v190_v1 }
  0x5d   :  { %997 = vmatpush.msra.mxu2 %v246_v2  ;;  %1017 = vmatpush.msra.mxu3 %v252_v3 }
  0x5e   :  { %764 = vmatpush.msra.mxu0 %v183_v4  ;;  %784 = vmatpush.msra.mxu1 %v189_v5 }
  0x5f   :  { %998 = vmatpush.msra.mxu2 %v245_v6  ;;  %1018 = vmatpush.msra.mxu3 %v251_v7 }
  0x60   :  { %30 = vsyncpa [#allocation3], 0  ;;  %765 = vmatpush.msra.mxu0 %v182_v8  ;;  %785 = vmatpush.msra.mxu1 %v188_v9  ;;  %v210_v14 = vld [vmem:[%s7836_s4 + $0x1a8] sm:$0xff]  ;;  %v216_v15 = vld [vmem:[%s7836_s4 + $0x1d8] sm:$0xff]  ;;  %s7838_s6 = sld [smem:[#allocation12_spill]]  ;;  %vm1187_vm1 = vcmask 64512  }
  0x61   :  { %999 = vmatpush.msra.mxu2 %v244_v10  ;;  %1019 = vmatpush.msra.mxu3 %v250_v11  ;;  %v209_v18 = vld [vmem:[%s7836_s4 + $0x1a0] sm:$0xff]  ;;  %v215_v19 = vld [vmem:[%s7836_s4 + $0x1d0] sm:$0xff]  ;;  %v208_v22 = vld [vmem:[%s7836_s4 + $0x198] sm:$0xff]  ;;  %s7839_s2 = sld [smem:[#allocation11_spill]]  ;;  %s5254_s3 = smov 8  }
  0x62   :  { %766 = vmatpush.msra.mxu0 %v181_v12  ;;  %786 = vmatpush.msra.mxu1 %v187_v13  ;;  %v243_v20 = vld [vmem:[%s7837_s7 + $0x70] sm:$0xff]  ;;  %v249_v21 = vld [vmem:[%s7837_s7 + $0xa0] sm:$0xff]  ;;  %v214_v23 = vld [vmem:[%s7836_s4 + $0x1c8] sm:$0xff]  ;;  %s7840_s9 = sld [smem:[#allocation13_spill]] }
  0x63   :  { %4862 = vmatmul.msk.f32.vlgmr.msra.gmra.mxu0 %vm388_vm0, %v5436_v16  ;;  %4863 = vmatmul.msk.f32.vlgmr.msra.gmra.mxu1 %vm388_vm0, %v5441_v17  ;;  %v242_v24 = vld [vmem:[%s7837_s7 + $0x68] sm:$0xff]  ;;  %v248_v25 = vld [vmem:[%s7837_s7 + $0x98] sm:$0xff]  ;;  %v207_v26 = vld [vmem:[%s7836_s4 + $0x190] sm:$0xff]  ;;  %s7855_s27 = sld [smem:[#allocation14_spill]] }
  0x64   :  { %841 = vmatpush.msrb.mxu0 %v210_v14  ;;  %861 = vmatpush.msrb.mxu1 %v216_v15  ;;  %v213_v27 = vld [vmem:[%s7836_s4 + $0x1c0] sm:$0xff]  ;;  %v247_v29 = vld [vmem:[%s7837_s7 + $0x90] sm:$0xff]  ;;  %v206_v30 = vld [vmem:[%s7836_s4 + $0x188] sm:$0xff] }
  0x65   :  { %1000 = vmatpush.msra.mxu2 %v243_v20  ;;  %1020 = vmatpush.msra.mxu3 %v249_v21  ;;  %v241_v28 = vld [vmem:[%s7837_s7 + $0x60] sm:$0xff]  ;;  %v212_v31 = vld [vmem:[%s7836_s4 + $0x1b8] sm:$0xff]  ;;  %v211_v33 = vld [vmem:[%s7836_s4 + $0x1b0] sm:$0xff] }
  0x66   :  { %842 = vmatpush.msrb.mxu0 %v209_v18  ;;  %862 = vmatpush.msrb.mxu1 %v215_v19  ;;  %v205_v32 = vld [vmem:[%s7836_s4 + $0x180] sm:$0xff]  ;;  %v270_v34 = vld [vmem:[%s7837_s7 + $0x148] sm:$0xff]  ;;  %v276_v35 = vld [vmem:[%s7837_s7 + $0x178] sm:$0xff]  ;;  %s7856_s4 = sld [smem:[#allocation7_spill]] }
  0x67   :  { %1001 = vmatpush.msra.mxu2 %v242_v24  ;;  %1021 = vmatpush.msra.mxu3 %v248_v25  ;;  %v269_v36 = vld [vmem:[%s7837_s7 + $0x140] sm:$0xff]  ;;  %v275_v37 = vld [vmem:[%s7837_s7 + $0x170] sm:$0xff]  ;;  %v268_v38 = vld [vmem:[%s7837_s7 + $0x138] sm:$0xff] }
  0x68   :  { %843 = vmatpush.msrb.mxu0 %v208_v22  ;;  %863 = vmatpush.msrb.mxu1 %v214_v23  ;;  %v274_v39 = vld [vmem:[%s7837_s7 + $0x168] sm:$0xff]  ;;  %v267_v40 = vld [vmem:[%s7837_s7 + $0x130] sm:$0xff]  ;;  %v273_v41 = vld [vmem:[%s7837_s7 + $0x160] sm:$0xff] }
  0x69   :  { %1002 = vmatpush.msra.mxu2 %v241_v28  ;;  %1022 = vmatpush.msra.mxu3 %v247_v29  ;;  %v266_v42 = vld [vmem:[%s7837_s7 + $0x128] sm:$0xff]  ;;  %v272_v43 = vld [vmem:[%s7837_s7 + $0x158] sm:$0xff]  ;;  %v265_v46 = vld [vmem:[%s7837_s7 + $0x120] sm:$0xff] }
  0x6a   :  { %844 = vmatpush.msrb.mxu0 %v207_v26  ;;  %864 = vmatpush.msrb.mxu1 %v213_v27  ;;  %v234_v44 = vld [vmem:[%s7837_s7 + $0x28] sm:$0xff]  ;;  %v240_v45 = vld [vmem:[%s7837_s7 + $0x58] sm:$0xff]  ;;  %v271_v47 = vld [vmem:[%s7837_s7 + $0x150] sm:$0xff] }
  0x6b   :  { %4872 = vmatmul.msk.f32.vlgmr.msra.gmra.mxu2 %vm388_vm0, %v5436_v16  ;;  %4873 = vmatmul.msk.f32.vlgmr.msra.gmra.mxu3 %vm388_vm0, %v5441_v17  ;;  %v233_v48 = vld [vmem:[%s7837_s7 + $0x20] sm:$0xff]  ;;  %v239_v49 = vld [vmem:[%s7837_s7 + $0x50] sm:$0xff]  ;;  %v294_v50 = vld [vmem:[%s7837_s7 + $0x208] sm:$0xff] }
  0x6c   :  { %845 = vmatpush.msrb.mxu0 %v206_v30  ;;  %865 = vmatpush.msrb.mxu1 %v212_v31  ;;  %v300_v51 = vld [vmem:[%s7837_s7 + $0x238] sm:$0xff]  ;;  %v238_v53 = vld [vmem:[%s7837_s7 + $0x48] sm:$0xff]  ;;  %v293_v54 = vld [vmem:[%s7837_s7 + $0x200] sm:$0xff] }
  0x6d   :  { %1077 = vmatpush.msrb.mxu2 %v270_v34  ;;  %1097 = vmatpush.msrb.mxu3 %v276_v35  ;;  %v232_v52 = vld [vmem:[%s7837_s7 + $0x18] sm:$0xff]  ;;  %v299_v55 = vld [vmem:[%s7837_s7 + $0x230] sm:$0xff]  ;;  %v237_v57 = vld [vmem:[%s7837_s7 + $0x40] sm:$0xff] }
  0x6e   :  { %846 = vmatpush.msrb.mxu0 %v205_v32  ;;  %866 = vmatpush.msrb.mxu1 %v211_v33  ;;  %v231_v56 = vld [vmem:[%s7837_s7 + $0x10] sm:$0xff]  ;;  %v292_v58 = vld [vmem:[%s7837_s7 + $0x1f8] sm:$0xff]  ;;  %v298_v59 = vld [vmem:[%s7837_s7 + $0x228] sm:$0xff] }
  0x6f   :  { %4866 = vmatmul.msk.f32.vlgmr.msrb.gmra.mxu0 %vm388_vm0, %v5436_v16  ;;  %4867 = vmatmul.msk.f32.vlgmr.msrb.gmra.mxu1 %vm388_vm0, %v5441_v17  ;;  %v230_v60 = vld [vmem:[%s7837_s7 + $0x8] sm:$0xff]  ;;  %v236_v61 = vld [vmem:[%s7837_s7 + $0x38] sm:$0xff]  ;;  %v291_v62 = vld [vmem:[%s7837_s7 + $0x1f0] sm:$0xff] }
  0x70   :  { %1078 = vmatpush.msrb.mxu2 %v269_v36  ;;  %1098 = vmatpush.msrb.mxu3 %v275_v37  ;;  %v297_v63 = vld [vmem:[%s7837_s7 + $0x220] sm:$0xff]  ;;  %v235_v1 = vld [vmem:[%s7837_s7 + $0x30] sm:$0xff]  ;;  %v290_v2 = vld [vmem:[%s7837_s7 + $0x1e8] sm:$0xff] }
  0x71   :  { %957 = vmatpush.msra.mxu0 %v234_v44  ;;  %977 = vmatpush.msra.mxu1 %v240_v45  ;;  %v229_v0 = vld [vmem:[%s7837_s7] sm:$0xff]  ;;  %v296_v3 = vld [vmem:[%s7837_s7 + $0x218] sm:$0xff]  ;;  %v258_v4 = vld [vmem:[%s7837_s7 + $0xe8] sm:$0xff] }
  0x72   :  { %1079 = vmatpush.msrb.mxu2 %v268_v38  ;;  %1099 = vmatpush.msrb.mxu3 %v274_v39  ;;  %v264_v5 = vld [vmem:[%s7837_s7 + $0x118] sm:$0xff]  ;;  %v289_v6 = vld [vmem:[%s7837_s7 + $0x1e0] sm:$0xff]  ;;  %v295_v7 = vld [vmem:[%s7837_s7 + $0x210] sm:$0xff] }
  0x73   :  { %958 = vmatpush.msra.mxu0 %v233_v48  ;;  %978 = vmatpush.msra.mxu1 %v239_v49  ;;  %v257_v8 = vld [vmem:[%s7837_s7 + $0xe0] sm:$0xff]  ;;  %v263_v9 = vld [vmem:[%s7837_s7 + $0x110] sm:$0xff]  ;;  %v256_v10 = vld [vmem:[%s7837_s7 + $0xd8] sm:$0xff] }
  0x74   :  { %1080 = vmatpush.msrb.mxu2 %v267_v40  ;;  %1100 = vmatpush.msrb.mxu3 %v273_v41  ;;  %v262_v11 = vld [vmem:[%s7837_s7 + $0x108] sm:$0xff]  ;;  %v255_v14 = vld [vmem:[%s7837_s7 + $0xd0] sm:$0xff]  ;;  %v261_v15 = vld [vmem:[%s7837_s7 + $0x100] sm:$0xff] }
  0x75   :  { %959 = vmatpush.msra.mxu0 %v232_v52  ;;  %979 = vmatpush.msra.mxu1 %v238_v53  ;;  %v254_v18 = vld [vmem:[%s7837_s7 + $0xc8] sm:$0xff]  ;;  %v260_v19 = vld [vmem:[%s7837_s7 + $0xf8] sm:$0xff]  ;;  %v253_v20 = vld [vmem:[%s7837_s7 + $0xc0] sm:$0xff] }
  0x76   :  { %1081 = vmatpush.msrb.mxu2 %v266_v42  ;;  %1101 = vmatpush.msrb.mxu3 %v272_v43  ;;  %v259_v21 = vld [vmem:[%s7837_s7 + $0xf0] sm:$0xff]  ;;  %v282_v22 = vld [vmem:[%s7837_s7 + $0x1a8] sm:$0xff]  ;;  %v288_v23 = vld [vmem:[%s7837_s7 + $0x1d8] sm:$0xff] }
  0x77   :  { %960 = vmatpush.msra.mxu0 %v231_v56  ;;  %980 = vmatpush.msra.mxu1 %v237_v57  ;;  %v281_v24 = vld [vmem:[%s7837_s7 + $0x1a0] sm:$0xff]  ;;  %v287_v25 = vld [vmem:[%s7837_s7 + $0x1d0] sm:$0xff]  ;;  %v280_v28 = vld [vmem:[%s7837_s7 + $0x198] sm:$0xff] }
  0x78   :  { %1082 = vmatpush.msrb.mxu2 %v265_v46  ;;  %1102 = vmatpush.msrb.mxu3 %v271_v47  ;;  %v286_v29 = vld [vmem:[%s7837_s7 + $0x1c8] sm:$0xff]  ;;  %v284_v31 = vld [vmem:[%s7837_s7 + $0x1b8] sm:$0xff]  ;;  %v277_v32 = vld [vmem:[%s7837_s7 + $0x180] sm:$0xff] }
  0x79   :  { %4876 = vmatmul.msk.f32.vlgmr.msrb.gmra.mxu2 %vm388_vm0, %v5436_v16  ;;  %4877 = vmatmul.msk.f32.vlgmr.msrb.gmra.mxu3 %vm388_vm0, %v5441_v17  ;;  %v278_v30 = vld [vmem:[%s7837_s7 + $0x188] sm:$0xff]  ;;  %v283_v33 = vld [vmem:[%s7837_s7 + $0x1b0] sm:$0xff]  ;;  %v5217_v36 = vld [vmem:[%s7835_s1] sm:$0xff] }
  0x7a   :  { %1157 = vmatpush.msra.mxu2 %v294_v50  ;;  %1177 = vmatpush.msra.mxu3 %v300_v51  ;;  %v5218_v37 = vld [vmem:[%s7835_s1 + $0x8] sm:$0xff]  ;;  %v5033_v40 = vld [vmem:[%s7838_s6 + $0x2] ss:$0 sm:$0xff]  ;;  %v5034_v41 = vld [vmem:[%s7838_s6 + $0x3] ss:$0 sm:$0xff] }
  0x7b   :  { %961 = vmatpush.msra.mxu0 %v230_v60  ;;  %981 = vmatpush.msra.mxu1 %v236_v61  ;;  %v5025_v42 = vld [vmem:[%s7839_s2 + $0x2] ss:$0 sm:$0xff]  ;;  %v5026_v43 = vld [vmem:[%s7839_s2 + $0x3] ss:$0 sm:$0xff]  ;;  %v5037_v52 = vld [vmem:[%s7838_s6 + $0x6] ss:$0 sm:$0xff] }
  0x7c   :  { %1158 = vmatpush.msra.mxu2 %v293_v54  ;;  %1178 = vmatpush.msra.mxu3 %v299_v55  ;;  %v5038_v53 = vld [vmem:[%s7838_s6 + $0x7] ss:$0 sm:$0xff]  ;;  %v5027_v54 = vld [vmem:[%s7839_s2 + $0x6] ss:$0 sm:$0xff] }
  0x7d   :  { %962 = vmatpush.msra.mxu0 %v229_v0  ;;  %982 = vmatpush.msra.mxu1 %v235_v1  ;;  %v5028_v55 = vld [vmem:[%s7839_s2 + $0x7] ss:$0 sm:$0xff]  ;;  %v5041_v0 = vld [vmem:[%s7838_s6] ss:$0 sm:$0xff]  ;;  %v5042_v1 = vld [vmem:[%s7838_s6 + $0x1] ss:$0 sm:$0xff] }
  0x7e   :  { %1159 = vmatpush.msra.mxu2 %v292_v58  ;;  %1179 = vmatpush.msra.mxu3 %v298_v59 }
  0x7f   :  { %1037 = vmatpush.msrb.mxu0 %v258_v4  ;;  %1057 = vmatpush.msrb.mxu1 %v264_v5 }
  0x80   :  { %1160 = vmatpush.msra.mxu2 %v291_v62  ;;  %1180 = vmatpush.msra.mxu3 %v297_v63 }
  0x81   :  { %1038 = vmatpush.msrb.mxu0 %v257_v8  ;;  %1058 = vmatpush.msrb.mxu1 %v263_v9  ;;  %v5043_v8 = vld [vmem:[%s7838_s6 + $0xa] ss:$0 sm:$0xff]  ;;  %v5044_v9 = vld [vmem:[%s7838_s6 + $0xb] ss:$0 sm:$0xff] }
  0x82   :  { %1161 = vmatpush.msra.mxu2 %v290_v2  ;;  %1181 = vmatpush.msra.mxu3 %v296_v3  ;;  %v5031_v2 = vld [vmem:[%s7839_s2] ss:$0 sm:$0xff]  ;;  %v5032_v3 = vld [vmem:[%s7839_s2 + $0x1] ss:$0 sm:$0xff] }
  0x83   :  { %4870 = vmatmul.msk.f32.vlgmr.msra.gmra.mxu0 %vm388_vm0, %v5436_v16  ;;  %4871 = vmatmul.msk.f32.vlgmr.msra.gmra.mxu1 %vm388_vm0, %v5441_v17 }
  0x84   :  { %1162 = vmatpush.msra.mxu2 %v289_v6  ;;  %1182 = vmatpush.msra.mxu3 %v295_v7 }
  0x85   :  { %4880 = vmatmul.msk.f32.vlgmr.msra.gmra.mxu2 %vm388_vm0, %v5436_v16  ;;  %4881 = vmatmul.msk.f32.vlgmr.msra.gmra.mxu3 %vm388_vm0, %v5441_v17 }
  0x86   :  { %1039 = vmatpush.msrb.mxu0 %v256_v10  ;;  %1059 = vmatpush.msrb.mxu1 %v262_v11 }
  0x88   :  { %1040 = vmatpush.msrb.mxu0 %v255_v14  ;;  %1060 = vmatpush.msrb.mxu1 %v261_v15 }
  0x8a   :  { %1041 = vmatpush.msrb.mxu0 %v254_v18  ;;  %1061 = vmatpush.msrb.mxu1 %v260_v19 }
  0x8c   :  { %1042 = vmatpush.msrb.mxu0 %v253_v20  ;;  %1062 = vmatpush.msrb.mxu1 %v259_v21  ;;  %v5045_v20 = vld [vmem:[%s7838_s6 + $0x4] ss:$0 sm:$0xff]  ;;  %v5046_v21 = vld [vmem:[%s7838_s6 + $0x5] ss:$0 sm:$0xff] }
  0x8d   :  { %4874 = vmatmul.msk.f32.vlgmr.msrb.gmra.mxu0 %vm388_vm0, %v5436_v16  ;;  %4875 = vmatmul.msk.f32.vlgmr.msrb.gmra.mxu1 %vm388_vm0, %v5441_v17  ;;  %v279_v16 = vld [vmem:[%s7837_s7 + $0x190] sm:$0xff]  ;;  %v285_v17 = vld [vmem:[%s7837_s7 + $0x1c0] sm:$0xff] }
  0x8e   :  { %1117 = vmatpush.msra.mxu0 %v282_v22  ;;  %1137 = vmatpush.msra.mxu1 %v288_v23  ;;  %v5035_v22 = vld [vmem:[%s7839_s2 + $0x4] ss:$0 sm:$0xff]  ;;  %v5036_v23 = vld [vmem:[%s7839_s2 + $0x5] ss:$0 sm:$0xff] }
  0x90   :  { %1118 = vmatpush.msra.mxu0 %v281_v24  ;;  %1138 = vmatpush.msra.mxu1 %v287_v25 }
  0x92   :  { %1119 = vmatpush.msra.mxu0 %v280_v28  ;;  %1139 = vmatpush.msra.mxu1 %v286_v29 }
  0x94   :  { %1120 = vmatpush.msra.mxu0 %v279_v16  ;;  %1140 = vmatpush.msra.mxu1 %v285_v17 }
  0x96   :  { %1121 = vmatpush.msra.mxu0 %v278_v30  ;;  %1141 = vmatpush.msra.mxu1 %v284_v31  ;;  %v5047_v30 = vld [vmem:[%s7838_s6 + $0x8] ss:$0 sm:$0xff]  ;;  %v5048_v31 = vld [vmem:[%s7838_s6 + $0x9] ss:$0 sm:$0xff] }
  0x98   :  { %1122 = vmatpush.msra.mxu0 %v277_v32  ;;  %1142 = vmatpush.msra.mxu1 %v283_v33  ;;  %v5039_v32 = vld [vmem:[%s7839_s2 + $0x8] ss:$0 sm:$0xff]  ;;  %v5040_v33 = vld [vmem:[%s7839_s2 + $0x9] ss:$0 sm:$0xff] }
  0x99   :  { %4878 = vmatmul.msk.f32.vlgmr.msra.gmra.mxu0 %vm388_vm0, %v5217_v36  ;;  %4879 = vmatmul.msk.f32.vlgmr.msra.gmra.mxu1 %vm388_vm0, %v5218_v37 }
  0xa0   :  { %v6053_v12 = vpop.f32.mrf.mxu2  ;;  %v6055_v13 = vpop.f32.mrf.mxu3 }
  0xa1   :  { %v453_v48 = vadd.f32 %v5025_v42, %v6053_v12  ;;  %v473_v49 = vadd.f32 %v5026_v43, %v6055_v13  ;;  %v5029_v12 = vld [vmem:[%s7839_s2 + $0xa] ss:$0 sm:$0xff]  ;;  %v5030_v13 = vld [vmem:[%s7839_s2 + $0xb] ss:$0 sm:$0xff]  ;;  %s5252_s2 = smov [#allocation2]  }
  0xa2   :  { %s4832_s29 = sshll.u32 %s5252_s2, 4  ;;  %s4833_s29 = int_to_ptr.vmem [resolvable:$true] %s4832_s29 }
  0xac   :  { %v532_v26 = vpop.f32.mrf.mxu2  ;;  %v552_v27 = vpop.f32.mrf.mxu3 }
  0xad   :  { %v533_v62 = vadd.f32 %v5027_v54, %v532_v26  ;;  %v553_v63 = vadd.f32 %v5028_v55, %v552_v27 }
  0xb0   :  { %v409_v38 = vpop.f32.mrf.mxu0  ;;  %v432_v39 = vpop.f32.mrf.mxu1 }
  0xb1   :  { %v410_v10 = vadd.f32 %v5031_v2, %v409_v38  ;;  %v433_v11 = vadd.f32 %v5032_v3, %v432_v39  ;;  %v5049_v38 = vld [vmem:[%s7840_s9 + $0x2] ss:$0 sm:$0xff]  ;;  %v5050_v39 = vld [vmem:[%s7840_s9 + $0x3] ss:$0 sm:$0xff] }
  0xb8   :  { %v6115_v34 = vpop.f32.mrf.mxu2  ;;  %v6117_v35 = vpop.f32.mrf.mxu3 }
  0xb9   :  { %v613_v24 = vadd.f32 %v5029_v12, %v6115_v34  ;;  %v633_v25 = vadd.f32 %v5030_v13, %v6117_v35 }
  0xc2   :  { %v492_v50 = vpop.f32.mrf.mxu0  ;;  %v512_v51 = vpop.f32.mrf.mxu1 }
  0xc3   :  { %v493_v16 = vadd.f32 %v5035_v22, %v492_v50  ;;  %v513_v17 = vadd.f32 %v5036_v23, %v512_v51 }
  0xc4   :  { %v728_v44 = vpop.f32.mrf.mxu2  ;;  %v748_v45 = vpop.f32.mrf.mxu3 }
  0xc5   :  { %v729_v46 = vadd.f32 %v5033_v40, %v728_v44  ;;  %v749_v47 = vadd.f32 %v5034_v41, %v748_v45 }
  0xc7   :  { %4886 = vmatpush.xpose.msk.msrb.mxu2 %vm1187_vm1, %v729_v46  ;;  %4888 = vmatpush.xpose.msk.msrb.mxu3 %vm1187_vm1, %v749_v47  ;;  %v5051_v46 = vld [vmem:[%s7840_s9 + $0x6] ss:$0 sm:$0xff]  ;;  %v5052_v47 = vld [vmem:[%s7840_s9 + $0x7] ss:$0 sm:$0xff] }
  0xca   :  { %4887 = vmatmul.msk.f32.vlgmr.msrb.gmra.mxu2 %vm1187_vm1, %v453_v48  ;;  %4889 = vmatmul.msk.f32.vlgmr.msrb.gmra.mxu3 %vm1187_vm1, %v473_v49 }
  0xce   :  { %v572_v60 = vpop.f32.mrf.mxu0  ;;  %v592_v61 = vpop.f32.mrf.mxu1 }
  0xcf   :  { %v573_v40 = vadd.f32 %v5039_v32, %v572_v60  ;;  %v593_v41 = vadd.f32 %v5040_v33, %v592_v61 }
  0xd0   :  { %v808_v56 = vpop.f32.mrf.mxu2  ;;  %v828_v57 = vpop.f32.mrf.mxu3 }
  0xd1   :  { %v809_v58 = vadd.f32 %v5037_v52, %v808_v56  ;;  %v829_v59 = vadd.f32 %v5038_v53, %v828_v57  ;;  %v5053_v52 = vld [vmem:[%s7840_s9] ss:$0 sm:$0xff]  ;;  %v5054_v53 = vld [vmem:[%s7840_s9 + $0x1] ss:$0 sm:$0xff] }
  0xd3   :  { %4894 = vmatpush.xpose.msk.msra.mxu2 %vm1187_vm1, %v809_v58  ;;  %4896 = vmatpush.xpose.msk.msra.mxu3 %vm1187_vm1, %v829_v59  ;;  %v5057_v58 = vld [vmem:[%s7840_s9 + $0x4] ss:$0 sm:$0xff]  ;;  %v5058_v59 = vld [vmem:[%s7840_s9 + $0x5] ss:$0 sm:$0xff] }
  0xd6   :  { %4895 = vmatmul.msk.f32.vlgmr.msra.gmra.mxu2 %vm1187_vm1, %v533_v62  ;;  %4897 = vmatmul.msk.f32.vlgmr.msra.gmra.mxu3 %vm1187_vm1, %v553_v63 }
  0xd8   :  { %v688_v4 = vpop.f32.mrf.mxu0  ;;  %v708_v5 = vpop.f32.mrf.mxu1 }
  0xd9   :  { %v689_v6 = vadd.f32 %v5041_v0, %v688_v4  ;;  %v709_v7 = vadd.f32 %v5042_v1, %v708_v5 }
  0xdb   :  { %4882 = vmatpush.xpose.msk.msrb.mxu0 %vm1187_vm1, %v689_v6  ;;  %4884 = vmatpush.xpose.msk.msrb.mxu1 %vm1187_vm1, %v709_v7 }
  0xdc   :  { %v888_v14 = vpop.f32.mrf.mxu2  ;;  %v908_v15 = vpop.f32.mrf.mxu3 }
  0xdd   :  { %v889_v18 = vadd.f32 %v5043_v8, %v888_v14  ;;  %v909_v19 = vadd.f32 %v5044_v9, %v908_v15 }
  0xde   :  { %4883 = vmatmul.msk.f32.vlgmr.msrb.gmra.mxu0 %vm1187_vm1, %v410_v10  ;;  %4885 = vmatmul.msk.f32.vlgmr.msrb.gmra.mxu1 %vm1187_vm1, %v433_v11 }
  0xdf   :  { %4902 = vmatpush.xpose.msk.msrb.mxu2 %vm1187_vm1, %v889_v18  ;;  %4904 = vmatpush.xpose.msk.msrb.mxu3 %vm1187_vm1, %v909_v19 }
  0xe0   :  { %v768_v26 = vpop.f32.mrf.mxu0  ;;  %v788_v27 = vpop.f32.mrf.mxu1 }
  0xe1   :  { %v769_v28 = vadd.f32 %v5045_v20, %v768_v26  ;;  %v789_v29 = vadd.f32 %v5046_v21, %v788_v27 }
  0xe2   :  { %4903 = vmatmul.msk.f32.vlgmr.msrb.gmra.mxu2 %vm1187_vm1, %v613_v24  ;;  %4905 = vmatmul.msk.f32.vlgmr.msrb.gmra.mxu3 %vm1187_vm1, %v633_v25 }
  0xe3   :  { %4890 = vmatpush.xpose.msk.msra.mxu0 %vm1187_vm1, %v769_v28  ;;  %4892 = vmatpush.xpose.msk.msra.mxu1 %vm1187_vm1, %v789_v29 }
  0xe6   :  { %4891 = vmatmul.msk.f32.vlgmr.msra.gmra.mxu0 %vm1187_vm1, %v493_v16  ;;  %4893 = vmatmul.msk.f32.vlgmr.msra.gmra.mxu1 %vm1187_vm1, %v513_v17 }
  0xec   :  { %v848_v34 = vpop.f32.mrf.mxu0  ;;  %v868_v35 = vpop.f32.mrf.mxu1 }
  0xed   :  { %v849_v36 = vadd.f32 %v5047_v30, %v848_v34  ;;  %v869_v37 = vadd.f32 %v5048_v31, %v868_v35 }
  0xee   :  { %v1004_v42 = vpop.f32.mrf.mxu2  ;;  %v1024_v43 = vpop.f32.mrf.mxu3 }
  0xef   :  { %4898 = vmatpush.xpose.msk.msrb.mxu0 %vm1187_vm1, %v849_v36  ;;  %4900 = vmatpush.xpose.msk.msrb.mxu1 %vm1187_vm1, %v869_v37  ;;  %v1005_v44 = vadd.f32 %v5049_v38, %v1004_v42  ;;  %v1025_v45 = vadd.f32 %v5050_v39, %v1024_v43 }
  0xf1   :  { %1852 = vmatpush.msra.mxu2 %v1005_v44  ;;  %1875 = vmatpush.msra.mxu3 %v1025_v45 }
  0xf2   :  { %4899 = vmatmul.msk.f32.vlgmr.msrb.gmra.mxu0 %vm1187_vm1, %v573_v40  ;;  %4901 = vmatmul.msk.f32.vlgmr.msrb.gmra.mxu1 %vm1187_vm1, %v593_v41 }
  0xfc   :  { %v1084_v48 = vpop.f32.mrf.mxu2  ;;  %v1104_v49 = vpop.f32.mrf.mxu3 }
  0xfd   :  { %v1085_v50 = vadd.f32 %v5051_v46, %v1084_v48  ;;  %v1105_v51 = vadd.f32 %v5052_v47, %v1104_v49 }
  0xff   :  { %1944 = vmatpush.msrb.mxu2 %v1085_v50  ;;  %1967 = vmatpush.msrb.mxu3 %v1105_v51 }
 0x100   :  { %v964_v54 = vpop.f32.mrf.mxu0  ;;  %v984_v55 = vpop.f32.mrf.mxu1 }
 0x101   :  { %v965_v56 = vadd.f32 %v5053_v52, %v964_v54  ;;  %v985_v57 = vadd.f32 %v5054_v53, %v984_v55 }
 0x103   :  { %1829 = vmatpush.msra.mxu1 %v985_v57  ;;  %1806 = vmatpush.msra.mxu0 %v965_v56 }
 0x108   :  { %v6251_v0 = vpop.f32.mrf.mxu2  ;;  %v6253_v1 = vpop.f32.mrf.mxu3 }
 0x10a   :  { %v1044_v60 = vpop.f32.mrf.mxu0  ;;  %v1064_v61 = vpop.f32.mrf.mxu1 }
 0x10b   :  { %v1045_v62 = vadd.f32 %v5057_v58, %v1044_v60  ;;  %v1065_v63 = vadd.f32 %v5058_v59, %v1064_v61 }
 0x10d   :  { %1921 = vmatpush.msrb.mxu1 %v1065_v63  ;;  %1898 = vmatpush.msrb.mxu0 %v1045_v62 }
 0x116   :  { %v6256_v5 = vpop.f32.mrf.mxu0  ;;  %v6258_v6 = vpop.f32.mrf.mxu1 }
 0x14d   :  { %v1263_v2 = vpop.f32.mrf.mxu2  ;;  %v1289_v4 = vpop.f32.mrf.mxu3 }
 0x14e   :  { %v1506_v3 = vsel %vm1187_vm1, %v1263_v2, -inf  ;;  %v1509_v7 = vsel %vm1187_vm1, %v1289_v4, -inf }
 0x14f   :  { %1507 = vmax.xlane.f32.xlu0 %v1506_v3 }
 0x157   :  { %1510 = vmax.xlane.f32.xlu0 %v1509_v7 }
 0x159   :  { %v1367_v8 = vpop.f32.mrf.mxu2  ;;  %v1393_v13 = vpop.f32.mrf.mxu3 }
 0x15a   :  { %v1518_v9 = vsel %vm1187_vm1, %v1367_v8, -inf  ;;  %v1521_v14 = vsel %vm1187_vm1, %v1393_v13, -inf }
 0x15b   :  { %1519 = vmax.xlane.f32.xlu1 %v1518_v9  ;;  %v1211_v10 = vpop.f32.mrf.mxu0  ;;  %v6262_v11 = vpop.f32.mrf.mxu1 }
 0x15c   :  { %v1500_v12 = vsel %vm1187_vm1, %v1211_v10, -inf  ;;  %v1503_v22 = vsel %vm1187_vm1, %v6262_v11, -inf }
 0x15f   :  { %1501 = vmax.xlane.f32.xlu0 %v1500_v12 }
 0x163   :  { %1522 = vmax.xlane.f32.xlu1 %v1521_v14  ;;  %v6266_v15 = vpop.f32.mrf.mxu0  ;;  %v1341_v18 = vpop.f32.mrf.mxu1 }
 0x164   :  { %v1515_v20 = vsel %vm1187_vm1, %v1341_v18, -inf  ;;  %v1512_v27 = vsel %vm1187_vm1, %v6266_v15, -inf }
 0x165   :  { %v1471_v19 = vpop.f32.mrf.mxu2  ;;  %v1497_v23 = vpop.f32.mrf.mxu3 }
 0x166   :  { %v1530_v21 = vsel %vm1187_vm1, %v1471_v19, -inf  ;;  %v1533_v25 = vsel %vm1187_vm1, %v1497_v23, -inf }
 0x167   :  { %1516 = vmax.xlane.f32.xlu0 %v1515_v20  ;;  %1531 = vmax.xlane.f32.xlu2 %v1530_v21 }
 0x16b   :  { %1504 = vmax.xlane.f32.xlu1 %v1503_v22 }
 0x16f   :  { %v6272_v24 = vpop.f32.mrf.mxu0  ;;  %1534 = vmax.xlane.f32.xlu2 %v1533_v25  ;;  %v6279_v28 = vpop.f32.mrf.mxu1 }
 0x170   :  { %v1524_v26 = vsel %vm1187_vm1, %v6272_v24, -inf  ;;  %v1527_v29 = vsel %vm1187_vm1, %v6279_v28, -inf }
 0x173   :  { %1525 = vmax.xlane.f32.xlu1 %v1524_v26 }
 0x177   :  { %1513 = vmax.xlane.f32.xlu2 %v1512_v27 }
 0x17f   :  { %1528 = vmax.xlane.f32.xlu2 %v1527_v29 }
 0x1c2   :  { %v1508_v16 = vpop.xlane.xlu0 %1507 }
 0x1c3   :  { %v1538_v17 = vsub.f32 %v1263_v2, %v1508_v16 }
 0x1c5   :  { %v1552_v30 = vmul.f32 1.442695, %v1538_v17 }
 0x1c7   :  { %5107 = vpow2.f32 %v1552_v30 }
 0x1ca   :  { %v1511_v31 = vpop.xlane.xlu0 %1510 }
 0x1cb   :  { %v1539_v32 = vsub.f32 %v1289_v4, %v1511_v31 }
 0x1cd   :  { %v6283_v33 = vpop.eup %5107  ;;  %v1554_v34 = vmul.f32 1.442695, %v1539_v32 }
 0x1ce   :  { %v1578_v35 = vsel %vm1187_vm1, %v6283_v33, 0.0  ;;  %v1520_v36 = vpop.xlane.xlu1 %1519 }
 0x1cf   :  { %5109 = vpow2.f32 %v1554_v34  ;;  %1579 = vadd.xlane.f32.xlu0 %v1578_v35  ;;  %v1542_v37 = vsub.f32 %v1367_v8, %v1520_v36 }
 0x1d1   :  { %v1560_v38 = vmul.f32 1.442695, %v1542_v37 }
 0x1d2   :  { %v1502_v40 = vpop.xlane.xlu0 %1501 }
 0x1d3   :  { %5111 = vpow2.f32 %v1560_v38  ;;  %v1536_v44 = vsub.f32 %v1211_v10, %v1502_v40 }
 0x1d5   :  { %v6287_v39 = vpop.eup %5109  ;;  %v1548_v48 = vmul.f32 1.442695, %v1536_v44 }
 0x1d6   :  { %v1581_v41 = vsel %vm1187_vm1, %v6287_v39, 0.0  ;;  %v1523_v42 = vpop.xlane.xlu1 %1522 }
 0x1d7   :  { %1582 = vadd.xlane.f32.xlu1 %v1581_v41  ;;  %v1543_v43 = vsub.f32 %v1393_v13, %v1523_v42  ;;  %v5055_v41 = vld [vmem:[%s7840_s9 + $0xa] ss:$0 sm:$0xff] }
 0x1d9   :  { %v6291_v45 = vpop.eup %5111  ;;  %v1562_v46 = vmul.f32 1.442695, %v1543_v43 }
 0x1da   :  { %v1590_v47 = vsel %vm1187_vm1, %v6291_v45, 0.0  ;;  %v1532_v49 = vpop.xlane.xlu2 %1531  ;;  %v1517_v51 = vpop.xlane.xlu0 %1516 }
 0x1db   :  { %5113 = vpow2.f32 %v1562_v46  ;;  %1591 = vadd.xlane.f32.xlu2 %v1590_v47  ;;  %v1546_v50 = vsub.f32 %v1471_v19, %v1532_v49  ;;  %v1541_v55 = vsub.f32 %v1341_v18, %v1517_v51  ;;  %v1165_v49 = vadd.f32 %v5055_v41, %v6251_v0 }
 0x1dc   :  { %5115 = vpow2.f32 %v1548_v48 }
 0x1dd   :  { %v1568_v53 = vmul.f32 1.442695, %v1546_v50  ;;  %v1558_v59 = vmul.f32 1.442695, %v1541_v55 }
 0x1de   :  { %v1505_v52 = vpop.xlane.xlu1 %1504 }
 0x1df   :  { %v1537_v54 = vsub.f32 %v6262_v11, %v1505_v52  ;;  %5117 = vpow2.f32 %v1568_v53 }
 0x1e1   :  { %v6296_v56 = vpop.eup %5113  ;;  %v1550_v58 = vmul.f32 1.442695, %v1537_v54 }
 0x1e2   :  { %v1593_v57 = vsel %vm1187_vm1, %v6296_v56, 0.0  ;;  %v1535_v60 = vpop.xlane.xlu2 %1534  ;;  %v6300_v62 = vpop.eup %5115 }
 0x1e3   :  { %1594 = vadd.xlane.f32.xlu0 %v1593_v57  ;;  %v1547_v61 = vsub.f32 %v1497_v23, %v1535_v60  ;;  %5119 = vpow2.f32 %v1550_v58  ;;  %v1572_v8 = vsel %vm1187_vm1, %v6300_v62, 0.0  ;;  %v5056_v58 = vld [vmem:[%s7840_s9 + $0xb] ss:$0 sm:$0xff] }
 0x1e4   :  { %5121 = vpow2.f32 %v1558_v59 }
 0x1e5   :  { %v6302_v2 = vpop.eup %5117  ;;  %v1570_v3 = vmul.f32 1.442695, %v1547_v61 }
 0x1e6   :  { %v1526_v63 = vpop.xlane.xlu1 %1525  ;;  %v1602_v7 = vsel %vm1187_vm1, %v6302_v2, 0.0 }
 0x1e7   :  { %v1544_v4 = vsub.f32 %v6272_v24, %v1526_v63  ;;  %5123 = vpow2.f32 %v1570_v3  ;;  %1603 = vadd.xlane.f32.xlu1 %v1602_v7  ;;  %v1185_v7 = vadd.f32 %v5056_v58, %v6253_v1 }
 0x1e9   :  { %v1564_v9 = vmul.f32 1.442695, %v1544_v4  ;;  %v6309_v11 = vpop.eup %5119 }
 0x1ea   :  { %v1514_v10 = vpop.xlane.xlu2 %1513  ;;  %v6312_v13 = vpop.eup %5121  ;;  %v1575_v20 = vsel %vm1187_vm1, %v6309_v11, 0.0 }
 0x1eb   :  { %1573 = vadd.xlane.f32.xlu0 %v1572_v8  ;;  %v1540_v12 = vsub.f32 %v6266_v15, %v1514_v10  ;;  %5125 = vpow2.f32 %v1564_v9  ;;  %v1587_v21 = vsel %vm1187_vm1, %v6312_v13, 0.0 }
 0x1ed   :  { %v6314_v14 = vpop.eup %5123  ;;  %v1556_v18 = vmul.f32 1.442695, %v1540_v12 }
 0x1ee   :  { %v1605_v19 = vsel %vm1187_vm1, %v6314_v14, 0.0 }
 0x1ef   :  { %5127 = vpow2.f32 %v1556_v18  ;;  %1606 = vadd.xlane.f32.xlu2 %v1605_v19  ;;  %1576 = vadd.xlane.f32.xlu1 %v1575_v20 }
 0x1f1   :  { %v6322_v22 = vpop.eup %5125 }
 0x1f2   :  { %v1529_v15 = vpop.xlane.xlu2 %1528  ;;  %v1596_v27 = vsel %vm1187_vm1, %v6322_v22, 0.0 }
 0x1f3   :  { %1588 = vadd.xlane.f32.xlu0 %v1587_v21  ;;  %v1545_v23 = vsub.f32 %v6279_v28, %v1529_v15 }
 0x1f5   :  { %v6325_v24 = vpop.eup %5127  ;;  %v1566_v25 = vmul.f32 1.442695, %v1545_v23 }
 0x1f6   :  { %v1584_v26 = vsel %vm1187_vm1, %v6325_v24, 0.0 }
 0x1f7   :  { %5129 = vpow2.f32 %v1566_v25  ;;  %1585 = vadd.xlane.f32.xlu2 %v1584_v26  ;;  %1597 = vadd.xlane.f32.xlu1 %v1596_v27 }
 0x1fd   :  { %v6331_v29 = vpop.eup %5129 }
 0x1fe   :  { %v1599_v16 = vsel %vm1187_vm1, %v6331_v29, 0.0 }
 0x1ff   :  { %1600 = vadd.xlane.f32.xlu2 %v1599_v16 }
 0x242   :  { %v1580_v17 = vpop.xlane.xlu0 %1579 }
 0x243   :  { %5131 = vrcp.f32 %v1580_v17  ;;  %v1649_v34 = vand.u32 2147483648, %v1580_v17  ;;  %v1647_v36 = vand.u32 2147483647, %v1580_v17  ;;  %vm1643_vm3 = vweird.f32 %v1580_v17 }
 0x245   :  { %v1650_v42 = vor.u32 1.1754944e-38, %v1649_v34  ;;  %vm1648_vm5 = vcmp.eq.f32.partialorder %v1647_v36, 8.507059e+37  ;;  %v5059_v36 = vld [vmem:[%s7840_s9 + $0x8] ss:$0 sm:$0xff] }
 0x249   :  { %v5132_v28 = vpop.eup %5131 }
 0x24a   :  { %v1639_v30 = vmul.f32 %v5132_v28, %v1580_v17  ;;  %v1583_v31 = vpop.xlane.xlu1 %1582  ;;  %vm1644_vm2 = vweird.f32 %v5132_v28 }
 0x24b   :  { %5133 = vrcp.f32 %v1583_v31  ;;  %vm1645_vm4 = vmor %vm1643_vm3, %vm1644_vm2  ;;  %v1664_v50 = vand.u32 2147483648, %v1583_v31  ;;  %v1662_v52 = vand.u32 2147483647, %v1583_v31  ;;  %vm1658_vm7 = vweird.f32 %v1583_v31 }
 0x24c   :  { %v1640_v32 = vsub.f32 1.0, %v1639_v30 }
 0x24d   :  { %vm1663_vm9 = vcmp.eq.f32.partialorder %v1662_v52, 8.507059e+37 }
 0x24e   :  { %v1641_v35 = vmul.f32 %v5132_v28, %v1640_v32  ;;  %v1592_v38 = vpop.xlane.xlu2 %1591 }
 0x24f   :  { %5135 = vrcp.f32 %v1592_v38  ;;  %v1709_v61 = vand.u32 2147483648, %v1592_v38  ;;  %v1707_v3 = vand.u32 2147483647, %v1592_v38  ;;  %vm1703_vm11 = vweird.f32 %v1592_v38 }
 0x250   :  { %v1642_v37 = vadd.f32 %v5132_v28, %v1641_v35 }
 0x251   :  { %v5134_v40 = vpop.eup %5133  ;;  %v1710_v12 = vor.u32 1.1754944e-38, %v1709_v61  ;;  %vm1708_vm13 = vcmp.eq.f32.partialorder %v1707_v3, 8.507059e+37 }
 0x252   :  { %v1646_v43 = vsel %vm1645_vm4, %v5132_v28, %v1642_v37  ;;  %v1654_v44 = vmul.f32 %v5134_v40, %v1583_v31  ;;  %vm1659_vm6 = vweird.f32 %v5134_v40 }
 0x253   :  { %v1651_v46 = vsel %vm1648_vm5, %v1650_v42, %v1646_v43  ;;  %vm1660_vm8 = vmor %vm1658_vm7, %vm1659_vm6 }
 0x254   :  { %v1655_v47 = vsub.f32 1.0, %v1654_v44  ;;  %v1652_v48 = vmul.f32 %v6283_v33, %v1651_v46  ;;  %v1665_v33 = vor.u32 1.1754944e-38, %v1664_v50 }
 0x255   :  { %v5136_v53 = vpop.eup %5135 }
 0x256   :  { %v1656_v51 = vmul.f32 %v5134_v40, %v1655_v47  ;;  %4908 = vmatmul.msk.f32.vlgmr.msra.gmra.mxu2 %vm1187_vm1, %v1652_v48  ;;  %v1699_v55 = vmul.f32 %v5136_v53, %v1592_v38  ;;  %v1595_v57 = vpop.xlane.xlu0 %1594  ;;  %vm1704_vm10 = vweird.f32 %v5136_v53 }
 0x257   :  { %2036 = vmatpush.msra.mxu2 %v1165_v49  ;;  %5137 = vrcp.f32 %v1595_v57  ;;  %vm1705_vm12 = vmor %vm1703_vm11, %vm1704_vm10  ;;  %v1724_v23 = vand.u32 2147483648, %v1595_v57  ;;  %v1722_v26 = vand.u32 2147483647, %v1595_v57  ;;  %vm1718_vm15 = vweird.f32 %v1595_v57 }
 0x258   :  { %v1657_v54 = vadd.f32 %v5134_v40, %v1656_v51  ;;  %v1700_v59 = vsub.f32 1.0, %v1699_v55  ;;  %v6362_v49 = vadd.f32 %v5059_v36, %v6256_v5 }
 0x259   :  { %vm1723_vm3 = vcmp.eq.f32.partialorder %v1722_v26, 8.507059e+37 }
 0x25a   :  { %v1661_v0 = vsel %vm1660_vm8, %v5134_v40, %v1657_v54  ;;  %v1701_v63 = vmul.f32 %v5136_v53, %v1700_v59  ;;  %v1604_v9 = vpop.xlane.xlu1 %1603 }
 0x25b   :  { %v1666_v60 = vsel %vm1663_vm9, %v1665_v33, %v1661_v0  ;;  %5139 = vrcp.f32 %v1604_v9  ;;  %v1767_v37 = vand.u32 2147483647, %v1604_v9  ;;  %v1769_v38 = vand.u32 2147483648, %v1604_v9 }
 0x25c   :  { %v1667_v4 = vmul.f32 %v6287_v39, %v1666_v60  ;;  %v1702_v8 = vadd.f32 %v5136_v53, %v1701_v63  ;;  %vm1763_vm5 = vweird.f32 %v1604_v9 }
 0x25d   :  { %v5138_v10 = vpop.eup %5137  ;;  %vm6368_vm8 = vcmp.eq.f32.partialorder %v1767_v37, 8.507059e+37  ;;  %v1770_v52 = vor.u32 1.1754944e-38, %v1769_v38 }
 0x25e   :  { %4909 = vmatmul.msk.f32.vlgmr.msra.gmra.mxu3 %vm1187_vm1, %v1667_v4  ;;  %v1706_v18 = vsel %vm1705_vm12, %v5136_v53, %v1702_v8  ;;  %v1714_v19 = vmul.f32 %v5138_v10, %v1595_v57  ;;  %v1574_v20 = vpop.xlane.xlu0 %1573  ;;  %vm1719_vm14 = vweird.f32 %v5138_v10 }
 0x25f   :  { %2059 = vmatpush.msra.mxu3 %v1185_v7  ;;  %v1711_v21 = vsel %vm1708_vm13, %v1710_v12, %v1706_v18  ;;  %5141 = vrcp.f32 %v1574_v20  ;;  %vm1720_vm2 = vmor %vm1718_vm15, %vm1719_vm14  ;;  %v1617_v43 = vand.u32 2147483647, %v1574_v20  ;;  %v1619_v47 = vand.u32 2147483648, %v1574_v20 }
 0x260   :  { %v1715_v15 = vsub.f32 1.0, %v1714_v19  ;;  %v1712_v39 = vmul.f32 %v6291_v45, %v1711_v21  ;;  %v1725_v45 = vor.u32 1.1754944e-38, %v1724_v23  ;;  %vm1613_vm9 = vweird.f32 %v1574_v20 }
 0x261   :  { %v5140_v25 = vpop.eup %5139  ;;  %vm1618_vm11 = vcmp.eq.f32.partialorder %v1617_v43, 8.507059e+37  ;;  %v1620_v61 = vor.u32 1.1754944e-38, %v1619_v47 }
 0x262   :  { %v1716_v1 = vmul.f32 %v5138_v10, %v1715_v15  ;;  %4912 = vmatmul.msk.f32.vlgmr.msrb.gmra.mxu2 %vm1187_vm1, %v1712_v39  ;;  %v1759_v16 = vmul.f32 %v5140_v25, %v1604_v9  ;;  %v6349_v17 = vpop.xlane.xlu2 %1606  ;;  %v6351_v28 = vpop.xlane.xlu1 %1576  ;;  %vm1764_vm4 = vweird.f32 %v5140_v25 }
 0x263   :  { %5143 = vrcp.f32 %v6349_v17  ;;  %vm6364_vm7 = vmor %vm1763_vm5, %vm1764_vm4  ;;  %v1784_v59 = vand.u32 2147483648, %v6349_v17  ;;  %v1632_v8 = vand.u32 2147483647, %v6351_v28  ;;  %vm1778_vm13 = vweird.f32 %v6349_v17 }
 0x264   :  { %v1717_v27 = vadd.f32 %v5138_v10, %v1716_v1  ;;  %v1760_v32 = vsub.f32 1.0, %v1759_v16  ;;  %5145 = vrcp.f32 %v6351_v28  ;;  %v1634_v21 = vand.u32 2147483648, %v6351_v28 }
 0x265   :  { %v5142_v30 = vpop.eup %5141  ;;  %vm6412_vm4 = vcmp.eq.f32.partialorder %v1632_v8, 8.507059e+37 }
 0x266   :  { %v1721_v31 = vsel %vm1720_vm2, %v5138_v10, %v1717_v27  ;;  %v1609_v34 = vmul.f32 %v5142_v30, %v1574_v20  ;;  %v6354_v35 = vpop.xlane.xlu0 %1588  ;;  %v1761_v41 = vmul.f32 %v5140_v25, %v1760_v32  ;;  %vm1614_vm6 = vweird.f32 %v5142_v30 }
 0x267   :  { %v1726_v40 = vsel %vm1723_vm3, %v1725_v45, %v1721_v31  ;;  %5147 = vrcp.f32 %v6354_v35  ;;  %vm6381_vm10 = vmor %vm1613_vm9, %vm1614_vm6  ;;  %v1785_v20 = vor.u32 1.1754944e-38, %v1784_v59  ;;  %vm1628_vm3 = vweird.f32 %v6351_v28 }
 0x268   :  { %v1610_v42 = vsub.f32 1.0, %v1609_v34  ;;  %v1762_v44 = vadd.f32 %v5140_v25, %v1761_v41  ;;  %v1727_v53 = vmul.f32 %v6296_v56, %v1726_v40  ;;  %v1782_v56 = vand.u32 2147483647, %v6349_v17 }
 0x269   :  { %v5144_v48 = vpop.eup %5143  ;;  %v1694_v36 = vand.u32 2147483648, %v6354_v35 }
 0x26a   :  { %v1611_v46 = vmul.f32 %v5142_v30, %v1610_v42  ;;  %v1766_v54 = vsel %vm6364_vm7, %v5140_v25, %v1762_v44  ;;  %v1774_v57 = vmul.f32 %v5144_v48, %v6349_v17  ;;  %v6376_v5 = vpop.xlane.xlu2 %1585  ;;  %v6378_v58 = vpop.xlane.xlu1 %1597  ;;  %4913 = vmatmul.msk.f32.vlgmr.msrb.gmra.mxu3 %vm1187_vm1, %v1727_v53  ;;  %vm1779_vm12 = vweird.f32 %v5144_v48  ;;  %v348_v25 = vld [vmem:[%s7855_s27 + $0x58] sm:$0xff] }
 0x26b   :  { %v5146_v33 = vpop.eup %5145  ;;  %5149 = vrcp.f32 %v6376_v5  ;;  %v1771_v7 = vsel %vm6368_vm8, %v1770_v52, %v1766_v54  ;;  %vm6401_vm14 = vcmp.eq.f32.partialorder %v1782_v56, 8.507059e+37  ;;  %vm6407_vm2 = vmor %vm1778_vm13, %vm1779_vm12  ;;  %v1679_v44 = vand.u32 2147483648, %v6376_v5  ;;  %v2456_v52 = vld [vmem:[%s7801_s13 + $0x130] sm:$0xff] }
 0x26c   :  { %v1612_v55 = vadd.f32 %v5142_v30, %v1611_v46  ;;  %v1775_v63 = vsub.f32 1.0, %v1774_v57  ;;  %v1624_v3 = vmul.f32 %v5146_v33, %v6351_v28  ;;  %5151 = vrcp.f32 %v6378_v58 }
 0x26d   :  { %v6392_v4 = vpop.eup %5147  ;;  %vm1629_vm15 = vweird.f32 %v5146_v33  ;;  %v1772_v27 = vmul.f32 %v6302_v2, %v1771_v7  ;;  %v1635_v28 = vor.u32 1.1754944e-38, %v1634_v21  ;;  %v1677_v2 = vand.u32 2147483647, %v6376_v5  ;;  %v340_v21 = vld [vmem:[%s7855_s27 + $0x18] sm:$0xff] }
 0x26e   :  { %v1616_v60 = vsel %vm6381_vm10, %v5142_v30, %v1612_v55  ;;  %v1776_v10 = vmul.f32 %v5144_v48, %v1775_v63  ;;  %v1625_v12 = vsub.f32 1.0, %v1624_v3  ;;  %v1684_v18 = vmul.f32 %v6392_v4, %v6354_v35  ;;  %vm1630_vm5 = vmor %vm1628_vm3, %vm1629_vm15  ;;  %2151 = vmatpush.msrb.mxu3 %v340_v21  ;;  %v2489_v21 = vld [vmem:[%s7801_s13 + $0x238] sm:$0xff] }
 0x26f   :  { %v1621_v9 = vsel %vm1618_vm11, %v1620_v61, %v1616_v60  ;;  %4916 = vmatmul.msk.f32.vlgmr.msra.gmra.mxu2 %vm1187_vm1, %v1772_v27  ;;  %vm1689_vm6 = vweird.f32 %v6392_v4  ;;  %vm1688_vm8 = vweird.f32 %v6354_v35  ;;  %vm1673_vm10 = vweird.f32 %v6376_v5  ;;  %v341_v27 = vld [vmem:[%s7855_s27 + $0x20] sm:$0xff] }
 0x270   :  { %v1777_v15 = vadd.f32 %v5144_v48, %v1776_v10  ;;  %v1626_v39 = vmul.f32 %v5146_v33, %v1625_v12  ;;  %v1685_v1 = vsub.f32 1.0, %v1684_v18  ;;  %v1622_v16 = vmul.f32 %v6300_v62, %v1621_v9  ;;  %v5060_v62 = vld [vmem:[%s7840_s9 + $0x9] ss:$0 sm:$0xff]  ;;  %vm6449_vm9 = vmor %vm1688_vm8, %vm1689_vm6 }
 0x271   :  { %v5150_v23 = vpop.eup %5149  ;;  %v1145_v51 = vadd.f32 %v5060_v62, %v6258_v6  ;;  %v1695_v57 = vor.u32 1.1754944e-38, %v1694_v36  ;;  %vm1678_vm12 = vcmp.eq.f32.partialorder %v1677_v2, 8.507059e+37  ;;  %vm1733_vm15 = vweird.f32 %v6378_v58  ;;  %v2430_v36 = vld [vmem:[%s7801_s13 + $0x60] sm:$0xff]  ;;  %v2440_v62 = vld [vmem:[%s7801_s13 + $0xb0] sm:$0xff] }
 0x272   :  { %v1781_v17 = vsel %vm6407_vm2, %v5144_v48, %v1777_v15  ;;  %v1627_v30 = vadd.f32 %v5146_v33, %v1626_v39  ;;  %v1686_v31 = vmul.f32 %v6392_v4, %v1685_v1  ;;  %v1669_v45 = vmul.f32 %v5150_v23, %v6376_v5  ;;  %v6422_v32 = vpop.xlane.xlu2 %1600  ;;  %v6424_v34 = vpop.eup %5151  ;;  %4906 = vmatmul.msk.f32.vlgmr.msra.gmra.mxu0 %vm1187_vm1, %v1622_v16  ;;  %v337_v15 = vld [vmem:[%s7855_s27] sm:$0xff]  ;;  %v347_v39 = vld [vmem:[%s7855_s27 + $0x50] sm:$0xff]  ;;  %v342_v16 = vld [vmem:[%s7855_s27 + $0x28] sm:$0xff] }
 0x273   :  { %5153 = vrcp.f32 %v6422_v32  ;;  %v1786_v37 = vsel %vm6401_vm14, %v1785_v20, %v1781_v17  ;;  %v1729_v41 = vmul.f32 %v6424_v34, %v6378_v58  ;;  %1990 = vmatpush.msra.mxu0 %v6362_v49  ;;  %vm1674_vm7 = vweird.f32 %v5150_v23  ;;  %v2435_v17 = vld [vmem:[%s7801_s13 + $0x88] sm:$0xff] }
 0x274   :  { %v1631_v38 = vsel %vm1630_vm5, %v5146_v33, %v1627_v30  ;;  %v1670_v40 = vsub.f32 1.0, %v1669_v45  ;;  %v1687_v43 = vadd.f32 %v6392_v4, %v1686_v31  ;;  %v1692_v48 = vand.u32 2147483647, %v6354_v35  ;;  %vm1675_vm11 = vmor %vm1673_vm10, %vm1674_vm7  ;;  %v2434_v31 = vld [vmem:[%s7801_s13 + $0x80] sm:$0xff]  ;;  %v2433_v45 = vld [vmem:[%s7801_s13 + $0x78] sm:$0xff] }
 0x275   :  { %v1636_v42 = vsel %vm6412_vm4, %v1635_v28, %v1631_v38  ;;  %v1730_v47 = vsub.f32 1.0, %v1729_v41  ;;  %v1787_v49 = vmul.f32 %v6314_v14, %v1786_v37  ;;  %vm1734_vm13 = vweird.f32 %v6424_v34  ;;  %v2441_v28 = vld [vmem:[%s7801_s13 + $0xb8] sm:$0xff]  ;;  %v345_v37 = vld [vmem:[%s7855_s27 + $0x40] sm:$0xff] }
 0x276   :  { %v1671_v46 = vmul.f32 %v5150_v23, %v1670_v40  ;;  %v1637_v50 = vmul.f32 %v6309_v11, %v1636_v42  ;;  %v1691_v35 = vsel %vm6449_vm9, %v6392_v4, %v1687_v43  ;;  %v1680_v11 = vor.u32 1.1754944e-38, %v1679_v44  ;;  %vm1735_vm2 = vmor %vm1733_vm15, %vm1734_vm13  ;;  %v2439_v40 = vld [vmem:[%s7801_s13 + $0xa8] sm:$0xff]  ;;  %v2438_v41 = vld [vmem:[%s7801_s13 + $0xa0] sm:$0xff] }
 0x277   :  { %v1731_v54 = vmul.f32 %v6424_v34, %v1730_v47  ;;  %4917 = vmatmul.msk.f32.vlgmr.msra.gmra.mxu3 %vm1187_vm1, %v1787_v49  ;;  %vm1693_vm14 = vcmp.eq.f32.partialorder %v1692_v48, 8.507059e+37  ;;  %v1739_v0 = vand.u32 2147483648, %v6378_v58  ;;  %v1737_v59 = vand.u32 2147483647, %v6378_v58  ;;  %v2459_v42 = vld [vmem:[%s7801_s13 + $0x148] sm:$0xff]  ;;  %v2437_v43 = vld [vmem:[%s7801_s13 + $0x98] sm:$0xff] }
 0x278   :  { %v1672_v53 = vadd.f32 %v5150_v23, %v1671_v46  ;;  %4907 = vmatmul.msk.f32.vlgmr.msra.gmra.mxu1 %vm1187_vm1, %v1637_v50  ;;  %v1696_v56 = vsel %vm1693_vm14, %v1695_v57, %v1691_v35  ;;  %v1754_v63 = vand.u32 2147483648, %v6422_v32  ;;  %v1752_v7 = vand.u32 2147483647, %v6422_v32  ;;  %v346_v47 = vld [vmem:[%s7855_s27 + $0x48] sm:$0xff]  ;;  %v2458_v48 = vld [vmem:[%s7801_s13 + $0x140] sm:$0xff]  ;;  %v2436_v50 = vld [vmem:[%s7801_s13 + $0x90] sm:$0xff] }
 0x279   :  { %v5154_v55 = vpop.eup %5153  ;;  %v1732_v14 = vadd.f32 %v6424_v34, %v1731_v54  ;;  %2013 = vmatpush.msra.mxu1 %v1145_v51  ;;  %v1740_v8 = vor.u32 1.1754944e-38, %v1739_v0  ;;  %v1697_v9 = vmul.f32 %v6312_v13, %v1696_v56  ;;  %vm1738_vm4 = vcmp.eq.f32.partialorder %v1737_v59, 8.507059e+37  ;;  %v339_v13 = vld [vmem:[%s7855_s27 + $0x10] sm:$0xff]  ;;  %v2457_v49 = vld [vmem:[%s7801_s13 + $0x138] sm:$0xff]  ;;  %v2423_v51 = vld [vmem:[%s7801_s13 + $0x28] sm:$0xff] }
 0x27a   :  { %v1676_v6 = vsel %vm1675_vm11, %v5150_v23, %v1672_v53  ;;  %v1744_v5 = vmul.f32 %v5154_v55, %v6422_v32  ;;  %vm1749_vm3 = vweird.f32 %v5154_v55  ;;  %vm1748_vm5 = vweird.f32 %v6422_v32  ;;  %2128 = vmatpush.msrb.mxu2 %v339_v13  ;;  %v338_v23 = vld [vmem:[%s7855_s27 + $0x8] sm:$0xff]  ;;  %v2432_v32 = vld [vmem:[%s7801_s13 + $0x70] sm:$0xff]  ;;  %v2465_v53 = vld [vmem:[%s7801_s13 + $0x178] sm:$0xff] }
 0x27b   :  { %v1681_v33 = vsel %vm1678_vm12, %v1680_v11, %v1676_v6  ;;  %v1736_v3 = vsel %vm1735_vm2, %v6424_v34, %v1732_v14  ;;  %vm1750_vm6 = vmor %vm1748_vm5, %vm1749_vm3  ;;  %vm1753_vm7 = vcmp.eq.f32.partialorder %v1752_v7, 8.507059e+37  ;;  %v2431_v34 = vld [vmem:[%s7801_s13 + $0x68] sm:$0xff]  ;;  %v6578_v35 = vld [vmem:[%s7856_s4] sm:$0xff] }
 0x27c   :  { %v1745_v60 = vsub.f32 1.0, %v1744_v5  ;;  %v1682_v61 = vmul.f32 %v6325_v24, %v1681_v33  ;;  %v1741_v58 = vsel %vm1738_vm4, %v1740_v8, %v1736_v3  ;;  %v1755_v24 = vor.u32 1.1754944e-38, %v1754_v63  ;;  %v2455_v57 = vld [vmem:[%s7801_s13 + $0x128] sm:$0xff]  ;;  %v2429_v11 = vld [vmem:[%s7801_s13 + $0x58] sm:$0xff]  ;;  %v2464_v14 = vld [vmem:[%s7801_s13 + $0x170] sm:$0xff] }
 0x27d   :  { %v1742_v19 = vmul.f32 %v6322_v22, %v1741_v58  ;;  %v343_v22 = vld [vmem:[%s7855_s27 + $0x30] sm:$0xff]  ;;  %v2422_v5 = vld [vmem:[%s7801_s13 + $0x20] sm:$0xff]  ;;  %v2483_v56 = vld [vmem:[%s7801_s13 + $0x208] sm:$0xff] }
 0x27e   :  { %v1746_v4 = vmul.f32 %v5154_v55, %v1745_v60  ;;  %4910 = vmatmul.msk.f32.vlgmr.msrb.gmra.mxu0 %vm1187_vm1, %v1682_v61  ;;  %2220 = vmatpush.msra.mxu2 %v343_v22  ;;  %v2454_v33 = vld [vmem:[%s7801_s13 + $0x120] sm:$0xff]  ;;  %v2428_v0 = vld [vmem:[%s7801_s13 + $0x50] sm:$0xff]  ;;  %v2463_v59 = vld [vmem:[%s7801_s13 + $0x168] sm:$0xff] }
 0x27f   :  { %2082 = vmatpush.msrb.mxu0 %v337_v15  ;;  %v2421_v60 = vld [vmem:[%s7801_s13 + $0x18] sm:$0xff]  ;;  %v2427_v61 = vld [vmem:[%s7801_s13 + $0x48] sm:$0xff]  ;;  %v2482_v63 = vld [vmem:[%s7801_s13 + $0x200] sm:$0xff] }
 0x280   :  { %v1747_v10 = vadd.f32 %v5154_v55, %v1746_v4  ;;  %4911 = vmatmul.msk.f32.vlgmr.msrb.gmra.mxu1 %vm1187_vm1, %v1697_v9  ;;  %v2462_v3 = vld [vmem:[%s7801_s13 + $0x160] sm:$0xff]  ;;  %v2420_v4 = vld [vmem:[%s7801_s13 + $0x10] sm:$0xff]  ;;  %v2481_v8 = vld [vmem:[%s7801_s13 + $0x1f8] sm:$0xff] }
 0x281   :  { %2105 = vmatpush.msrb.mxu1 %v338_v23  ;;  %v2426_v7 = vld [vmem:[%s7801_s13 + $0x40] sm:$0xff]  ;;  %v2461_v9 = vld [vmem:[%s7801_s13 + $0x158] sm:$0xff]  ;;  %v2479_v13 = vld [vmem:[%s7801_s13 + $0x1e8] sm:$0xff] }
 0x282   :  { %v1751_v12 = vsel %vm1750_vm6, %v5154_v55, %v1747_v10  ;;  %v6636_v10 = vld [vmem:[%s7856_s4 + $0x8] sm:$0xff]  ;;  %v2418_v22 = vld [vmem:[%s7801_s13] sm:$0xff]  ;;  %v2488_v23 = vld [vmem:[%s7801_s13 + $0x230] sm:$0xff] }
 0x283   :  { %v1756_v18 = vsel %vm1753_vm7, %v1755_v24, %v1751_v12  ;;  %v2480_v24 = vld [vmem:[%s7801_s13 + $0x1f0] sm:$0xff]  ;;  %v2447_v15 = vld [vmem:[%s7801_s13 + $0xe8] sm:$0xff] }
 0x284   :  { %v1757_v20 = vmul.f32 %v6331_v29, %v1756_v18  ;;  %v344_v29 = vld [vmem:[%s7855_s27 + $0x38] sm:$0xff]  ;;  %v2419_v18 = vld [vmem:[%s7801_s13 + $0x8] sm:$0xff] }
 0x285   :  { %2243 = vmatpush.msra.mxu3 %v344_v29  ;;  %v2424_v29 = vld [vmem:[%s7801_s13 + $0x30] sm:$0xff] }
 0x286   :  { %4914 = vmatmul.msk.f32.vlgmr.msra.gmra.mxu0 %vm1187_vm1, %v1742_v19  ;;  %v2425_v19 = vld [vmem:[%s7801_s13 + $0x38] sm:$0xff] }
 0x287   :  { %2174 = vmatpush.msra.mxu0 %v341_v27  ;;  %v2452_v27 = vld [vmem:[%s7801_s13 + $0x110] sm:$0xff] }
 0x288   :  { %4915 = vmatmul.msk.f32.vlgmr.msra.gmra.mxu1 %vm1187_vm1, %v1757_v20  ;;  %v2460_v20 = vld [vmem:[%s7801_s13 + $0x150] sm:$0xff] }
 0x289   :  { %2197 = vmatpush.msra.mxu1 %v342_v16  ;;  %v2487_v16 = vld [vmem:[%s7801_s13 + $0x228] sm:$0xff] }
 0x2d9   :  { %v1854_v1 = vpop.f32.mrf.mxu2 }
 0x2da   :  { %4920 = vmatmul.msk.f32.vlgmr.msrb.gmra.mxu2 %vm1187_vm1, %v1854_v1  ;;  %v2478_v1 = vld [vmem:[%s7801_s13 + $0x1e0] sm:$0xff] }
 0x2db   :  { %2312 = vmatpush.msrb.mxu2 %v347_v39  ;;  %v2453_v39 = vld [vmem:[%s7801_s13 + $0x118] sm:$0xff] }
 0x2e1   :  { %v1877_v26 = vpop.f32.mrf.mxu3 }
 0x2e2   :  { %4921 = vmatmul.msk.f32.vlgmr.msrb.gmra.mxu3 %vm1187_vm1, %v1877_v26  ;;  %v2446_v26 = vld [vmem:[%s7801_s13 + $0xe0] sm:$0xff] }
 0x2e3   :  { %2335 = vmatpush.msrb.mxu3 %v348_v25  ;;  %v2507_v25 = vld [vmem:[%s7802_s14 + $0x88] sm:$0xff] }
 0x2e5   :  { %v1946_v30 = vpop.f32.mrf.mxu2 }
 0x2e6   :  { %4924 = vmatmul.msk.f32.vlgmr.msra.gmra.mxu2 %vm1187_vm1, %v1946_v30  ;;  %v2445_v30 = vld [vmem:[%s7801_s13 + $0xd8] sm:$0xff] }
 0x2e7   :  { %2777 = vmatpush.msra.mxu2 %v2435_v17  ;;  %v2506_v17 = vld [vmem:[%s7802_s14 + $0x80] sm:$0xff] }
 0x2e9   :  { %2778 = vmatpush.msra.mxu2 %v2434_v31  ;;  %v2451_v31 = vld [vmem:[%s7801_s13 + $0x108] sm:$0xff] }
 0x2eb   :  { %2779 = vmatpush.msra.mxu2 %v2433_v45  ;;  %v2486_v45 = vld [vmem:[%s7801_s13 + $0x220] sm:$0xff] }
 0x2ed   :  { %2780 = vmatpush.msra.mxu2 %v2432_v32  ;;  %v1969_v2 = vpop.f32.mrf.mxu3  ;;  %v2505_v32 = vld [vmem:[%s7802_s14 + $0x78] sm:$0xff] }
 0x2ee   :  { %4925 = vmatmul.msk.f32.vlgmr.msra.gmra.mxu3 %vm1187_vm1, %v1969_v2  ;;  %v2504_v2 = vld [vmem:[%s7802_s14 + $0x70] sm:$0xff] }
 0x2ef   :  { %2781 = vmatpush.msra.mxu2 %v2431_v34  ;;  %2797 = vmatpush.msra.mxu3 %v2441_v28  ;;  %v1808_v38 = vpop.f32.mrf.mxu0  ;;  %v2444_v34 = vld [vmem:[%s7801_s13 + $0xd0] sm:$0xff]  ;;  %v2450_v28 = vld [vmem:[%s7801_s13 + $0x100] sm:$0xff] }
 0x2f0   :  { %4918 = vmatmul.msk.f32.vlgmr.msrb.gmra.mxu0 %vm1187_vm1, %v1808_v38  ;;  %v2484_v38 = vld [vmem:[%s7801_s13 + $0x210] sm:$0xff] }
 0x2f1   :  { %2782 = vmatpush.msra.mxu2 %v2430_v36  ;;  %2798 = vmatpush.msra.mxu3 %v2440_v62  ;;  %v2485_v36 = vld [vmem:[%s7801_s13 + $0x218] sm:$0xff]  ;;  %v2443_v62 = vld [vmem:[%s7801_s13 + $0xc8] sm:$0xff] }
 0x2f2   :  { %2266 = vmatpush.msrb.mxu0 %v345_v37  ;;  %v2038_v44 = vpop.f32.mrf.mxu2  ;;  %v2449_v37 = vld [vmem:[%s7801_s13 + $0xf8] sm:$0xff] }
 0x2f3   :  { %2799 = vmatpush.msra.mxu3 %v2439_v40  ;;  %4928 = vmatmul.msk.f32.vlgmr.msrb.gmra.mxu2 %vm1187_vm1, %v2038_v44  ;;  %v2503_v40 = vld [vmem:[%s7802_s14 + $0x68] sm:$0xff] }
 0x2f4   :  { %2857 = vmatpush.msrb.mxu2 %v2459_v42  ;;  %v2442_v42 = vld [vmem:[%s7801_s13 + $0xc0] sm:$0xff]  ;;  %v2471_v44 = vld [vmem:[%s7801_s13 + $0x1a8] sm:$0xff] }
 0x2f5   :  { %v1831_v46 = vpop.f32.mrf.mxu1  ;;  %2800 = vmatpush.msra.mxu3 %v2438_v41  ;;  %v2513_v41 = vld [vmem:[%s7802_s14 + $0xb8] sm:$0xff] }
 0x2f6   :  { %4919 = vmatmul.msk.f32.vlgmr.msrb.gmra.mxu1 %vm1187_vm1, %v1831_v46  ;;  %2858 = vmatpush.msrb.mxu2 %v2458_v48  ;;  %v2477_v46 = vld [vmem:[%s7801_s13 + $0x1d8] sm:$0xff]  ;;  %v2512_v48 = vld [vmem:[%s7802_s14 + $0xb0] sm:$0xff] }
 0x2f7   :  { %2801 = vmatpush.msra.mxu3 %v2437_v43  ;;  %2289 = vmatpush.msrb.mxu1 %v346_v47  ;;  %v2448_v43 = vld [vmem:[%s7801_s13 + $0xf0] sm:$0xff]  ;;  %v2502_v47 = vld [vmem:[%s7802_s14 + $0x60] sm:$0xff] }
 0x2f8   :  { %2859 = vmatpush.msrb.mxu2 %v2457_v49  ;;  %v2470_v49 = vld [vmem:[%s7801_s13 + $0x1a0] sm:$0xff] }
 0x2f9   :  { %2802 = vmatpush.msra.mxu3 %v2436_v50  ;;  %v2531_v50 = vld [vmem:[%s7802_s14 + $0x148] sm:$0xff] }
 0x2fa   :  { %v2061_v55 = vpop.f32.mrf.mxu3  ;;  %2860 = vmatpush.msrb.mxu2 %v2456_v52  ;;  %v2511_v52 = vld [vmem:[%s7802_s14 + $0xa8] sm:$0xff] }
 0x2fb   :  { %v1900_v54 = vpop.f32.mrf.mxu0  ;;  %4929 = vmatmul.msk.f32.vlgmr.msrb.gmra.mxu3 %vm1187_vm1, %v2061_v55  ;;  %4932 = vmatmul.msk.f32.vlgmr.msra.gmra.mxu2 %vm388_vm0, %v6578_v35  ;;  %v2475_v55 = vld [vmem:[%s7801_s13 + $0x1c8] sm:$0xff] }
 0x2fc   :  { %4922 = vmatmul.msk.f32.vlgmr.msra.gmra.mxu0 %vm1187_vm1, %v1900_v54  ;;  %2877 = vmatpush.msrb.mxu3 %v2465_v53  ;;  %v2530_v53 = vld [vmem:[%s7802_s14 + $0x140] sm:$0xff]  ;;  %v2469_v54 = vld [vmem:[%s7801_s13 + $0x198] sm:$0xff] }
 0x2fd   :  { %2734 = vmatpush.msra.mxu0 %v2423_v51  ;;  %v1923_v6 = vpop.f32.mrf.mxu1  ;;  %2861 = vmatpush.msrb.mxu2 %v2455_v57  ;;  %v2476_v51 = vld [vmem:[%s7801_s13 + $0x1d0] sm:$0xff]  ;;  %v2510_v57 = vld [vmem:[%s7802_s14 + $0xa0] sm:$0xff] }
 0x2fe   :  { %4923 = vmatmul.msk.f32.vlgmr.msra.gmra.mxu1 %vm1187_vm1, %v1923_v6  ;;  %2878 = vmatpush.msrb.mxu3 %v2464_v14  ;;  %v2468_v6 = vld [vmem:[%s7801_s13 + $0x190] sm:$0xff]  ;;  %v2474_v14 = vld [vmem:[%s7801_s13 + $0x1c0] sm:$0xff] }
 0x2ff   :  { %2757 = vmatpush.msra.mxu1 %v2429_v11  ;;  %2735 = vmatpush.msra.mxu0 %v2422_v5  ;;  %v2529_v11 = vld [vmem:[%s7802_s14 + $0x138] sm:$0xff] }
 0x300   :  { %2862 = vmatpush.msrb.mxu2 %v2454_v33  ;;  %2879 = vmatpush.msrb.mxu3 %v2463_v59  ;;  %v2509_v5 = vld [vmem:[%s7802_s14 + $0x98] sm:$0xff]  ;;  %v2528_v33 = vld [vmem:[%s7802_s14 + $0x130] sm:$0xff] }
 0x301   :  { %2758 = vmatpush.msra.mxu1 %v2428_v0  ;;  %2736 = vmatpush.msra.mxu0 %v2421_v60  ;;  %v2467_v0 = vld [vmem:[%s7801_s13 + $0x188] sm:$0xff]  ;;  %v2508_v59 = vld [vmem:[%s7802_s14 + $0x90] sm:$0xff] }
 0x302   :  { %2937 = vmatpush.msra.mxu2 %v2483_v56  ;;  %2880 = vmatpush.msrb.mxu3 %v2462_v3  ;;  %v2473_v56 = vld [vmem:[%s7801_s13 + $0x1b8] sm:$0xff]  ;;  %v2527_v60 = vld [vmem:[%s7802_s14 + $0x128] sm:$0xff]  ;;  %v2472_v3 = vld [vmem:[%s7801_s13 + $0x1b0] sm:$0xff] }
 0x303   :  { %2759 = vmatpush.msra.mxu1 %v2427_v61  ;;  %2737 = vmatpush.msra.mxu0 %v2420_v4  ;;  %v1992_v58 = vpop.f32.mrf.mxu0  ;;  %v2537_v61 = vld [vmem:[%s7802_s14 + $0x178] sm:$0xff]  ;;  %v2495_v4 = vld [vmem:[%s7802_s14 + $0x28] sm:$0xff] }
 0x304   :  { %2938 = vmatpush.msra.mxu2 %v2482_v63  ;;  %2881 = vmatpush.msrb.mxu3 %v2461_v9  ;;  %v2466_v63 = vld [vmem:[%s7801_s13 + $0x180] sm:$0xff]  ;;  %v2536_v9 = vld [vmem:[%s7802_s14 + $0x170] sm:$0xff] }
 0x305   :  { %2760 = vmatpush.msra.mxu1 %v2426_v7  ;;  %v2015_v12 = vpop.f32.mrf.mxu1  ;;  %4933 = vmatmul.msk.f32.vlgmr.msra.gmra.mxu3 %vm388_vm0, %v6636_v10  ;;  %v2501_v7 = vld [vmem:[%s7802_s14 + $0x58] sm:$0xff] }
 0x306   :  { %2939 = vmatpush.msra.mxu2 %v2481_v8  ;;  %4926 = vmatmul.msk.f32.vlgmr.msrb.gmra.mxu0 %vm1187_vm1, %v1992_v58  ;;  %v2526_v8 = vld [vmem:[%s7802_s14 + $0x120] sm:$0xff]  ;;  %v2555_v58 = vld [vmem:[%s7802_s14 + $0x208] sm:$0xff] }
 0x307   :  { %4936 = vmatmul.msk.f32.vlgmr.msrb.gmra.mxu2 %vm388_vm0, %v6578_v35  ;;  %4927 = vmatmul.msk.f32.vlgmr.msrb.gmra.mxu1 %vm1187_vm1, %v2015_v12  ;;  %v2500_v12 = vld [vmem:[%s7802_s14 + $0x50] sm:$0xff] }
 0x308   :  { %2940 = vmatpush.msra.mxu2 %v2480_v24  ;;  %2738 = vmatpush.msra.mxu0 %v2419_v18  ;;  %v2494_v24 = vld [vmem:[%s7802_s14 + $0x20] sm:$0xff]  ;;  %v2535_v18 = vld [vmem:[%s7802_s14 + $0x168] sm:$0xff] }
 0x309   :  { %2761 = vmatpush.msra.mxu1 %v2425_v19  ;;  %2882 = vmatpush.msrb.mxu3 %v2460_v20  ;;  %v2554_v19 = vld [vmem:[%s7802_s14 + $0x200] sm:$0xff]  ;;  %v2493_v20 = vld [vmem:[%s7802_s14 + $0x18] sm:$0xff] }
 0x30a   :  { %2941 = vmatpush.msra.mxu2 %v2479_v13  ;;  %2739 = vmatpush.msra.mxu0 %v2418_v22  ;;  %v2499_v13 = vld [vmem:[%s7802_s14 + $0x48] sm:$0xff]  ;;  %v2553_v22 = vld [vmem:[%s7802_s14 + $0x1f8] sm:$0xff] }
 0x30b   :  { %2957 = vmatpush.msra.mxu3 %v2489_v21  ;;  %2762 = vmatpush.msra.mxu1 %v2424_v29  ;;  %v2534_v21 = vld [vmem:[%s7802_s14 + $0x160] sm:$0xff]  ;;  %v2492_v29 = vld [vmem:[%s7802_s14 + $0x10] sm:$0xff] }
 0x30c   :  { %2817 = vmatpush.msrb.mxu0 %v2447_v15  ;;  %2942 = vmatpush.msra.mxu2 %v2478_v1  ;;  %v2498_v15 = vld [vmem:[%s7802_s14 + $0x40] sm:$0xff]  ;;  %v2552_v1 = vld [vmem:[%s7802_s14 + $0x1f0] sm:$0xff] }
 0x30d   :  { %2837 = vmatpush.msrb.mxu1 %v2453_v39  ;;  %2958 = vmatpush.msra.mxu3 %v2488_v23  ;;  %v2533_v39 = vld [vmem:[%s7802_s14 + $0x158] sm:$0xff]  ;;  %v2491_v23 = vld [vmem:[%s7802_s14 + $0x8] sm:$0xff] }
 0x30e   :  { %3053 = vmatpush.msrb.mxu2 %v2507_v25  ;;  %2818 = vmatpush.msrb.mxu0 %v2446_v26  ;;  %v2497_v25 = vld [vmem:[%s7802_s14 + $0x38] sm:$0xff]  ;;  %v2532_v26 = vld [vmem:[%s7802_s14 + $0x150] sm:$0xff] }
 0x30f   :  { %2838 = vmatpush.msrb.mxu1 %v2452_v27  ;;  %2959 = vmatpush.msra.mxu3 %v2487_v16  ;;  %v2551_v27 = vld [vmem:[%s7802_s14 + $0x1e8] sm:$0xff]  ;;  %v2561_v16 = vld [vmem:[%s7802_s14 + $0x238] sm:$0xff] }
 0x310   :  { %3054 = vmatpush.msrb.mxu2 %v2506_v17  ;;  %2819 = vmatpush.msrb.mxu0 %v2445_v30  ;;  %v2490_v17 = vld [vmem:[%s7802_s14] sm:$0xff]  ;;  %v2496_v30 = vld [vmem:[%s7802_s14 + $0x30] sm:$0xff] }
 0x311   :  { %2839 = vmatpush.msrb.mxu1 %v2451_v31  ;;  %4937 = vmatmul.msk.f32.vlgmr.msrb.gmra.mxu3 %vm388_vm0, %v6636_v10  ;;  %v2519_v31 = vld [vmem:[%s7802_s14 + $0xe8] sm:$0xff] }
 0x312   :  { %4940 = vmatmul.msk.f32.vlgmr.msra.gmra.mxu2 %vm388_vm0, %v6578_v35  ;;  %2960 = vmatpush.msra.mxu3 %v2486_v45  ;;  %v2525_v45 = vld [vmem:[%s7802_s14 + $0x118] sm:$0xff] }
 0x313   :  { %3055 = vmatpush.msrb.mxu2 %v2505_v32  ;;  %2820 = vmatpush.msrb.mxu0 %v2444_v34  ;;  %v2550_v32 = vld [vmem:[%s7802_s14 + $0x1e0] sm:$0xff]  ;;  %v2560_v34 = vld [vmem:[%s7802_s14 + $0x230] sm:$0xff] }
 0x314   :  { %2840 = vmatpush.msrb.mxu1 %v2450_v28  ;;  %2961 = vmatpush.msra.mxu3 %v2485_v36  ;;  %v2518_v28 = vld [vmem:[%s7802_s14 + $0xe0] sm:$0xff]  ;;  %v2524_v36 = vld [vmem:[%s7802_s14 + $0x110] sm:$0xff] }
 0x315   :  { %3056 = vmatpush.msrb.mxu2 %v2504_v2  ;;  %2821 = vmatpush.msrb.mxu0 %v2443_v62  ;;  %v2559_v2 = vld [vmem:[%s7802_s14 + $0x228] sm:$0xff]  ;;  %v2517_v62 = vld [vmem:[%s7802_s14 + $0xd8] sm:$0xff] }
 0x316   :  { %2841 = vmatpush.msrb.mxu1 %v2449_v37  ;;  %2962 = vmatpush.msra.mxu3 %v2484_v38  ;;  %v2523_v37 = vld [vmem:[%s7802_s14 + $0x108] sm:$0xff]  ;;  %v2558_v38 = vld [vmem:[%s7802_s14 + $0x220] sm:$0xff] }
 0x317   :  { %4930 = vmatmul.msk.f32.vlgmr.msra.gmra.mxu0 %vm388_vm0, %v6578_v35  ;;  %4931 = vmatmul.msk.f32.vlgmr.msra.gmra.mxu1 %vm388_vm0, %v6636_v10 }
 0x318   :  { %3057 = vmatpush.msrb.mxu2 %v2503_v40  ;;  %3073 = vmatpush.msrb.mxu3 %v2513_v41  ;;  %v2516_v40 = vld [vmem:[%s7802_s14 + $0xd0] sm:$0xff]  ;;  %v2522_v41 = vld [vmem:[%s7802_s14 + $0x100] sm:$0xff] }
 0x319   :  { %2822 = vmatpush.msrb.mxu0 %v2442_v42  ;;  %2842 = vmatpush.msrb.mxu1 %v2448_v43  ;;  %v2557_v42 = vld [vmem:[%s7802_s14 + $0x218] sm:$0xff]  ;;  %v2515_v43 = vld [vmem:[%s7802_s14 + $0xc8] sm:$0xff] }
 0x31a   :  { %3058 = vmatpush.msrb.mxu2 %v2502_v47  ;;  %3074 = vmatpush.msrb.mxu3 %v2512_v48  ;;  %v2514_v47 = vld [vmem:[%s7802_s14 + $0xc0] sm:$0xff]  ;;  %v2520_v48 = vld [vmem:[%s7802_s14 + $0xf0] sm:$0xff] }
 0x31b   :  { %2897 = vmatpush.msra.mxu0 %v2471_v44  ;;  %2917 = vmatpush.msra.mxu1 %v2477_v46  ;;  %v2521_v44 = vld [vmem:[%s7802_s14 + $0xf8] sm:$0xff]  ;;  %v2556_v46 = vld [vmem:[%s7802_s14 + $0x210] sm:$0xff] }
 0x31c   :  { %4941 = vmatmul.msk.f32.vlgmr.msra.gmra.mxu3 %vm388_vm0, %v6636_v10  ;;  %4944 = vmatmul.msk.f32.vlgmr.msrb.gmra.mxu2 %vm388_vm0, %v6578_v35 }
 0x31d   :  { %3133 = vmatpush.msra.mxu2 %v2531_v50  ;;  %2898 = vmatpush.msra.mxu0 %v2470_v49  ;;  %v2543_v50 = vld [vmem:[%s7802_s14 + $0x1a8] sm:$0xff]  ;;  %v2549_v49 = vld [vmem:[%s7802_s14 + $0x1d8] sm:$0xff] }
 0x31e   :  { %2918 = vmatpush.msra.mxu1 %v2476_v51  ;;  %3075 = vmatpush.msrb.mxu3 %v2511_v52  ;;  %v2542_v51 = vld [vmem:[%s7802_s14 + $0x1a0] sm:$0xff]  ;;  %v2548_v52 = vld [vmem:[%s7802_s14 + $0x1d0] sm:$0xff] }
 0x31f   :  { %3134 = vmatpush.msra.mxu2 %v2530_v53  ;;  %2899 = vmatpush.msra.mxu0 %v2469_v54  ;;  %v2541_v53 = vld [vmem:[%s7802_s14 + $0x198] sm:$0xff]  ;;  %v2547_v54 = vld [vmem:[%s7802_s14 + $0x1c8] sm:$0xff] }
 0x320   :  { %2919 = vmatpush.msra.mxu1 %v2475_v55  ;;  %3076 = vmatpush.msrb.mxu3 %v2510_v57  ;;  %v2540_v55 = vld [vmem:[%s7802_s14 + $0x190] sm:$0xff]  ;;  %v2546_v57 = vld [vmem:[%s7802_s14 + $0x1c0] sm:$0xff] }
 0x321   :  { %3135 = vmatpush.msra.mxu2 %v2529_v11  ;;  %4934 = vmatmul.msk.f32.vlgmr.msrb.gmra.mxu0 %vm388_vm0, %v6578_v35  ;;  %v2539_v11 = vld [vmem:[%s7802_s14 + $0x188] sm:$0xff] }
 0x322   :  { %4935 = vmatmul.msk.f32.vlgmr.msrb.gmra.mxu1 %vm388_vm0, %v6636_v10  ;;  %2900 = vmatpush.msra.mxu0 %v2468_v6  ;;  %v2545_v6 = vld [vmem:[%s7802_s14 + $0x1b8] sm:$0xff] }
 0x323   :  { %2920 = vmatpush.msra.mxu1 %v2474_v14  ;;  %3077 = vmatpush.msrb.mxu3 %v2509_v5  ;;  %v2538_v14 = vld [vmem:[%s7802_s14 + $0x180] sm:$0xff]  ;;  %v2544_v5 = vld [vmem:[%s7802_s14 + $0x1b0] sm:$0xff] }
 0x324   :  { %3136 = vmatpush.msra.mxu2 %v2528_v33  ;;  %2901 = vmatpush.msra.mxu0 %v2467_v0  ;;  %v2579_v33 = vld [vmem:[%s7803_s15 + $0x88] sm:$0xff]  ;;  %v2578_v0 = vld [vmem:[%s7803_s15 + $0x80] sm:$0xff] }
 0x325   :  { %2921 = vmatpush.msra.mxu1 %v2473_v56  ;;  %3078 = vmatpush.msrb.mxu3 %v2508_v59  ;;  %v2577_v56 = vld [vmem:[%s7803_s15 + $0x78] sm:$0xff]  ;;  %v2576_v59 = vld [vmem:[%s7803_s15 + $0x70] sm:$0xff] }
 0x326   :  { %4945 = vmatmul.msk.f32.vlgmr.msrb.gmra.mxu3 %vm388_vm0, %v6636_v10  ;;  %3137 = vmatpush.msra.mxu2 %v2527_v60  ;;  %v2585_v60 = vld [vmem:[%s7803_s15 + $0xb8] sm:$0xff] }
 0x327   :  { %3153 = vmatpush.msra.mxu3 %v2537_v61  ;;  %2902 = vmatpush.msra.mxu0 %v2466_v63  ;;  %v2575_v61 = vld [vmem:[%s7803_s15 + $0x68] sm:$0xff]  ;;  %v2574_v63 = vld [vmem:[%s7803_s15 + $0x60] sm:$0xff] }
 0x328   :  { %2922 = vmatpush.msra.mxu1 %v2472_v3  ;;  %3138 = vmatpush.msra.mxu2 %v2526_v8  ;;  %v2584_v3 = vld [vmem:[%s7803_s15 + $0xb0] sm:$0xff]  ;;  %v2602_v8 = vld [vmem:[%s7803_s15 + $0x140] sm:$0xff] }
 0x329   :  { %3013 = vmatpush.msrb.mxu0 %v2495_v4  ;;  %3154 = vmatpush.msra.mxu3 %v2536_v9  ;;  %v2603_v4 = vld [vmem:[%s7803_s15 + $0x148] sm:$0xff] }
 0x32a   :  { %3033 = vmatpush.msrb.mxu1 %v2501_v7  ;;  %4948 = vmatmul.msk.f32.vlgmr.msra.gmra.mxu2 %vm388_vm0, %v6578_v35  ;;  %v2583_v7 = vld [vmem:[%s7803_s15 + $0xa8] sm:$0xff] }
 0x32b   :  { %3213 = vmatpush.msrb.mxu2 %v2555_v58  ;;  %3014 = vmatpush.msrb.mxu0 %v2494_v24  ;;  %v2582_v58 = vld [vmem:[%s7803_s15 + $0xa0] sm:$0xff]  ;;  %v2567_v24 = vld [vmem:[%s7803_s15 + $0x28] sm:$0xff] }
 0x32c   :  { %3034 = vmatpush.msrb.mxu1 %v2500_v12  ;;  %3155 = vmatpush.msra.mxu3 %v2535_v18  ;;  %v2573_v12 = vld [vmem:[%s7803_s15 + $0x58] sm:$0xff] }
 0x32d   :  { %4938 = vmatmul.msk.f32.vlgmr.msra.gmra.mxu0 %vm388_vm0, %v6578_v35  ;;  %4939 = vmatmul.msk.f32.vlgmr.msra.gmra.mxu1 %vm388_vm0, %v6636_v10  ;;  %v2601_v18 = vld [vmem:[%s7803_s15 + $0x138] sm:$0xff] }
 0x32e   :  { %3214 = vmatpush.msrb.mxu2 %v2554_v19  ;;  %3015 = vmatpush.msrb.mxu0 %v2493_v20  ;;  %v2581_v19 = vld [vmem:[%s7803_s15 + $0x98] sm:$0xff]  ;;  %v2566_v20 = vld [vmem:[%s7803_s15 + $0x20] sm:$0xff] }
 0x32f   :  { %3035 = vmatpush.msrb.mxu1 %v2499_v13  ;;  %3156 = vmatpush.msra.mxu3 %v2534_v21  ;;  %v2572_v13 = vld [vmem:[%s7803_s15 + $0x50] sm:$0xff] }
 0x330   :  { %3215 = vmatpush.msrb.mxu2 %v2553_v22  ;;  %3016 = vmatpush.msrb.mxu0 %v2492_v29  ;;  %v2600_v21 = vld [vmem:[%s7803_s15 + $0x130] sm:$0xff]  ;;  %v2565_v29 = vld [vmem:[%s7803_s15 + $0x18] sm:$0xff] }
 0x331   :  { %3036 = vmatpush.msrb.mxu1 %v2498_v15  ;;  %3157 = vmatpush.msra.mxu3 %v2533_v39  ;;  %v2580_v22 = vld [vmem:[%s7803_s15 + $0x90] sm:$0xff]  ;;  %v2571_v39 = vld [vmem:[%s7803_s15 + $0x48] sm:$0xff] }
 0x332   :  { %3216 = vmatpush.msrb.mxu2 %v2552_v1  ;;  %3017 = vmatpush.msrb.mxu0 %v2491_v23  ;;  %v2599_v1 = vld [vmem:[%s7803_s15 + $0x128] sm:$0xff]  ;;  %v2609_v23 = vld [vmem:[%s7803_s15 + $0x178] sm:$0xff] }
 0x333   :  { %3037 = vmatpush.msrb.mxu1 %v2497_v25  ;;  %3158 = vmatpush.msra.mxu3 %v2532_v26  ;;  %v2564_v26 = vld [vmem:[%s7803_s15 + $0x10] sm:$0xff] }
 0x334   :  { %4949 = vmatmul.msk.f32.vlgmr.msra.gmra.mxu3 %vm388_vm0, %v6636_v10  ;;  %3217 = vmatpush.msrb.mxu2 %v2551_v27  ;;  %v2570_v27 = vld [vmem:[%s7803_s15 + $0x40] sm:$0xff] }
 0x335   :  { %3233 = vmatpush.msrb.mxu3 %v2561_v16  ;;  %3018 = vmatpush.msrb.mxu0 %v2490_v17  ;;  %v2598_v16 = vld [vmem:[%s7803_s15 + $0x120] sm:$0xff]  ;;  %v2608_v17 = vld [vmem:[%s7803_s15 + $0x170] sm:$0xff] }
 0x336   :  { %3038 = vmatpush.msrb.mxu1 %v2496_v30  ;;  %4942 = vmatmul.msk.f32.vlgmr.msrb.gmra.mxu0 %vm388_vm0, %v6578_v35  ;;  %v2627_v30 = vld [vmem:[%s7803_s15 + $0x208] sm:$0xff] }
 0x337   :  { %4943 = vmatmul.msk.f32.vlgmr.msrb.gmra.mxu1 %vm388_vm0, %v6636_v10  ;;  %3093 = vmatpush.msra.mxu0 %v2519_v31  ;;  %v2563_v31 = vld [vmem:[%s7803_s15 + $0x8] sm:$0xff] }
 0x338   :  { %3113 = vmatpush.msra.mxu1 %v2525_v45  ;;  %3218 = vmatpush.msrb.mxu2 %v2550_v32  ;;  %v2569_v45 = vld [vmem:[%s7803_s15 + $0x38] sm:$0xff] }
 0x339   :  { %3234 = vmatpush.msrb.mxu3 %v2560_v34  ;;  %4952 = vmatmul.msk.f32.vlgmr.msrb.gmra.mxu2 %vm388_vm0, %v6578_v35  ;;  %v2607_v34 = vld [vmem:[%s7803_s15 + $0x168] sm:$0xff] }
 0x33a   :  { %3094 = vmatpush.msra.mxu0 %v2518_v28  ;;  %3114 = vmatpush.msra.mxu1 %v2524_v36  ;;  %v2626_v28 = vld [vmem:[%s7803_s15 + $0x200] sm:$0xff] }
 0x33b   :  { %3235 = vmatpush.msrb.mxu3 %v2559_v2  ;;  %3329 = vmatpush.msra.mxu2 %v2579_v33  ;;  %v2562_v2 = vld [vmem:[%s7803_s15] sm:$0xff] }
 0x33c   :  { %3095 = vmatpush.msra.mxu0 %v2517_v62  ;;  %3115 = vmatpush.msra.mxu1 %v2523_v37  ;;  %v2568_v62 = vld [vmem:[%s7803_s15 + $0x30] sm:$0xff] }
 0x33d   :  { %3236 = vmatpush.msrb.mxu3 %v2558_v38  ;;  %3330 = vmatpush.msra.mxu2 %v2578_v0  ;;  %v2594_v0 = vld [vmem:[%s7803_s15 + $0x100] sm:$0xff] }
 0x33e   :  { %3096 = vmatpush.msra.mxu0 %v2516_v40  ;;  %3116 = vmatpush.msra.mxu1 %v2522_v41  ;;  %v2606_v40 = vld [vmem:[%s7803_s15 + $0x160] sm:$0xff]  ;;  %v2591_v41 = vld [vmem:[%s7803_s15 + $0xe8] sm:$0xff] }
 0x33f   :  { %3237 = vmatpush.msrb.mxu3 %v2557_v42  ;;  %3331 = vmatpush.msra.mxu2 %v2577_v56  ;;  %v2597_v42 = vld [vmem:[%s7803_s15 + $0x118] sm:$0xff]  ;;  %v2622_v56 = vld [vmem:[%s7803_s15 + $0x1e0] sm:$0xff] }
 0x340   :  { %3097 = vmatpush.msra.mxu0 %v2515_v43  ;;  %3117 = vmatpush.msra.mxu1 %v2521_v44  ;;  %v2625_v43 = vld [vmem:[%s7803_s15 + $0x1f8] sm:$0xff] }
 0x341   :  { %3238 = vmatpush.msrb.mxu3 %v2556_v46  ;;  %3332 = vmatpush.msra.mxu2 %v2576_v59  ;;  %v2605_v46 = vld [vmem:[%s7803_s15 + $0x158] sm:$0xff]  ;;  %v2632_v59 = vld [vmem:[%s7803_s15 + $0x230] sm:$0xff] }
 0x342   :  { %4953 = vmatmul.msk.f32.vlgmr.msrb.gmra.mxu3 %vm388_vm0, %v6636_v10  ;;  %3098 = vmatpush.msra.mxu0 %v2514_v47  ;;  %v2590_v47 = vld [vmem:[%s7803_s15 + $0xe0] sm:$0xff] }
 0x343   :  { %3118 = vmatpush.msra.mxu1 %v2520_v48  ;;  %4946 = vmatmul.msk.f32.vlgmr.msra.gmra.mxu0 %vm388_vm0, %v6578_v35  ;;  %v2596_v48 = vld [vmem:[%s7803_s15 + $0x110] sm:$0xff] }
 0x344   :  { %4947 = vmatmul.msk.f32.vlgmr.msra.gmra.mxu1 %vm388_vm0, %v6636_v10  ;;  %3173 = vmatpush.msrb.mxu0 %v2543_v50 }
 0x345   :  { %3193 = vmatpush.msrb.mxu1 %v2549_v49  ;;  %3349 = vmatpush.msra.mxu3 %v2585_v60 }
 0x346   :  { %3174 = vmatpush.msrb.mxu0 %v2542_v51  ;;  %3333 = vmatpush.msra.mxu2 %v2575_v61  ;;  %v2624_v51 = vld [vmem:[%s7803_s15 + $0x1f0] sm:$0xff]  ;;  %v2587_v61 = vld [vmem:[%s7803_s15 + $0xc8] sm:$0xff] }
 0x347   :  { %3194 = vmatpush.msrb.mxu1 %v2548_v52  ;;  %3350 = vmatpush.msra.mxu3 %v2584_v3  ;;  %v2604_v52 = vld [vmem:[%s7803_s15 + $0x150] sm:$0xff]  ;;  %v2631_v3 = vld [vmem:[%s7803_s15 + $0x228] sm:$0xff] }
 0x348   :  { %3175 = vmatpush.msrb.mxu0 %v2541_v53  ;;  %3334 = vmatpush.msra.mxu2 %v2574_v63  ;;  %v2589_v53 = vld [vmem:[%s7803_s15 + $0xd8] sm:$0xff] }
 0x349   :  { %3195 = vmatpush.msrb.mxu1 %v2547_v54  ;;  %3351 = vmatpush.msra.mxu3 %v2583_v7  ;;  %v2593_v63 = vld [vmem:[%s7803_s15 + $0xf8] sm:$0xff]  ;;  %v2586_v7 = vld [vmem:[%s7803_s15 + $0xc0] sm:$0xff] }
 0x34a   :  { %3176 = vmatpush.msrb.mxu0 %v2540_v55  ;;  %3409 = vmatpush.msrb.mxu2 %v2603_v4  ;;  %v2595_v55 = vld [vmem:[%s7803_s15 + $0x108] sm:$0xff] }
 0x34b   :  { %3196 = vmatpush.msrb.mxu1 %v2546_v57  ;;  %4956 = vmatmul.msk.f32.vlgmr.msra.gmra.mxu2 %vm388_vm0, %v6578_v35  ;;  %v2623_v57 = vld [vmem:[%s7803_s15 + $0x1e8] sm:$0xff] }
 0x34c   :  { %3177 = vmatpush.msrb.mxu0 %v2539_v11  ;;  %3410 = vmatpush.msrb.mxu2 %v2602_v8  ;;  %v2633_v11 = vld [vmem:[%s7803_s15 + $0x238] sm:$0xff] }
 0x34d   :  { %3197 = vmatpush.msrb.mxu1 %v2545_v6  ;;  %3352 = vmatpush.msra.mxu3 %v2582_v58  ;;  %v2630_v58 = vld [vmem:[%s7803_s15 + $0x220] sm:$0xff] }
 0x34e   :  { %3178 = vmatpush.msrb.mxu0 %v2538_v14  ;;  %3411 = vmatpush.msrb.mxu2 %v2601_v18  ;;  %v2629_v18 = vld [vmem:[%s7803_s15 + $0x218] sm:$0xff] }
 0x34f   :  { %3198 = vmatpush.msrb.mxu1 %v2544_v5  ;;  %4950 = vmatmul.msk.f32.vlgmr.msrb.gmra.mxu0 %vm388_vm0, %v6578_v35  ;;  %v2588_v5 = vld [vmem:[%s7803_s15 + $0xd0] sm:$0xff] }
 0x350   :  { %4951 = vmatmul.msk.f32.vlgmr.msrb.gmra.mxu1 %vm388_vm0, %v6636_v10  ;;  %3289 = vmatpush.msra.mxu0 %v2567_v24  ;;  %v2615_v24 = vld [vmem:[%s7803_s15 + $0x1a8] sm:$0xff] }
 0x351   :  { %3309 = vmatpush.msra.mxu1 %v2573_v12  ;;  %3353 = vmatpush.msra.mxu3 %v2581_v19  ;;  %v2621_v12 = vld [vmem:[%s7803_s15 + $0x1d8] sm:$0xff]  ;;  %v2614_v19 = vld [vmem:[%s7803_s15 + $0x1a0] sm:$0xff] }
 0x352   :  { %3290 = vmatpush.msra.mxu0 %v2566_v20  ;;  %3412 = vmatpush.msrb.mxu2 %v2600_v21 }
 0x353   :  { %3310 = vmatpush.msra.mxu1 %v2572_v13  ;;  %3354 = vmatpush.msra.mxu3 %v2580_v22  ;;  %v2620_v13 = vld [vmem:[%s7803_s15 + $0x1d0] sm:$0xff] }
 0x354   :  { %3291 = vmatpush.msra.mxu0 %v2565_v29  ;;  %3413 = vmatpush.msrb.mxu2 %v2599_v1  ;;  %v2628_v29 = vld [vmem:[%s7803_s15 + $0x210] sm:$0xff]  ;;  %v2619_v1 = vld [vmem:[%s7803_s15 + $0x1c8] sm:$0xff] }
 0x355   :  { %3311 = vmatpush.msra.mxu1 %v2571_v39  ;;  %3429 = vmatpush.msrb.mxu3 %v2609_v23  ;;  %v2613_v39 = vld [vmem:[%s7803_s15 + $0x198] sm:$0xff] }
 0x356   :  { %3292 = vmatpush.msra.mxu0 %v2564_v26  ;;  %3414 = vmatpush.msrb.mxu2 %v2598_v16 }
 0x357   :  { %3312 = vmatpush.msra.mxu1 %v2570_v27  ;;  %3430 = vmatpush.msrb.mxu3 %v2608_v17  ;;  %v2612_v27 = vld [vmem:[%s7803_s15 + $0x190] sm:$0xff]  ;;  %v2618_v17 = vld [vmem:[%s7803_s15 + $0x1c0] sm:$0xff] }
 0x358   :  { %3489 = vmatpush.msra.mxu2 %v2627_v30  ;;  %3293 = vmatpush.msra.mxu0 %v2563_v31  ;;  %v2611_v30 = vld [vmem:[%s7803_s15 + $0x188] sm:$0xff]  ;;  %v2617_v31 = vld [vmem:[%s7803_s15 + $0x1b8] sm:$0xff] }
 0x359   :  { %3313 = vmatpush.msra.mxu1 %v2569_v45  ;;  %3431 = vmatpush.msrb.mxu3 %v2607_v34  ;;  %v2610_v45 = vld [vmem:[%s7803_s15 + $0x180] sm:$0xff] }
 0x35a   :  { %3490 = vmatpush.msra.mxu2 %v2626_v28  ;;  %3294 = vmatpush.msra.mxu0 %v2562_v2 }
 0x35b   :  { %3314 = vmatpush.msra.mxu1 %v2568_v62  ;;  %4957 = vmatmul.msk.f32.vlgmr.msra.gmra.mxu3 %vm388_vm0, %v6636_v10  ;;  %v5071_v62 = vld [vmem:[%s7805_s17 + $0x2] ss:$0 sm:$0xff] }
 0x35c   :  { %4960 = vmatmul.msk.f32.vlgmr.msrb.gmra.mxu2 %vm388_vm0, %v6578_v35  ;;  %3432 = vmatpush.msrb.mxu3 %v2606_v40  ;;  %v5061_v40 = vld [vmem:[%s7804_s16 + $0x2] ss:$0 sm:$0xff] }
 0x35d   :  { %v2130_v9 = vpop.f32.mrf.mxu2  ;;  %3369 = vmatpush.msrb.mxu0 %v2591_v41  ;;  %3389 = vmatpush.msrb.mxu1 %v2597_v42 }
 0x35e   :  { %3491 = vmatpush.msra.mxu2 %v2625_v43  ;;  %3433 = vmatpush.msrb.mxu3 %v2605_v46  ;;  %v5074_v43 = vld [vmem:[%s7805_s17 + $0x3] ss:$0 sm:$0xff] }
 0x35f   :  { %3370 = vmatpush.msrb.mxu0 %v2590_v47  ;;  %3390 = vmatpush.msrb.mxu1 %v2596_v48 }
 0x360   :  { %3492 = vmatpush.msra.mxu2 %v2624_v51  ;;  %3434 = vmatpush.msrb.mxu3 %v2604_v52  ;;  %v5063_v52 = vld [vmem:[%s7804_s16 + $0x6] ss:$0 sm:$0xff] }
 0x361   :  { %3371 = vmatpush.msrb.mxu0 %v2589_v53  ;;  %3391 = vmatpush.msrb.mxu1 %v2595_v55  ;;  %v5076_v55 = vld [vmem:[%s7805_s17] ss:$0 sm:$0xff] }
 0x362   :  { %3493 = vmatpush.msra.mxu2 %v2623_v57  ;;  %3509 = vmatpush.msra.mxu3 %v2633_v11  ;;  %v5077_v11 = vld [vmem:[%s7805_s17 + $0x1] ss:$0 sm:$0xff] }
 0x363   :  { %4954 = vmatmul.msk.f32.vlgmr.msra.gmra.mxu0 %vm388_vm0, %v6578_v35  ;;  %4955 = vmatmul.msk.f32.vlgmr.msra.gmra.mxu1 %vm388_vm0, %v6636_v10 }
 0x364   :  { %3372 = vmatpush.msrb.mxu0 %v2588_v5  ;;  %3392 = vmatpush.msrb.mxu1 %v2594_v0  ;;  %v5065_v5 = vld [vmem:[%s7804_s16 + $0x1] ss:$0 sm:$0xff] }
 0x365   :  { %v2153_v36 = vpop.f32.mrf.mxu3  ;;  %3494 = vmatpush.msra.mxu2 %v2622_v56  ;;  %3510 = vmatpush.msra.mxu3 %v2632_v59  ;;  %v5078_v56 = vld [vmem:[%s7805_s17 + $0x7] ss:$0 sm:$0xff] }
 0x366   :  { %4964 = vmatmul.msk.f32.vlgmr.msra.gmra.mxu2 %vm388_vm0, %v6578_v35  ;;  %4961 = vmatmul.msk.f32.vlgmr.msrb.gmra.mxu3 %vm388_vm0, %v6636_v10 }
 0x367   :  { %3373 = vmatpush.msrb.mxu0 %v2587_v61  ;;  %3393 = vmatpush.msrb.mxu1 %v2593_v63  ;;  %v5066_v61 = vld [vmem:[%s7804_s16 + $0x7] ss:$0 sm:$0xff] }
 0x368   :  { %3511 = vmatpush.msra.mxu3 %v2631_v3 }
 0x369   :  { %v2222_v32 = vpop.f32.mrf.mxu2  ;;  %3374 = vmatpush.msrb.mxu0 %v2586_v7  ;;  %v5079_v7 = vld [vmem:[%s7805_s17 + $0xa] ss:$0 sm:$0xff] }
 0x36a   :  { %3512 = vmatpush.msra.mxu3 %v2630_v58 }
 0x36b   :  { %3449 = vmatpush.msra.mxu0 %v2615_v24 }
 0x36c   :  { %4958 = vmatmul.msk.f32.vlgmr.msrb.gmra.mxu0 %vm388_vm0, %v6578_v35  ;;  %3513 = vmatpush.msra.mxu3 %v2629_v18  ;;  %v5081_v18 = vld [vmem:[%s7805_s17 + $0x5] ss:$0 sm:$0xff] }
 0x36d   :  { %v2084_v15 = vpop.f32.mrf.mxu0  ;;  %3450 = vmatpush.msra.mxu0 %v2614_v19 }
 0x36e   :  { %v2340_v25 = vadd.f32 %v2130_v9, %v2084_v15  ;;  %v2592_v9 = vld [vmem:[%s7803_s15 + $0xf0] sm:$0xff]  ;;  %3514 = vmatpush.msra.mxu3 %v2628_v29 }
 0x36f   :  { %3394 = vmatpush.msrb.mxu1 %v2592_v9  ;;  %3451 = vmatpush.msra.mxu0 %v2613_v39  ;;  %v5067_v9 = vld [vmem:[%s7804_s16 + $0xa] ss:$0 sm:$0xff]  ;;  %v5082_v39 = vld [vmem:[%s7805_s17 + $0xb] ss:$0 sm:$0xff] }
 0x370   :  { %4959 = vmatmul.msk.f32.vlgmr.msrb.gmra.mxu1 %vm388_vm0, %v6636_v10  ;;  %4965 = vmatmul.msk.f32.vlgmr.msra.gmra.mxu3 %vm388_vm0, %v6636_v10 }
 0x371   :  { %v2245_v54 = vpop.f32.mrf.mxu3  ;;  %3469 = vmatpush.msra.mxu1 %v2621_v12  ;;  %3452 = vmatpush.msra.mxu0 %v2612_v27  ;;  %v5080_v12 = vld [vmem:[%s7805_s17 + $0x4] ss:$0 sm:$0xff]  ;;  %v5070_v27 = vld [vmem:[%s7804_s16 + $0xb] ss:$0 sm:$0xff] }
 0x373   :  { %v2107_v37 = vpop.f32.mrf.mxu1  ;;  %3470 = vmatpush.msra.mxu1 %v2620_v13  ;;  %3453 = vmatpush.msra.mxu0 %v2611_v30 }
 0x374   :  { %v2341_v38 = vadd.f32 %v2153_v36, %v2107_v37 }
 0x375   :  { %3471 = vmatpush.msra.mxu1 %v2619_v1  ;;  %3454 = vmatpush.msra.mxu0 %v2610_v45  ;;  %v5084_v45 = vld [vmem:[%s7805_s17 + $0x9] ss:$0 sm:$0xff] }
 0x376   :  { %v7148_v50 = vpop.f32.mrf.mxu2  ;;  %4962 = vmatmul.msk.f32.vlgmr.msra.gmra.mxu0 %vm388_vm0, %v6578_v35 }
 0x377   :  { %3472 = vmatpush.msra.mxu1 %v2618_v17 }
 0x379   :  { %v2176_v44 = vpop.f32.mrf.mxu0  ;;  %3473 = vmatpush.msra.mxu1 %v2617_v31  ;;  %v5083_v31 = vld [vmem:[%s7805_s17 + $0x8] ss:$0 sm:$0xff] }
 0x37a   :  { %v2342_v49 = vadd.f32 %v2340_v25, %v2176_v44  ;;  %v5062_v44 = vld [vmem:[%s7804_s16 + $0x3] ss:$0 sm:$0xff] }
 0x37b   :  { %v2199_v6 = vpop.f32.mrf.mxu1 }
 0x37c   :  { %v2344_v14 = vadd.f32 %v2342_v49, %v2222_v32  ;;  %v2343_v33 = vadd.f32 %v2341_v38, %v2199_v6  ;;  %v2616_v32 = vld [vmem:[%s7803_s15 + $0x1b0] sm:$0xff]  ;;  %v5075_v49 = vld [vmem:[%s7805_s17 + $0x6] ss:$0 sm:$0xff]  ;;  %v5064_v6 = vld [vmem:[%s7804_s16] ss:$0 sm:$0xff] }
 0x37d   :  { %3474 = vmatpush.msra.mxu1 %v2616_v32  ;;  %v5072_v32 = vld [vmem:[%s7804_s16 + $0x8] ss:$0 sm:$0xff] }
 0x37e   :  { %v2345_v60 = vadd.f32 %v2343_v33, %v2245_v54  ;;  %v2337_v4 = vpop.f32.mrf.mxu3  ;;  %v2784_v8 = vpop.f32.mrf.mxu2  ;;  %4963 = vmatmul.msk.f32.vlgmr.msra.gmra.mxu1 %vm388_vm0, %v6636_v10 }
 0x37f   :  { %v2785_v10 = vadd.f32 %v5061_v40, %v2784_v8  ;;  %v5085_v40 = vld [vmem:[%s7806_s18 + $0x2] ss:$0 sm:$0xff] }
 0x383   :  { %v2268_v20 = vpop.f32.mrf.mxu0 }
 0x384   :  { %v2346_v21 = vadd.f32 %v2344_v14, %v2268_v20  ;;  %v2291_v22 = vpop.f32.mrf.mxu1  ;;  %v5068_v20 = vld [vmem:[%s7804_s16 + $0x4] ss:$0 sm:$0xff] }
 0x385   :  { %v2347_v15 = vadd.f32 %v2345_v60, %v2291_v22 }
 0x386   :  { %v7233_v23 = vadd.f32 %v2346_v21, %v7148_v50  ;;  %v5069_v21 = vld [vmem:[%s7804_s16 + $0x5] ss:$0 sm:$0xff] }
 0x387   :  { %v7235_v25 = vadd.f32 %v2347_v15, %v2337_v4 }
 0x388   :  { %v2804_v26 = vpop.f32.mrf.mxu3 }
 0x389   :  { %v2805_v51 = vadd.f32 %v5062_v44, %v2804_v26  ;;  %v5089_v44 = vld [vmem:[%s7806_s18 + $0x1] ss:$0 sm:$0xff] }
 0x38a   :  { %v2864_v16 = vpop.f32.mrf.mxu2 }
 0x38b   :  { %v2865_v57 = vadd.f32 %v5063_v52, %v2864_v16 }
 0x394   :  { %v2741_v34 = vpop.f32.mrf.mxu0  ;;  %v2884_v28 = vpop.f32.mrf.mxu3 }
 0x395   :  { %v2764_v36 = vpop.f32.mrf.mxu1  ;;  %v2944_v2 = vpop.f32.mrf.mxu2  ;;  %v2742_v60 = vadd.f32 %v5064_v6, %v2741_v34  ;;  %v2885_v8 = vadd.f32 %v5066_v61, %v2884_v28  ;;  %v5073_v28 = vld [vmem:[%s7804_s16 + $0x9] ss:$0 sm:$0xff] }
 0x396   :  { %v2765_v3 = vadd.f32 %v5065_v5, %v2764_v36  ;;  %v2945_v19 = vadd.f32 %v5067_v9, %v2944_v2 }
 0x39e   :  { %v7266_v37 = vpop.f32.mrf.mxu0 }
 0x39f   :  { %v7268_v38 = vpop.f32.mrf.mxu3  ;;  %v2844_v35 = vpop.f32.mrf.mxu1  ;;  %v2825_v1 = vadd.f32 %v5068_v20, %v7266_v37 }
 0x3a0   :  { %v3060_v41 = vpop.f32.mrf.mxu2  ;;  %v2845_v26 = vadd.f32 %v5069_v21, %v2844_v35  ;;  %v2965_v30 = vadd.f32 %v5070_v27, %v7268_v38 }
 0x3a1   :  { %v3061_v42 = vadd.f32 %v5071_v62, %v3060_v41 }
 0x3a3   :  { %4970 = vmatpush.xpose.msk.msrb.mxu2 %vm1187_vm1, %v3061_v42  ;;  %v5086_v42 = vld [vmem:[%s7806_s18 + $0x3] ss:$0 sm:$0xff] }
 0x3a6   :  { %4971 = vmatmul.msk.f32.vlgmr.msrb.gmra.mxu2 %vm1187_vm1, %v2785_v10  ;;  %v5087_v10 = vld [vmem:[%s7806_s18 + $0x6] ss:$0 sm:$0xff] }
 0x3a9   :  { %v3080_v46 = vpop.f32.mrf.mxu3 }
 0x3aa   :  { %v7281_v47 = vpop.f32.mrf.mxu0  ;;  %v7283_v48 = vpop.f32.mrf.mxu1  ;;  %v3081_v50 = vadd.f32 %v5074_v43, %v3080_v46  ;;  %v5088_v43 = vld [vmem:[%s7806_s18] ss:$0 sm:$0xff] }
 0x3ab   :  { %v2905_v37 = vadd.f32 %v5072_v32, %v7281_v47  ;;  %v2925_v38 = vadd.f32 %v5073_v28, %v7283_v48 }
 0x3ac   :  { %4972 = vmatpush.xpose.msk.msrb.mxu3 %vm1187_vm1, %v3081_v50 }
 0x3ad   :  { %v3140_v53 = vpop.f32.mrf.mxu2 }
 0x3ae   :  { %v3141_v54 = vadd.f32 %v5075_v49, %v3140_v53 }
 0x3af   :  { %4973 = vmatmul.msk.f32.vlgmr.msrb.gmra.mxu3 %vm1187_vm1, %v2805_v51 }
 0x3b0   :  { %4978 = vmatpush.xpose.msk.msra.mxu2 %vm1187_vm1, %v3141_v54  ;;  %v5092_v54 = vld [vmem:[%s7806_s18 + $0x4] ss:$0 sm:$0xff] }
 0x3b3   :  { %v3020_v14 = vpop.f32.mrf.mxu0  ;;  %4979 = vmatmul.msk.f32.vlgmr.msra.gmra.mxu2 %vm1187_vm1, %v2865_v57 }
 0x3b4   :  { %v3021_v33 = vadd.f32 %v5076_v55, %v3020_v14  ;;  %v3040_v0 = vpop.f32.mrf.mxu1  ;;  %v5090_v55 = vld [vmem:[%s7806_s18 + $0x7] ss:$0 sm:$0xff] }
 0x3b5   :  { %v3041_v59 = vadd.f32 %v5077_v11, %v3040_v0  ;;  %v5093_v11 = vld [vmem:[%s7806_s18 + $0x5] ss:$0 sm:$0xff] }
 0x3b6   :  { %4966 = vmatpush.xpose.msk.msrb.mxu0 %vm1187_vm1, %v3021_v33 }
 0x3b7   :  { %4968 = vmatpush.xpose.msk.msrb.mxu1 %vm1187_vm1, %v3041_v59  ;;  %v3160_v63 = vpop.f32.mrf.mxu3 }
 0x3b8   :  { %v3161_v4 = vadd.f32 %v5078_v56, %v3160_v63 }
 0x3b9   :  { %4967 = vmatmul.msk.f32.vlgmr.msrb.gmra.mxu0 %vm1187_vm1, %v2742_v60 }
 0x3ba   :  { %4969 = vmatmul.msk.f32.vlgmr.msrb.gmra.mxu1 %vm1187_vm1, %v2765_v3  ;;  %4980 = vmatpush.xpose.msk.msra.mxu3 %vm1187_vm1, %v3161_v4 }
 0x3bc   :  { %v3220_v58 = vpop.f32.mrf.mxu2 }
 0x3bd   :  { %v3221_v24 = vadd.f32 %v5079_v7, %v3220_v58  ;;  %4981 = vmatmul.msk.f32.vlgmr.msra.gmra.mxu3 %vm1187_vm1, %v2885_v8 }
 0x3bf   :  { %4986 = vmatpush.xpose.msk.msrb.mxu2 %vm1187_vm1, %v3221_v24 }
 0x3c0   :  { %v3100_v13 = vpop.f32.mrf.mxu0 }
 0x3c1   :  { %v3101_v22 = vadd.f32 %v5080_v12, %v3100_v13  ;;  %v3120_v29 = vpop.f32.mrf.mxu1 }
 0x3c2   :  { %v3121_v15 = vadd.f32 %v5081_v18, %v3120_v29  ;;  %4987 = vmatmul.msk.f32.vlgmr.msrb.gmra.mxu2 %vm1187_vm1, %v2945_v19 }
 0x3c3   :  { %4974 = vmatpush.xpose.msk.msra.mxu0 %vm1187_vm1, %v3101_v22 }
 0x3c4   :  { %4976 = vmatpush.xpose.msk.msra.mxu1 %vm1187_vm1, %v3121_v15 }
 0x3c5   :  { %v3240_v16 = vpop.f32.mrf.mxu3 }
 0x3c6   :  { %v3241_v17 = vadd.f32 %v5082_v39, %v3240_v16  ;;  %4975 = vmatmul.msk.f32.vlgmr.msra.gmra.mxu0 %vm1187_vm1, %v2825_v1 }
 0x3c7   :  { %4977 = vmatmul.msk.f32.vlgmr.msra.gmra.mxu1 %vm1187_vm1, %v2845_v26 }
 0x3c8   :  { %4988 = vmatpush.xpose.msk.msrb.mxu3 %vm1187_vm1, %v3241_v17 }
 0x3cb   :  { %4989 = vmatmul.msk.f32.vlgmr.msrb.gmra.mxu3 %vm1187_vm1, %v2965_v30 }
 0x3cc   :  { %v3180_v34 = vpop.f32.mrf.mxu0 }
 0x3cd   :  { %v3181_v36 = vadd.f32 %v5083_v31, %v3180_v34  ;;  %v3200_v2 = vpop.f32.mrf.mxu1 }
 0x3ce   :  { %v3201_v62 = vadd.f32 %v5084_v45, %v3200_v2  ;;  %v3336_v35 = vpop.f32.mrf.mxu2 }
 0x3cf   :  { %4982 = vmatpush.xpose.msk.msrb.mxu0 %vm1187_vm1, %v3181_v36  ;;  %v3337_v41 = vadd.f32 %v5085_v40, %v3336_v35 }
 0x3d0   :  { %4984 = vmatpush.xpose.msk.msrb.mxu1 %vm1187_vm1, %v3201_v62 }
 0x3d1   :  { %4183 = vmatpush.msra.mxu2 %v3337_v41 }
 0x3d2   :  { %4983 = vmatmul.msk.f32.vlgmr.msrb.gmra.mxu0 %vm1187_vm1, %v2905_v37 }
 0x3d3   :  { %4985 = vmatmul.msk.f32.vlgmr.msrb.gmra.mxu1 %vm1187_vm1, %v2925_v38 }
 0x3de   :  { %v3356_v46 = vpop.f32.mrf.mxu3 }
 0x3df   :  { %v3416_v47 = vpop.f32.mrf.mxu2  ;;  %v3357_v48 = vadd.f32 %v5086_v42, %v3356_v46 }
 0x3e0   :  { %v3417_v50 = vadd.f32 %v5087_v10, %v3416_v47  ;;  %v3296_v49 = vpop.f32.mrf.mxu0  ;;  %v3316_v52 = vpop.f32.mrf.mxu1 }
 0x3e1   :  { %v3297_v51 = vadd.f32 %v5088_v43, %v3296_v49  ;;  %v3317_v53 = vadd.f32 %v5089_v44, %v3316_v52  ;;  %4206 = vmatpush.msra.mxu3 %v3357_v48 }
 0x3e2   :  { %4275 = vmatpush.msrb.mxu2 %v3417_v50 }
 0x3e3   :  { %4137 = vmatpush.msra.mxu0 %v3297_v51  ;;  %4160 = vmatpush.msra.mxu1 %v3317_v53 }
 0x3e9   :  { %v3376_v57 = vpop.f32.mrf.mxu0  ;;  %v3436_v6 = vpop.f32.mrf.mxu3 }
 0x3ea   :  { %v3377_v14 = vadd.f32 %v5092_v54, %v3376_v57  ;;  %v3437_v5 = vadd.f32 %v5090_v55, %v3436_v6  ;;  %v7395_v56 = vpop.f32.mrf.mxu2 }
 0x3ec   :  { %4229 = vmatpush.msrb.mxu0 %v3377_v14  ;;  %4298 = vmatpush.msrb.mxu3 %v3437_v5 }
 0x3ed   :  { %v3396_v33 = vpop.f32.mrf.mxu1 }
 0x3ee   :  { %v3397_v0 = vadd.f32 %v5093_v11, %v3396_v33 }
 0x3f0   :  { %4252 = vmatpush.msrb.mxu1 %v3397_v0 }
 0x3f3   :  { %v7397_v59 = vpop.f32.mrf.mxu3  ;;  %v7400_v63 = vpop.f32.mrf.mxu0 }
 0x3fb   :  { %v7402_v3 = vpop.f32.mrf.mxu1 }
 0x429   :  { %v3594_v60 = vpop.f32.mrf.mxu2 }
 0x42a   :  { %v3837_v61 = vsel %vm1187_vm1, %v3594_v60, -inf }
 0x42b   :  { %3838 = vmax.xlane.f32.xlu0 %v3837_v61 }
 0x432   :  { %v3620_v4 = vpop.f32.mrf.mxu3 }
 0x433   :  { %v3840_v7 = vsel %vm1187_vm1, %v3620_v4, -inf }
 0x434   :  { %3841 = vmax.xlane.f32.xlu1 %v3840_v7 }
 0x436   :  { %v3698_v8 = vpop.f32.mrf.mxu2  ;;  %v3542_v58 = vpop.f32.mrf.mxu0 }
 0x437   :  { %v3849_v9 = vsel %vm1187_vm1, %v3698_v8, -inf  ;;  %v3831_v24 = vsel %vm1187_vm1, %v3542_v58, -inf  ;;  %v3568_v12 = vpop.f32.mrf.mxu1 }
 0x438   :  { %3850 = vmax.xlane.f32.xlu2 %v3849_v9  ;;  %v3834_v18 = vsel %vm1187_vm1, %v3568_v12, -inf }
 0x43c   :  { %3832 = vmax.xlane.f32.xlu1 %v3831_v24 }
 0x440   :  { %v3724_v19 = vpop.f32.mrf.mxu3  ;;  %3835 = vmax.xlane.f32.xlu2 %v3834_v18 }
 0x441   :  { %v3852_v20 = vsel %vm1187_vm1, %v3724_v19, -inf }
 0x442   :  { %3853 = vmax.xlane.f32.xlu0 %v3852_v20 }
 0x443   :  { %v3646_v13 = vpop.f32.mrf.mxu0 }
 0x444   :  { %v3843_v22 = vsel %vm1187_vm1, %v3646_v13, -inf  ;;  %v7410_v29 = vpop.f32.mrf.mxu1 }
 0x445   :  { %v3802_v21 = vpop.f32.mrf.mxu2  ;;  %v3846_v27 = vsel %vm1187_vm1, %v7410_v29, -inf }
 0x446   :  { %v3861_v15 = vsel %vm1187_vm1, %v3802_v21, -inf }
 0x448   :  { %3844 = vmax.xlane.f32.xlu2 %v3843_v22 }
 0x44a   :  { %3862 = vmax.xlane.f32.xlu0 %v3861_v15 }
 0x44e   :  { %v7413_v39 = vpop.f32.mrf.mxu3 }
 0x44f   :  { %v3864_v1 = vsel %vm1187_vm1, %v7413_v39, -inf  ;;  %v7423_v17 = vpop.f32.mrf.mxu0 }
 0x450   :  { %v7417_v26 = vpop.f32.mrf.mxu1  ;;  %3865 = vmax.xlane.f32.xlu1 %v3864_v1  ;;  %v3855_v30 = vsel %vm1187_vm1, %v7423_v17, -inf }
 0x451   :  { %v3858_v16 = vsel %vm1187_vm1, %v7417_v26, -inf }
 0x452   :  { %3847 = vmax.xlane.f32.xlu0 %v3846_v27  ;;  %3859 = vmax.xlane.f32.xlu2 %v3858_v16 }
 0x458   :  { %3856 = vmax.xlane.f32.xlu1 %v3855_v30 }
 0x49e   :  { %v3839_v31 = vpop.xlane.xlu0 %3838 }
 0x49f   :  { %v3869_v45 = vsub.f32 %v3594_v60, %v3839_v31 }
 0x4a1   :  { %v3883_v32 = vmul.f32 1.442695, %v3869_v45 }
 0x4a3   :  { %5155 = vpow2.f32 %v3883_v32  ;;  %v5219_v32 = vld [vmem:[%s7835_s1] sm:$0xff] }
 0x4a7   :  { %v3842_v34 = vpop.xlane.xlu1 %3841 }
 0x4a8   :  { %v3870_v28 = vsub.f32 %v3620_v4, %v3842_v34 }
 0x4a9   :  { %v7427_v36 = vpop.eup %5155 }
 0x4aa   :  { %v3885_v2 = vmul.f32 1.442695, %v3870_v28  ;;  %v3909_v62 = vsel %vm1187_vm1, %v7427_v36, 0.0 }
 0x4ab   :  { %v3851_v37 = vpop.xlane.xlu2 %3850  ;;  %3910 = vadd.xlane.f32.xlu0 %v3909_v62 }
 0x4ac   :  { %5157 = vpow2.f32 %v3885_v2  ;;  %v3873_v38 = vsub.f32 %v3698_v8, %v3851_v37  ;;  %v5220_v37 = vld [vmem:[%s7835_s1 + $0x8] sm:$0xff] }
 0x4ae   :  { %v3891_v40 = vmul.f32 1.442695, %v3873_v38 }
 0x4af   :  { %v3833_v35 = vpop.xlane.xlu1 %3832 }
 0x4b0   :  { %5159 = vpow2.f32 %v3891_v40  ;;  %v3867_v41 = vsub.f32 %v3542_v58, %v3833_v35 }
 0x4b2   :  { %v7431_v42 = vpop.eup %5157  ;;  %v3879_v10 = vmul.f32 1.442695, %v3867_v41 }
 0x4b3   :  { %v3836_v43 = vpop.xlane.xlu2 %3835  ;;  %v3912_v44 = vsel %vm1187_vm1, %v7431_v42, 0.0 }
 0x4b4   :  { %5161 = vpow2.f32 %v3879_v10  ;;  %v3868_v46 = vsub.f32 %v3568_v12, %v3836_v43  ;;  %3913 = vadd.xlane.f32.xlu1 %v3912_v44 }
 0x4b5   :  { %v3854_v47 = vpop.xlane.xlu0 %3853 }
 0x4b6   :  { %v7435_v48 = vpop.eup %5159  ;;  %v3874_v50 = vsub.f32 %v3724_v19, %v3854_v47  ;;  %v3881_v49 = vmul.f32 1.442695, %v3868_v46 }
 0x4b7   :  { %v3921_v51 = vsel %vm1187_vm1, %v7435_v48, 0.0 }
 0x4b8   :  { %v3893_v52 = vmul.f32 1.442695, %v3874_v50  ;;  %5163 = vpow2.f32 %v3881_v49  ;;  %3922 = vadd.xlane.f32.xlu2 %v3921_v51  ;;  %v5249_v49 = vmov 48.0  }
 0x4ba   :  { %v7439_v53 = vpop.eup %5161  ;;  %5165 = vpow2.f32 %v3893_v52  ;;  %v5091_v52 = vld [vmem:[%s7806_s18 + $0xa] ss:$0 sm:$0xff] }
 0x4bb   :  { %v3845_v54 = vpop.xlane.xlu2 %3844  ;;  %v3903_v55 = vsel %vm1187_vm1, %v7439_v53, 0.0 }
 0x4bc   :  { %v3871_v57 = vsub.f32 %v3646_v13, %v3845_v54  ;;  %3904 = vadd.xlane.f32.xlu1 %v3903_v55 }
 0x4bd   :  { %v3863_v11 = vpop.xlane.xlu0 %3862 }
 0x4be   :  { %v7443_v6 = vpop.eup %5163  ;;  %v3877_v14 = vsub.f32 %v3802_v21, %v3863_v11  ;;  %v3887_v5 = vmul.f32 1.442695, %v3871_v57 }
 0x4bf   :  { %v3906_v33 = vsel %vm1187_vm1, %v7443_v6, 0.0 }
 0x4c0   :  { %v7447_v0 = vpop.eup %5165  ;;  %v3899_v60 = vmul.f32 1.442695, %v3877_v14  ;;  %5167 = vpow2.f32 %v3887_v5  ;;  %3907 = vadd.xlane.f32.xlu2 %v3906_v33  ;;  %v5094_v33 = vld [vmem:[%s7806_s18 + $0xb] ss:$0 sm:$0xff] }
 0x4c1   :  { %v3924_v61 = vsel %vm1187_vm1, %v7447_v0, 0.0 }
 0x4c2   :  { %5169 = vpow2.f32 %v3899_v60  ;;  %3925 = vadd.xlane.f32.xlu0 %v3924_v61 }
 0x4c3   :  { %v3866_v4 = vpop.xlane.xlu1 %3865 }
 0x4c4   :  { %v3878_v7 = vsub.f32 %v7413_v39, %v3866_v4  ;;  %v5097_v39 = vld [vmem:[%s7798_s10] ss:$0 sm:$0xff]  ;;  %v3497_v4 = vadd.f32 %v5091_v52, %v7395_v56  ;;  %s7863_s10 = sld [smem:[#allocation5_spill]] }
 0x4c5   :  { %v3848_v8 = vpop.xlane.xlu0 %3847  ;;  %v3860_v9 = vpop.xlane.xlu2 %3859  ;;  %v2354_v62 = vadd.f32 %v5097_v39, %v7235_v25 }
 0x4c6   :  { %v7452_v58 = vpop.eup %5167  ;;  %v3901_v24 = vmul.f32 1.442695, %v3878_v7  ;;  %v3872_v12 = vsub.f32 %v7410_v29, %v3848_v8  ;;  %v3876_v18 = vsub.f32 %v7417_v26, %v3860_v9 }
 0x4c7   :  { %v3915_v19 = vsel %vm1187_vm1, %v7452_v58, 0.0  ;;  %v7494_v38 = vadd.f32 %v5220_v37, %v2354_v62 }
 0x4c8   :  { %v7458_v20 = vpop.eup %5169  ;;  %5171 = vpow2.f32 %v3901_v24  ;;  %v3889_v13 = vmul.f32 1.442695, %v3872_v12  ;;  %v3897_v21 = vmul.f32 1.442695, %v3876_v18  ;;  %3916 = vadd.xlane.f32.xlu2 %v3915_v19 }
 0x4c9   :  { %v3933_v22 = vsel %vm1187_vm1, %v7458_v20, 0.0  ;;  %v2360_v40 = vsel %vm388_vm0, %v7494_v38, 0.0 }
 0x4ca   :  { %5173 = vpow2.f32 %v3889_v13  ;;  %3934 = vadd.xlane.f32.xlu0 %v3933_v22  ;;  %v5095_v13 = vld [vmem:[%s7806_s18 + $0x8] ss:$0 sm:$0xff] }
 0x4cb   :  { %5175 = vpow2.f32 %v3897_v21  ;;  %v3857_v15 = vpop.xlane.xlu1 %3856 }
 0x4cc   :  { %v3875_v29 = vsub.f32 %v7423_v17, %v3857_v15  ;;  %v2353_v17 = vadd.f32 %v5097_v39, %v7233_v23  ;;  %v5096_v39 = vld [vmem:[%s7806_s18 + $0x9] ss:$0 sm:$0xff] }
 0x4ce   :  { %v7466_v1 = vpop.eup %5171  ;;  %v3895_v26 = vmul.f32 1.442695, %v3875_v29  ;;  %v7482_v34 = vadd.f32 %v5219_v32, %v2353_v17  ;;  %v7529_v32 = vadd.f32 %v5095_v13, %v7400_v63 }
 0x4cf   :  { %v3936_v27 = vsel %vm1187_vm1, %v7466_v1, 0.0 }
 0x4d0   :  { %v7470_v16 = vpop.eup %5173  ;;  %5177 = vpow2.f32 %v3895_v26  ;;  %3937 = vadd.xlane.f32.xlu1 %v3936_v27  ;;  %v2357_v23 = vsel %vm388_vm0, %v7482_v34, 0.0 }
 0x4d1   :  { %v7472_v30 = vpop.eup %5175  ;;  %v3918_v31 = vsel %vm1187_vm1, %v7470_v16, 0.0 }
 0x4d2   :  { %3919 = vadd.xlane.f32.xlu0 %v3918_v31  ;;  %v3930_v45 = vsel %vm1187_vm1, %v7472_v30, 0.0 }
 0x4d3   :  { %3931 = vadd.xlane.f32.xlu2 %v3930_v45 }
 0x4d6   :  { %v7484_v28 = vpop.eup %5177 }
 0x4d7   :  { %v3927_v2 = vsel %vm1187_vm1, %v7484_v28, 0.0 }
 0x4d8   :  { %3928 = vadd.xlane.f32.xlu1 %v3927_v2 }
 0x4da   :  { %2358 = vadd.xlane.f32.xlu0 %v2357_v23 }
 0x4e0   :  { %2361 = vadd.xlane.f32.xlu1 %v2360_v40 }
 0x51e   :  { %v3911_v35 = vpop.xlane.xlu0 %3910 }
 0x51f   :  { %5179 = vrcp.f32 %v3911_v35  ;;  %v3980_v44 = vand.u32 2147483648, %v3911_v35  ;;  %v3978_v47 = vand.u32 2147483647, %v3911_v35  ;;  %vm3974_vm9 = vweird.f32 %v3911_v35 }
 0x521   :  { %v3981_v54 = vor.u32 1.1754944e-38, %v3980_v44  ;;  %vm3979_vm11 = vcmp.eq.f32.partialorder %v3978_v47, 8.507059e+37 }
 0x525   :  { %v5180_v41 = vpop.eup %5179 }
 0x526   :  { %v3970_v10 = vmul.f32 %v5180_v41, %v3911_v35  ;;  %vm3975_vm8 = vweird.f32 %v5180_v41 }
 0x527   :  { %v3914_v25 = vpop.xlane.xlu1 %3913  ;;  %vm3976_vm10 = vmor %vm3974_vm9, %vm3975_vm8 }
 0x528   :  { %v3971_v43 = vsub.f32 1.0, %v3970_v10  ;;  %5181 = vrcp.f32 %v3914_v25  ;;  %v3993_v8 = vand.u32 2147483647, %v3914_v25  ;;  %v3995_v24 = vand.u32 2147483648, %v3914_v25 }
 0x529   :  { %5183 = vrcp.f32 %v5249_v49  ;;  %vm3989_vm13 = vweird.f32 %v3914_v25  ;;  %v7536_v10 = vadd.f32 %v5096_v39, %v7402_v3 }
 0x52a   :  { %v3972_v46 = vmul.f32 %v5180_v41, %v3971_v43  ;;  %vm3994_vm14 = vcmp.eq.f32.partialorder %v3993_v8, 8.507059e+37 }
 0x52b   :  { %v3923_v50 = vpop.xlane.xlu2 %3922 }
 0x52c   :  { %v3973_v51 = vadd.f32 %v5180_v41, %v3972_v46  ;;  %5185 = vrcp.f32 %v3923_v50  ;;  %v4038_v26 = vand.u32 2147483647, %v3923_v50  ;;  %v4040_v27 = vand.u32 2147483648, %v3923_v50 }
 0x52d   :  { %vm4034_vm3 = vweird.f32 %v3923_v50 }
 0x52e   :  { %v5182_v55 = vpop.eup %5181  ;;  %v3977_v57 = vsel %vm3976_vm10, %v5180_v41, %v3973_v51  ;;  %vm4039_vm5 = vcmp.eq.f32.partialorder %v4038_v26, 8.507059e+37 }
 0x52f   :  { %v3982_v11 = vsel %vm3979_vm11, %v3981_v54, %v3977_v57  ;;  %v3985_v14 = vmul.f32 %v5182_v55, %v3914_v25  ;;  %v7501_v5 = vpop.xlane.xlu1 %3904  ;;  %v7508_v61 = vpop.eup %5183  ;;  %vm3990_vm12 = vweird.f32 %v5182_v55  ;;  %v4041_v25 = vor.u32 1.1754944e-38, %v4040_v27 }
 0x530   :  { %v3983_v60 = vmul.f32 %v7427_v36, %v3982_v11  ;;  %5187 = vrcp.f32 %v7501_v5  ;;  %v3517_v36 = vadd.f32 %v5094_v33, %v7397_v59  ;;  %v2364_v56 = vmul.f32 48.0, %v7508_v61  ;;  %vm3991_vm15 = vmor %vm3989_vm13, %vm3990_vm12 }
 0x531   :  { %v3986_v7 = vsub.f32 1.0, %v3985_v14  ;;  %v3996_v59 = vor.u32 1.1754944e-38, %v3995_v24  ;;  %v3948_v35 = vand.u32 2147483647, %v7501_v5  ;;  %v3950_v63 = vand.u32 2147483648, %v7501_v5 }
 0x532   :  { %v5186_v9 = vpop.eup %5185  ;;  %4992 = vmatmul.msk.f32.vlgmr.msra.gmra.mxu2 %vm1187_vm1, %v3983_v60  ;;  %v2365_v62 = vsub.f32 1.0, %v2364_v56  ;;  %vm3944_vm7 = vweird.f32 %v7501_v5  ;;  %vm2368_vm12 = vweird.f32 %v7508_v61 }
 0x533   :  { %v3987_v12 = vmul.f32 %v5182_v55, %v3986_v7  ;;  %v4030_v18 = vmul.f32 %v5186_v9, %v3923_v50  ;;  %v7512_v19 = vpop.xlane.xlu2 %3907  ;;  %4367 = vmatpush.msra.mxu2 %v3497_v4  ;;  %vm4035_vm2 = vweird.f32 %v5186_v9  ;;  %vm3949_vm8 = vcmp.eq.f32.partialorder %v3948_v35, 8.507059e+37 }
 0x534   :  { %5189 = vrcp.f32 %v7512_v19  ;;  %vm4036_vm4 = vmor %vm4034_vm3, %vm4035_vm2  ;;  %v2366_v3 = vmul.f32 %v7508_v61, %v2365_v62  ;;  %v3963_v11 = vand.u32 2147483647, %v7512_v19 }
 0x535   :  { %v3988_v21 = vadd.f32 %v5182_v55, %v3987_v12  ;;  %v4031_v22 = vsub.f32 1.0, %v4030_v18  ;;  %v7520_v15 = vpop.xlane.xlu0 %3925 }
 0x536   :  { %v5188_v29 = vpop.eup %5187  ;;  %5191 = vrcp.f32 %v7520_v15  ;;  %v4053_v33 = vand.u32 2147483647, %v7520_v15  ;;  %v4055_v4 = vand.u32 2147483648, %v7520_v15  ;;  %vm4049_vm13 = vweird.f32 %v7520_v15 }
 0x537   :  { %v3992_v31 = vsel %vm3991_vm15, %v5182_v55, %v3988_v21  ;;  %v4032_v17 = vmul.f32 %v5186_v9, %v4031_v22  ;;  %v3940_v45 = vmul.f32 %v5188_v29, %v7501_v5  ;;  %vm3945_vm6 = vweird.f32 %v5188_v29 }
 0x538   :  { %v3997_v2 = vsel %vm3994_vm14, %v3996_v59, %v3992_v31  ;;  %vm3946_vm9 = vmor %vm3944_vm7, %vm3945_vm6  ;;  %v3951_v55 = vor.u32 1.1754944e-38, %v3950_v63  ;;  %vm3959_vm14 = vweird.f32 %v7512_v19  ;;  %v2367_v18 = vadd.f32 %v7508_v61, %v2366_v3 }
 0x539   :  { %v3998_v23 = vmul.f32 %v7431_v42, %v3997_v2  ;;  %v4033_v37 = vadd.f32 %v5186_v9, %v4032_v17  ;;  %v3941_v40 = vsub.f32 1.0, %v3940_v45  ;;  %vm7568_vm15 = vcmp.eq.f32.partialorder %v4053_v33, 8.507059e+37 }
 0x53a   :  { %v7533_v41 = vpop.eup %5189 }
 0x53b   :  { %v4037_v43 = vsel %vm4036_vm4, %v5186_v9, %v4033_v37  ;;  %v3942_v44 = vmul.f32 %v5188_v29, %v3941_v40  ;;  %v3955_v42 = vmul.f32 %v7533_v41, %v7512_v19  ;;  %v7541_v46 = vpop.xlane.xlu2 %3916  ;;  %4993 = vmatmul.msk.f32.vlgmr.msra.gmra.mxu3 %vm1187_vm1, %v3998_v23  ;;  %vm3960_vm10 = vweird.f32 %v7533_v41 }
 0x53c   :  { %v5192_v47 = vpop.eup %5191  ;;  %v4042_v50 = vsel %vm4039_vm5, %v4041_v25, %v4037_v43  ;;  %5193 = vrcp.f32 %v7541_v46  ;;  %4390 = vmatpush.msra.mxu3 %v3517_v36  ;;  %vm3961_vm2 = vmor %vm3959_vm14, %vm3960_vm10  ;;  %vm3964_vm4 = vcmp.eq.f32.partialorder %v3963_v11, 8.507059e+37  ;;  %v4008_v26 = vand.u32 2147483647, %v7541_v46  ;;  %v2673_v43 = vld [vmem:[%s7807_s19 + $0x18] sm:$0xff] }
 0x53d   :  { %v4043_v49 = vmul.f32 %v7435_v48, %v4042_v50  ;;  %v3943_v51 = vadd.f32 %v5188_v29, %v3942_v44  ;;  %v4045_v52 = vmul.f32 %v5192_v47, %v7520_v15  ;;  %v7549_v54 = vpop.xlane.xlu0 %3934  ;;  %v3956_v57 = vsub.f32 1.0, %v3955_v42 }
 0x53e   :  { %5195 = vrcp.f32 %v7549_v54  ;;  %v3965_v48 = vand.u32 2147483648, %v7512_v19  ;;  %vm4050_vm11 = vweird.f32 %v5192_v47  ;;  %v4056_v19 = vor.u32 1.1754944e-38, %v4055_v4 }
 0x53f   :  { %v3947_v14 = vsel %vm3946_vm9, %v5188_v29, %v3943_v51  ;;  %v4046_v5 = vsub.f32 1.0, %v4045_v52  ;;  %4996 = vmatmul.msk.f32.vlgmr.msrb.gmra.mxu2 %vm1187_vm1, %v4043_v49  ;;  %v3957_v7 = vmul.f32 %v7533_v41, %v3956_v57  ;;  %vm4051_vm3 = vmor %vm4049_vm13, %vm4050_vm11  ;;  %v4098_v45 = vand.u32 2147483647, %v7549_v54 }
 0x540   :  { %v3952_v60 = vsel %vm3949_vm8, %v3951_v55, %v3947_v14  ;;  %v4010_v37 = vand.u32 2147483648, %v7541_v46  ;;  %v4100_v40 = vand.u32 2147483648, %v7549_v54  ;;  %vm4094_vm7 = vweird.f32 %v7549_v54 }
 0x541   :  { %v3953_v8 = vmul.f32 %v7439_v53, %v3952_v60  ;;  %v4047_v9 = vmul.f32 %v5192_v47, %v4046_v5  ;;  %v3958_v12 = vadd.f32 %v7533_v41, %v3957_v7  ;;  %v3966_v53 = vor.u32 1.1754944e-38, %v3965_v48 }
 0x542   :  { %v7562_v24 = vpop.eup %5193  ;;  %vm4004_vm8 = vweird.f32 %v7541_v46  ;;  %vm4009_vm9 = vcmp.eq.f32.partialorder %v4008_v26, 8.507059e+37  ;;  %vm7609_vm10 = vcmp.eq.f32.partialorder %v4098_v45, 8.507059e+37  ;;  %v4101_v42 = vor.u32 1.1754944e-38, %v4100_v40 }
 0x543   :  { %v4048_v36 = vadd.f32 %v5192_v47, %v4047_v9  ;;  %v4000_v56 = vmul.f32 %v7562_v24, %v7541_v46  ;;  %v7574_v21 = vpop.xlane.xlu1 %3937  ;;  %4990 = vmatmul.msk.f32.vlgmr.msra.gmra.mxu0 %vm1187_vm1, %v3953_v8  ;;  %v3962_v15 = vsel %vm3961_vm2, %v7533_v41, %v3958_v12  ;;  %vm4005_vm5 = vweird.f32 %v7562_v24 }
 0x544   :  { %v5196_v22 = vpop.eup %5195  ;;  %5197 = vrcp.f32 %v7574_v21  ;;  %4321 = vmatpush.msra.mxu0 %v7529_v32  ;;  %v3967_v39 = vsel %vm3964_vm4, %v3966_v53, %v3962_v15  ;;  %vm4006_vm11 = vmor %vm4004_vm8, %vm4005_vm5  ;;  %v4113_v46 = vand.u32 2147483647, %v7574_v21  ;;  %v4115_v52 = vand.u32 2147483648, %v7574_v21 }
 0x545   :  { %v4052_v29 = vsel %vm4051_vm3, %v5192_v47, %v4048_v36  ;;  %v4090_v59 = vmul.f32 %v5196_v22, %v7549_v54  ;;  %v7583_v27 = vpop.xlane.xlu0 %3919  ;;  %v3968_v17 = vmul.f32 %v7443_v6, %v3967_v39  ;;  %v4001_v2 = vsub.f32 1.0, %v4000_v56 }
 0x546   :  { %v4057_v31 = vsel %vm7568_vm15, %v4056_v19, %v4052_v29  ;;  %v7589_v62 = vpop.xlane.xlu2 %3931  ;;  %5199 = vrcp.f32 %v7583_v27  ;;  %vm4095_vm6 = vweird.f32 %v5196_v22  ;;  %v4023_v14 = vand.u32 2147483647, %v7583_v27 }
 0x547   :  { %v4058_v32 = vmul.f32 %v7447_v0, %v4057_v31  ;;  %v4091_v23 = vsub.f32 1.0, %v4090_v59  ;;  %v4002_v35 = vmul.f32 %v7562_v24, %v4001_v2  ;;  %4991 = vmatmul.msk.f32.vlgmr.msra.gmra.mxu1 %vm1187_vm1, %v3968_v17  ;;  %5201 = vrcp.f32 %v7589_v62 }
 0x548   :  { %4344 = vmatpush.msra.mxu1 %v7536_v10  ;;  %v7604_v0 = vsel %vm2368_vm12, %v7508_v61, %v2367_v18  ;;  %v4011_v10 = vor.u32 1.1754944e-38, %v4010_v37  ;;  %vm4096_vm12 = vmor %vm4094_vm7, %vm4095_vm6  ;;  %v4025_v60 = vand.u32 2147483648, %v7583_v27  ;;  %vm4109_vm14 = vweird.f32 %v7574_v21 }
 0x549   :  { %v4092_v6 = vmul.f32 %v5196_v22, %v4091_v23  ;;  %4997 = vmatmul.msk.f32.vlgmr.msrb.gmra.mxu3 %vm1187_vm1, %v4058_v32  ;;  %v4003_v25 = vadd.f32 %v7562_v24, %v4002_v35  ;;  %vm4114_vm15 = vcmp.eq.f32.partialorder %v4113_v46, 8.507059e+37  ;;  %v4116_v9 = vor.u32 1.1754944e-38, %v4115_v52  ;;  %v2675_v46 = vld [vmem:[%s7807_s19 + $0x28] sm:$0xff] }
 0x54a   :  { %v5198_v41 = vpop.eup %5197  ;;  %vm4019_vm2 = vweird.f32 %v7583_v27  ;;  %vm7639_vm5 = vcmp.eq.f32.partialorder %v4023_v14, 8.507059e+37  ;;  %v4026_v53 = vor.u32 1.1754944e-38, %v4025_v60  ;;  %v4085_v15 = vand.u32 2147483648, %v7589_v62  ;;  %4482 = vmatpush.msrb.mxu3 %v2673_v43 }
 0x54b   :  { %v4093_v63 = vadd.f32 %v5196_v22, %v4092_v6  ;;  %v4105_v61 = vmul.f32 %v5198_v41, %v7574_v21  ;;  %v7616_v44 = vpop.xlane.xlu1 %3928  ;;  %v4007_v47 = vsel %vm4006_vm11, %v7562_v24, %v4003_v25  ;;  %vm4110_vm13 = vweird.f32 %v5198_v41 }
 0x54c   :  { %5203 = vrcp.f32 %v7616_v44  ;;  %v5200_v50 = vpop.eup %5199  ;;  %v4012_v49 = vsel %vm4009_vm9, %v4011_v10, %v4007_v47  ;;  %vm4111_vm3 = vmor %vm4109_vm14, %vm4110_vm13  ;;  %v4068_v39 = vand.u32 2147483647, %v7616_v44  ;;  %v4070_v17 = vand.u32 2147483648, %v7616_v44  ;;  %v2671_v10 = vld [vmem:[%s7807_s19 + $0x8] sm:$0xff]  ;;  %v2680_v47 = vld [vmem:[%s7807_s19 + $0x50] sm:$0xff] }
 0x54d   :  { %v4097_v3 = vsel %vm4096_vm12, %v5196_v22, %v4093_v63  ;;  %v4106_v51 = vsub.f32 1.0, %v4105_v61  ;;  %v2359_v54 = vpop.xlane.xlu0 %2358  ;;  %v4013_v57 = vmul.f32 %v7452_v58, %v4012_v49  ;;  %v4015_v11 = vmul.f32 %v5200_v50, %v7583_v27  ;;  %v5202_v5 = vpop.eup %5201  ;;  %v2672_v63 = vld [vmem:[%s7807_s19 + $0x10] sm:$0xff]  ;;  %v2677_v61 = vld [vmem:[%s7807_s19 + $0x38] sm:$0xff]  ;;  %v2678_v49 = vld [vmem:[%s7807_s19 + $0x40] sm:$0xff] }
 0x54e   :  { %v4102_v55 = vsel %vm7609_vm10, %v4101_v42, %v4097_v3  ;;  %v4075_v7 = vmul.f32 %v5202_v5, %v7589_v62  ;;  %v2370_v8 = vmul.f32 %v7604_v0, %v2359_v54  ;;  %vm4020_vm4 = vweird.f32 %v5200_v50  ;;  %4459 = vmatpush.msrb.mxu2 %v2672_v63  ;;  %v2679_v54 = vld [vmem:[%s7807_s19 + $0x48] sm:$0xff]  ;;  %v5102_v63 = vld [vmem:[%s7863_s10 + $0x1] ss:$0 sm:$0xff] }
 0x54f   :  { %v4103_v33 = vmul.f32 %v7458_v20, %v4102_v55  ;;  %v4107_v48 = vmul.f32 %v5198_v41, %v4106_v51  ;;  %v4016_v4 = vsub.f32 1.0, %v4015_v11  ;;  %4994 = vmatmul.msk.f32.vlgmr.msrb.gmra.mxu0 %vm1187_vm1, %v4013_v57  ;;  %vm4021_vm6 = vmor %vm4019_vm2, %vm4020_vm4  ;;  %vm4080_vm7 = vweird.f32 %v5202_v5 }
 0x550   :  { %v4076_v12 = vsub.f32 1.0, %v4075_v7  ;;  %v7637_v18 = vsub.f32 %v7482_v34, %v2370_v8  ;;  %vm4079_vm9 = vweird.f32 %v7589_v62  ;;  %v4083_v32 = vand.u32 2147483647, %v7589_v62 }
 0x551   :  { %v4108_v58 = vadd.f32 %v5198_v41, %v4107_v48  ;;  %5000 = vmatmul.msk.f32.vlgmr.msra.gmra.mxu2 %vm1187_vm1, %v4103_v33  ;;  %v4017_v24 = vmul.f32 %v5200_v50, %v4016_v4  ;;  %vm4081_vm10 = vmor %vm4079_vm9, %vm4080_vm7  ;;  %vm4064_vm11 = vweird.f32 %v7616_v44  ;;  %v4071_v40 = vor.u32 1.1754944e-38, %v4070_v17 }
 0x552   :  { %v5204_v20 = vpop.eup %5203  ;;  %v4077_v19 = vmul.f32 %v5202_v5, %v4076_v12  ;;  %v2374_v59 = vmul.f32 %v7637_v18, %v7637_v18  ;;  %v4086_v35 = vor.u32 1.1754944e-38, %v4085_v15  ;;  %vm4069_vm13 = vcmp.eq.f32.partialorder %v4068_v39, 8.507059e+37 }
 0x553   :  { %v4112_v36 = vsel %vm4111_vm3, %v5198_v41, %v4108_v58  ;;  %v4060_v56 = vmul.f32 %v5204_v20, %v7616_v44  ;;  %v4018_v22 = vadd.f32 %v5200_v50, %v4017_v24  ;;  %vm4065_vm8 = vweird.f32 %v5204_v20  ;;  %v2674_v44 = vld [vmem:[%s7807_s19 + $0x20] sm:$0xff]  ;;  %v2362_v39 = vpop.xlane.xlu1 %2361 }
 0x554   :  { %v4117_v21 = vsel %vm4114_vm15, %v4116_v9, %v4112_v36  ;;  %v4078_v31 = vadd.f32 %v5202_v5, %v4077_v19  ;;  %vm4066_vm12 = vmor %vm4064_vm11, %vm4065_vm8  ;;  %vm4084_vm14 = vcmp.eq.f32.partialorder %v4083_v32, 8.507059e+37  ;;  %v5250_v58 = vmov 0   ;;  %v5221_v32 = vld [vmem:[%s7856_s4] sm:$0xff] }
 0x555   :  { %v4118_v29 = vmul.f32 %v7466_v1, %v4117_v21  ;;  %v4061_v34 = vsub.f32 1.0, %v4060_v56  ;;  %v4022_v26 = vsel %vm4021_vm6, %v5200_v50, %v4018_v22  ;;  %v2376_v1 = vsel %vm388_vm0, %v2374_v59, 0.0  ;;  %v2681_v50 = vld [vmem:[%s7807_s19 + $0x58] sm:$0xff]  ;;  %5020 = vset.pattern.permute.xlu2 %v5250_v58  ;;  %5021 = vset.pattern.permute.xlu0 %v5250_v58 }
 0x556   :  { %v4027_v45 = vsel %vm7639_vm5, %v4026_v53, %v4022_v26  ;;  %2377 = vadd.xlane.f32.xlu1 %v2376_v1  ;;  %v4082_v37 = vsel %vm4081_vm10, %v5202_v5, %v4078_v31  ;;  %v5251_v43 = vmov 1  }
 0x557   :  { %v4062_v2 = vmul.f32 %v5204_v20, %v4061_v34  ;;  %5001 = vmatmul.msk.f32.vlgmr.msra.gmra.mxu3 %vm1187_vm1, %v4118_v29  ;;  %v4028_v27 = vmul.f32 %v7470_v16, %v4027_v45  ;;  %v4087_v16 = vsel %vm4084_vm14, %v4086_v35, %v4082_v37  ;;  %v5098_v34 = vld [vmem:[%s7808_s20] ss:$0 sm:$0xff]  ;;  %v2371_v45 = vmul.f32 %v7604_v0, %v2362_v39 }
 0x558   :  { %v4088_v62 = vmul.f32 %v7472_v30, %v4087_v16  ;;  %v2676_v30 = vld [vmem:[%s7807_s19 + $0x30] sm:$0xff]  ;;  %4574 = vmatpush.msra.mxu3 %v2677_v61  ;;  %5022 = vset.pattern.permute.xlu1 %v5251_v43 }
 0x559   :  { %v4063_v23 = vadd.f32 %v5204_v20, %v4062_v2  ;;  %4995 = vmatmul.msk.f32.vlgmr.msrb.gmra.mxu1 %vm1187_vm1, %v4028_v27  ;;  %4551 = vmatpush.msra.mxu2 %v2676_v30 }
 0x55a   :  { %4436 = vmatpush.msrb.mxu1 %v2671_v10 }
 0x55b   :  { %v4067_v6 = vsel %vm4066_vm12, %v5204_v20, %v4063_v23 }
 0x55c   :  { %v4072_v41 = vsel %vm4069_vm13, %v4071_v40, %v4067_v6  ;;  %v7721_v40 = vsub.f32 %v7494_v38, %v2371_v45  ;;  %v5222_v6 = vld [vmem:[%s7856_s4 + $0x8] sm:$0xff]  ;;  %v5099_v38 = vld [vmem:[%s7863_s10] ss:$0 sm:$0xff] }
 0x55d   :  { %v4073_v25 = vmul.f32 %v7484_v28, %v4072_v41  ;;  %v2670_v28 = vld [vmem:[%s7807_s19] sm:$0xff] }
 0x55e   :  { %4413 = vmatpush.msrb.mxu0 %v2670_v28 }
 0x55f   :  { %4998 = vmatmul.msk.f32.vlgmr.msra.gmra.mxu0 %vm1187_vm1, %v4073_v25  ;;  %v2375_v25 = vmul.f32 %v7721_v40, %v7721_v40 }
 0x560   :  { %4505 = vmatpush.msra.mxu0 %v2674_v44 }
 0x561   :  { %4999 = vmatmul.msk.f32.vlgmr.msra.gmra.mxu1 %vm1187_vm1, %v4088_v62  ;;  %v2379_v62 = vsel %vm388_vm0, %v2375_v25, 0.0  ;;  %v5104_v25 = vld [vmem:[%s7810_s22] ss:$0 sm:$0xff] }
 0x562   :  { %4528 = vmatpush.msra.mxu1 %v2675_v46 }
 0x5b5   :  { %v4185_v42 = vpop.f32.mrf.mxu2 }
 0x5b6   :  { %5004 = vmatmul.msk.f32.vlgmr.msrb.gmra.mxu2 %vm1187_vm1, %v4185_v42 }
 0x5b7   :  { %4643 = vmatpush.msrb.mxu2 %v2680_v47 }
 0x5be   :  { %v4208_v3 = vpop.f32.mrf.mxu3 }
 0x5bf   :  { %5005 = vmatmul.msk.f32.vlgmr.msrb.gmra.mxu3 %vm1187_vm1, %v4208_v3 }
 0x5c0   :  { %v4139_v51 = vpop.f32.mrf.mxu0  ;;  %4666 = vmatpush.msrb.mxu3 %v2681_v50 }
 0x5c1   :  { %5002 = vmatmul.msk.f32.vlgmr.msrb.gmra.mxu0 %vm1187_vm1, %v4139_v51 }
 0x5c2   :  { %v4277_v52 = vpop.f32.mrf.mxu2  ;;  %4597 = vmatpush.msrb.mxu0 %v2678_v49 }
 0x5c3   :  { %5008 = vmatmul.msk.f32.vlgmr.msra.gmra.mxu2 %vm1187_vm1, %v4277_v52 }
 0x5c4   :  { %v4162_v55 = vpop.f32.mrf.mxu1 }
 0x5c5   :  { %5003 = vmatmul.msk.f32.vlgmr.msrb.gmra.mxu1 %vm1187_vm1, %v4162_v55 }
 0x5c6   :  { %4620 = vmatpush.msrb.mxu1 %v2679_v54 }
 0x5c9   :  { %v2378_v49 = vpop.xlane.xlu1 %2377 }
 0x5ca   :  { %v2382_v51 = vmul.f32 %v2378_v49, %v7604_v0 }
 0x5cc   :  { %v4300_v57 = vpop.f32.mrf.mxu3  ;;  %v4231_v11 = vpop.f32.mrf.mxu0  ;;  %v2384_v55 = vadd.f32 1e-05, %v2382_v51 }
 0x5cd   :  { %5009 = vmatmul.msk.f32.vlgmr.msra.gmra.mxu3 %vm1187_vm1, %v4300_v57  ;;  %5006 = vmatmul.msk.f32.vlgmr.msra.gmra.mxu0 %vm1187_vm1, %v4231_v11 }
 0x5ce   :  { %5205 = vrsqrt.f32 %v2384_v55  ;;  %vm2392_vm15 = vweird.f32 %v2384_v55 }
 0x5d4   :  { %v4369_v14 = vpop.f32.mrf.mxu2  ;;  %v5206_v11 = vpop.eup %5205 }
 0x5d5   :  { %5012 = vmatmul.msk.f32.vlgmr.msrb.gmra.mxu2 %vm1187_vm1, %v4369_v14 }
 0x5d6   :  { %v4254_v5 = vpop.f32.mrf.mxu1 }
 0x5d7   :  { %5007 = vmatmul.msk.f32.vlgmr.msra.gmra.mxu1 %vm1187_vm1, %v4254_v5  ;;  %v2387_v5 = vmul.f32 %v5206_v11, %v2384_v55 }
 0x5da   :  { %v4392_v33 = vpop.f32.mrf.mxu3 }
 0x5db   :  { %5013 = vmatmul.msk.f32.vlgmr.msrb.gmra.mxu3 %vm1187_vm1, %v4392_v33 }
 0x5dc   :  { %v4323_v48 = vpop.f32.mrf.mxu0 }
 0x5dd   :  { %5010 = vmatmul.msk.f32.vlgmr.msrb.gmra.mxu0 %vm1187_vm1, %v4323_v48  ;;  %v2388_v48 = vmul.f32 %v5206_v11, %v2387_v5 }
 0x5de   :  { %v4346_v60 = vpop.f32.mrf.mxu1 }
 0x5df   :  { %5011 = vmatmul.msk.f32.vlgmr.msrb.gmra.mxu1 %vm1187_vm1, %v4346_v60  ;;  %vm2393_vm1 = vweird.f32 %v5206_v11 }
 0x5e0   :  { %vm2394_vm2 = vmor %vm2392_vm15, %vm2393_vm1 }
 0x639   :  { %v4461_v4 = vpop.f32.mrf.mxu2 }
 0x63e   :  { %v4415_v7 = vpop.f32.mrf.mxu0 }
 0x63f   :  { %v4671_v12 = vadd.f32 %v4461_v4, %v4415_v7 }
 0x642   :  { %v4438_v8 = vpop.f32.mrf.mxu1  ;;  %v4484_v9 = vpop.f32.mrf.mxu3 }
 0x643   :  { %v4672_v53 = vadd.f32 %v4484_v9, %v4438_v8  ;;  %v2389_v9 = vmul.f32 0.5, %v2388_v48 }
 0x646   :  { %v4553_v20 = vpop.f32.mrf.mxu2 }
 0x64a   :  { %v4507_v24 = vpop.f32.mrf.mxu0 }
 0x64b   :  { %v4673_v36 = vadd.f32 %v4671_v12, %v4507_v24 }
 0x64d   :  { %v4675_v22 = vadd.f32 %v4673_v36, %v4553_v20  ;;  %v2390_v36 = vsub.f32 1.5, %v2389_v9 }
 0x650   :  { %v4576_v56 = vpop.f32.mrf.mxu3 }
 0x654   :  { %v4530_v13 = vpop.f32.mrf.mxu1 }
 0x655   :  { %v4674_v21 = vadd.f32 %v4672_v53, %v4530_v13 }
 0x657   :  { %v4676_v59 = vadd.f32 %v4674_v21, %v4576_v56  ;;  %v2391_v56 = vmul.f32 %v5206_v11, %v2390_v36 }
 0x658   :  { %v4645_v15 = vpop.f32.mrf.mxu2 }
 0x65a   :  { %v4599_v19 = vpop.f32.mrf.mxu0 }
 0x65b   :  { %v4677_v29 = vadd.f32 %v4675_v22, %v4599_v19 }
 0x65c   :  { %v4622_v31 = vpop.f32.mrf.mxu1 }
 0x65d   :  { %v4679_v26 = vadd.f32 %v4677_v29, %v4645_v15  ;;  %v4678_v17 = vadd.f32 %v4676_v59, %v4622_v31  ;;  %v5100_v31 = vld [vmem:[%s7799_s11] ss:$0 sm:$0xff] }
 0x65e   :  { %v4668_v1 = vpop.f32.mrf.mxu3 }
 0x65f   :  { %v4684_v2 = vadd.f32 %v5098_v34, %v4679_v26  ;;  %v4680_v27 = vadd.f32 %v4678_v17, %v4668_v1 }
 0x661   :  { %v4686_v23 = vadd.f32 %v5221_v32, %v4684_v2  ;;  %v4685_v37 = vadd.f32 %v5098_v34, %v4680_v27  ;;  %v2395_v34 = vsel %vm2394_vm2, %v5206_v11, %v2391_v56 }
 0x662   :  { %v2406_v17 = vmul.f32 %v2395_v34, %v7637_v18 }
 0x663   :  { %v4688_v35 = vsel %vm388_vm0, %v4686_v23, 0.0  ;;  %v4687_v41 = vadd.f32 %v5222_v6, %v4685_v37  ;;  %v5101_v6 = vld [vmem:[%s7800_s12] ss:$0 sm:$0xff] }
 0x664   :  { %4689 = vadd.xlane.f32.xlu2 %v4688_v35  ;;  %v2411_v18 = vmul.f32 %v5100_v31, %v2406_v17 }
 0x665   :  { %v4691_v16 = vsel %vm388_vm0, %v4687_v41, 0.0 }
 0x666   :  { %4692 = vadd.xlane.f32.xlu0 %v4691_v16 }
 0x66c   :  { %2380 = vadd.xlane.f32.xlu2 %v2379_v62 }
 0x684   :  { %4749 = vperm.xlu2 %5020, %v5099_v38  }
 0x68c   :  { %5023 = vset.pattern.permute.xlu2 %v5251_v43 }
 0x68d   :  { %4763 = vperm.xlu2 %5023, %v5102_v63  }
 0x6d7   :  { %v4690_v28 = vpop.xlane.xlu2 %4689 }
 0x6d8   :  { %v4694_v30 = vmul.f32 %v4690_v28, %v7604_v0 }
 0x6d9   :  { %v4693_v61 = vpop.xlane.xlu0 %4692 }
 0x6da   :  { %v7738_v10 = vsub.f32 %v4686_v23, %v4694_v30  ;;  %v4695_v44 = vmul.f32 %v4693_v61, %v7604_v0  ;;  %v5103_v23 = vld [vmem:[%s7809_s21] ss:$0 sm:$0xff] }
 0x6dc   :  { %v4698_v42 = vmul.f32 %v7738_v10, %v7738_v10  ;;  %v7743_v47 = vsub.f32 %v4687_v41, %v4695_v44 }
 0x6de   :  { %v4700_v46 = vsel %vm388_vm0, %v4698_v42, 0.0  ;;  %v4699_v50 = vmul.f32 %v7743_v47, %v7743_v47 }
 0x6df   :  { %4701 = vadd.xlane.f32.xlu0 %v4700_v46  ;;  %v2381_v52 = vpop.xlane.xlu2 %2380 }
 0x6e0   :  { %v4703_v3 = vsel %vm388_vm0, %v4699_v50, 0.0  ;;  %v2383_v54 = vmul.f32 %v2381_v52, %v7604_v0 }
 0x6e1   :  { %4704 = vadd.xlane.f32.xlu1 %v4703_v3 }
 0x6e2   :  { %v2385_v57 = vadd.f32 1e-05, %v2383_v54 }
 0x6e4   :  { %5207 = vrsqrt.f32 %v2385_v57  ;;  %vm2402_vm4 = vweird.f32 %v2385_v57 }
 0x6e7   :  { %v4750_v27 = vpop.permute.xlu2 %4749 }
 0x6ea   :  { %v5208_v14 = vpop.eup %5207 }
 0x6eb   :  { %v2397_v33 = vmul.f32 %v5208_v14, %v2385_v57  ;;  %vm2403_vm3 = vweird.f32 %v5208_v14 }
 0x6ec   :  { %vm2404_vm5 = vmor %vm2402_vm4, %vm2403_vm3 }
 0x6ed   :  { %v2398_v7 = vmul.f32 %v5208_v14, %v2397_v33 }
 0x6ef   :  { %v2399_v12 = vmul.f32 0.5, %v2398_v7  ;;  %v4764_v50 = vpop.permute.xlu2 %4763 }
 0x6f1   :  { %v2400_v53 = vsub.f32 1.5, %v2399_v12 }
 0x6f3   :  { %4753 = vperm.xlu0 %5021, %v5102_v63   ;;  %v2401_v15 = vmul.f32 %v5208_v14, %v2400_v53 }
 0x6f5   :  { %v2405_v2 = vsel %vm2404_vm5, %v5208_v14, %v2401_v15 }
 0x6f6   :  { %v2407_v37 = vmul.f32 %v2405_v2, %v7721_v40 }
 0x6f8   :  { %v2412_v63 = vmul.f32 %v5100_v31, %v2407_v37 }
 0x6fa   :  { %4759 = vperm.xlu1 %5022, %v5099_v38   ;;  %v2417_v3 = vadd.f32 %v5101_v6, %v2412_v63 }
 0x6fb   :  { %5024 = vset.pattern.permute.xlu0 %v5251_v43  ;;  %v2416_v43 = vadd.f32 %v5101_v6, %v2411_v18 }
 0x6fd   :  { %v4756_v44 = vmul.f32 %v4750_v27, %v2416_v43 }
 0x752   :  { %v4702_v60 = vpop.xlane.xlu0 %4701 }
 0x753   :  { %v4706_v4 = vmul.f32 %v4702_v60, %v7604_v0 }
 0x754   :  { %v4705_v58 = vpop.xlane.xlu1 %4704 }
 0x755   :  { %v4708_v8 = vadd.f32 1e-05, %v4706_v4  ;;  %v4707_v20 = vmul.f32 %v4705_v58, %v7604_v0 }
 0x757   :  { %5209 = vrsqrt.f32 %v4708_v8  ;;  %v4709_v24 = vadd.f32 1e-05, %v4707_v20  ;;  %vm4716_vm7 = vweird.f32 %v4708_v8 }
 0x759   :  { %5211 = vrsqrt.f32 %v4709_v24  ;;  %vm4726_vm10 = vweird.f32 %v4709_v24 }
 0x75d   :  { %v5210_v13 = vpop.eup %5209 }
 0x75e   :  { %v4711_v21 = vmul.f32 %v5210_v13, %v4708_v8  ;;  %vm4717_vm6 = vweird.f32 %v5210_v13 }
 0x75f   :  { %v5212_v22 = vpop.eup %5211  ;;  %vm4718_vm8 = vmor %vm4716_vm7, %vm4717_vm6 }
 0x760   :  { %v4712_v19 = vmul.f32 %v5210_v13, %v4711_v21  ;;  %v4721_v29 = vmul.f32 %v5212_v22, %v4709_v24  ;;  %vm4727_vm9 = vweird.f32 %v5212_v22 }
 0x761   :  { %vm4728_vm11 = vmor %vm4726_vm10, %vm4727_vm9 }
 0x762   :  { %v4713_v39 = vmul.f32 0.5, %v4712_v19  ;;  %v4722_v59 = vmul.f32 %v5212_v22, %v4721_v29 }
 0x764   :  { %v4714_v26 = vsub.f32 1.5, %v4713_v39  ;;  %v4723_v45 = vmul.f32 0.5, %v4722_v59  ;;  %v5105_v59 = vld [vmem:[%s7811_s23] ss:$0 sm:$0xff]  ;;  %s4834_s23 = sshll.u32 %s7813_s25, 4  ;;  %s4835_s23 = int_to_ptr.hbm [resolvable:$true] %s4834_s23 }
 0x765   :  { %v4754_v42 = vpop.permute.xlu0 %4753 }
 0x766   :  { %v4715_v1 = vmul.f32 %v5210_v13, %v4714_v26  ;;  %v4724_v32 = vsub.f32 1.5, %v4723_v45  ;;  %v4757_v51 = vmul.f32 %v4754_v42, %v2417_v3  ;;  %v5106_v45 = vld [vmem:[%s7812_s24] ss:$0 sm:$0xff]  ;;  %s5253_s24 = smov 128  }
 0x768   :  { %v4719_v35 = vsel %vm4718_vm8, %v5210_v13, %v4715_v1  ;;  %v4725_v41 = vmul.f32 %v5212_v22, %v4724_v32 }
 0x769   :  { %v4730_v16 = vmul.f32 %v4719_v35, %v7738_v10 }
 0x76a   :  { %v4729_v38 = vsel %vm4728_vm11, %v5212_v22, %v4725_v41 }
 0x76b   :  { %v4735_v62 = vmul.f32 %v5103_v23, %v4730_v16  ;;  %v4731_v40 = vmul.f32 %v4729_v38, %v7743_v47 }
 0x76c   :  { %v4760_v30 = vpop.permute.xlu1 %4759 }
 0x76d   :  { %v4740_v28 = vadd.f32 %v5104_v25, %v4735_v62  ;;  %v4736_v61 = vmul.f32 %v5103_v23, %v4731_v40 }
 0x76f   :  { %v4766_v46 = vmul.f32 %v4760_v30, %v4740_v28  ;;  %v4741_v10 = vadd.f32 %v5104_v25, %v4736_v61 }
 0x771   :  { %v4768_v49 = vadd.f32 %v4766_v46, %v4756_v44  ;;  %v4767_v52 = vmul.f32 %v4764_v50, %v4741_v10 }
 0x773   :  { %v4770_v54 = vsel %vm388_vm0, %v4768_v49, 0.0  ;;  %v4769_v55 = vadd.f32 %v4767_v52, %v4757_v51 }
 0x774   :  { %4771 = vadd.xlane.f32.xlu2 %v4770_v54 }
 0x775   :  { %v4773_v57 = vsel %vm388_vm0, %v4769_v55, 0.0 }
 0x776   :  { %4774 = vadd.xlane.f32.xlu1 %v4773_v57 }
 0x7e7   :  { %v4772_v47 = vpop.xlane.xlu2 %4771 }
 0x7e8   :  { %v4776_v11 = vmul.f32 %v4772_v47, %v7604_v0 }
 0x7e9   :  { %v4775_v5 = vpop.xlane.xlu1 %4774 }
 0x7ea   :  { %v4778_v14 = vsub.f32 %v4768_v49, %v4776_v11  ;;  %v4777_v33 = vmul.f32 %v4775_v5, %v7604_v0 }
 0x7ec   :  { %v4780_v48 = vmul.f32 %v4778_v14, %v4778_v14  ;;  %v4779_v60 = vsub.f32 %v4769_v55, %v4777_v33 }
 0x7ee   :  { %v4782_v4 = vsel %vm388_vm0, %v4780_v48, 0.0  ;;  %v4781_v7 = vmul.f32 %v4779_v60, %v4779_v60 }
 0x7ef   :  { %4783 = vadd.xlane.f32.xlu0 %v4782_v4 }
 0x7f0   :  { %v4785_v8 = vsel %vm388_vm0, %v4781_v7, 0.0 }
 0x7f1   :  { %4786 = vadd.xlane.f32.xlu2 %v4785_v8 }
 0x862   :  { %v4784_v58 = vpop.xlane.xlu0 %4783 }
 0x863   :  { %v4788_v9 = vmul.f32 %v4784_v58, %v7604_v0 }
 0x864   :  { %v4787_v24 = vpop.xlane.xlu2 %4786 }
 0x865   :  { %v4790_v20 = vadd.f32 2.5e-06, %v4788_v9  ;;  %v4789_v12 = vmul.f32 %v4787_v24, %v7604_v0 }
 0x867   :  { %5213 = vrsqrt.f32 %v4790_v20  ;;  %v4791_v36 = vadd.f32 2.5e-06, %v4789_v12  ;;  %vm4798_vm13 = vweird.f32 %v4790_v20 }
 0x869   :  { %5215 = vrsqrt.f32 %v4791_v36  ;;  %vm4808_vm15 = vweird.f32 %v4791_v36 }
 0x86d   :  { %v5214_v13 = vpop.eup %5213 }
 0x86e   :  { %v4793_v53 = vmul.f32 %v5214_v13, %v4790_v20  ;;  %vm4799_vm12 = vweird.f32 %v5214_v13 }
 0x86f   :  { %v5216_v56 = vpop.eup %5215  ;;  %vm4800_vm14 = vmor %vm4798_vm13, %vm4799_vm12 }
 0x870   :  { %v4794_v21 = vmul.f32 %v5214_v13, %v4793_v53  ;;  %v4803_v22 = vmul.f32 %v5216_v56, %v4791_v36  ;;  %vm4809_vm1 = vweird.f32 %v5216_v56 }
 0x871   :  { %vm4810_vm2 = vmor %vm4808_vm15, %vm4809_vm1 }
 0x872   :  { %v4795_v19 = vmul.f32 0.5, %v4794_v21  ;;  %v4804_v15 = vmul.f32 %v5216_v56, %v4803_v22 }
 0x874   :  { %v4796_v29 = vsub.f32 1.5, %v4795_v19  ;;  %v4805_v34 = vmul.f32 0.5, %v4804_v15 }
 0x876   :  { %v4797_v39 = vmul.f32 %v5214_v13, %v4796_v29  ;;  %v4806_v0 = vsub.f32 1.5, %v4805_v34 }
 0x878   :  { %v4801_v26 = vsel %vm4800_vm14, %v5214_v13, %v4797_v39  ;;  %v4807_v17 = vmul.f32 %v5216_v56, %v4806_v0 }
 0x879   :  { %v4812_v31 = vmul.f32 %v4801_v26, %v4778_v14 }
 0x87a   :  { %v4811_v1 = vsel %vm4810_vm2, %v5216_v56, %v4807_v17 }
 0x87b   :  { %v4818_v2 = vmul.f32 %v5105_v59, %v4812_v31  ;;  %v4813_v27 = vmul.f32 %v4811_v1, %v4779_v60 }
 0x87d   :  { %v4824_v32 = vadd.f32 %v5106_v45, %v4818_v2  ;;  %v4819_v23 = vmul.f32 %v5105_v59, %v4813_v27 }
 0x87f   :  { %4826 = vst.msk [vmem:[#allocation2] sm:$0xff] %vm388_vm0, %v4824_v32  ;;  %v4825_v37 = vadd.f32 %v5106_v45, %v4819_v23 }
 0x881   :  { %4827 = vst.msk [vmem:[#allocation2 + $0x8] sm:$0xff] %vm388_vm0, %v4825_v37 }
 0x882   :  { %4840 = dma.vmem_to_hbm [thread:$0]  %s4833_s29, 256, %s4835_s23, [#allocation3], %s5253_s24, %s5253_s24, %s5254_s3  }
 0x883   :  { %5247 = dma.done.wait [#allocation3], 256  }
 0x884   :  { %5248 = vsyncadd [#allocation3], 4294967040 }
 0x885   :  { %4845 = vsyncpa [#allocation3], 1 }

</bundles_post_ra>
